<compile_context>
chip_gen: v7x
topology: tpu7x:2x2x1
jax: 0.10.0
libtpu: 0.0.40
codegen_flags: <defaults>
</compile_context>

<pallas_src>
import functools

import jax
import jax.numpy as jnp
import numpy as np
from jax import lax
from jax.experimental import pallas as pl
from jax.experimental.pallas import tpu as pltpu


def _round_up(n, m):
    return ((n + m - 1) // m) * m


# --------------------------- fused decoder kernel ----------------------------
def _decoder_fused_kernel(*refs, seq_len, num_lstm_layers, batch_block):
    """refs = [x, (wx,wh,b)*L, fc_w, fc_b] + [out] + [y_buf]*L (+ [p_buf])."""
    T, L, BB = seq_len, num_lstm_layers, batch_block
    n_in = 1 + 3 * L + 2
    x_ref = refs[0]
    layer_refs = refs[1:1 + 3 * L]
    wfc_ref, bfc_ref = refs[n_in - 2], refs[n_in - 1]
    o_ref = refs[n_in]
    y_bufs = refs[n_in + 1:n_in + 1 + L]
    p_buf = refs[n_in + 1 + L] if L > 1 else None

    # Full unroll while T is small; bounded unroll for long sequences so the
    # program size / vreg pressure stays under control.
    unroll = True if T <= 32 else 8

    def run_layer(read_proj, whh_ref, y_buf):
        """Serial recurrence; only h @ W_hh is on the critical path.
        Gate columns are packed as 128-lane stripes [i | f | o | g]."""
        Hp = whh_ref.shape[0]

        def step(t, carry):
            h, c = carry
            gates = read_proj(t) + jnp.dot(
                h, whh_ref[...], preferred_element_type=jnp.float32)  # (BB, 4Hp)
            ifo = jax.nn.sigmoid(gates[:, :3 * Hp])     # whole-vreg stripes
            g = jnp.tanh(gates[:, 3 * Hp:])
            c = ifo[:, Hp:2 * Hp] * c + ifo[:, :Hp] * g
            h = ifo[:, 2 * Hp:] * jnp.tanh(c)
            row = pl.multiple_of(t * BB, BB)
            y_buf[pl.ds(row, BB), :] = h                # aligned sublane store
            return h, c

        z = jnp.zeros((BB, Hp), jnp.float32)
        lax.fori_loop(0, T, step, (z, z), unroll=unroll)

    # ---- layer 0 (LSTMdec): the input is the SAME latent vector at every
    # timestep, so the input projection (+ folded bias) is computed once. ----
    wx0, wh0, b0 = layer_refs[0], layer_refs[1], layer_refs[2]
    p0 = jnp.dot(x_ref[...], wx0[...],
                 preferred_element_type=jnp.float32) + b0[...]      # (BB, 4Hp0)
    run_layer(lambda t: p0, wh0, y_bufs[0])

    # ---- layers 1..L-1: batch all T input projections into one matmul and
    # stage the result in VMEM scratch; read per step via pl.ds. ----
    for l in range(1, L):
        wx, wh, b = layer_refs[3 * l], layer_refs[3 * l + 1], layer_refs[3 * l + 2]
        Hp = wh.shape[0]
        p_buf[:, :4 * Hp] = (
            jnp.dot(y_bufs[l - 1][...], wx[...],
                    preferred_element_type=jnp.float32) + b[...])   # (T*BB, 4Hp)

        def read_proj(t, Hp=Hp):
            row = pl.multiple_of(t * BB, BB)
            return p_buf[pl.ds(row, BB), :4 * Hp]

        run_layer(read_proj, wh, y_bufs[l])

    # ---- final Linear over all timesteps at once; emit a lane-dense
    # batch-major (BB, T*O) slab (wrapper reshape to (B, T, O) is free). ----
    O = wfc_ref.shape[1]
    out = jnp.dot(y_bufs[L - 1][...], wfc_ref[...],
                  preferred_element_type=jnp.float32) + bfc_ref[...]  # (T*BB, O)
    for t in range(T):      # trace-time; T*O == 128 lanes at demo sizes
        o_ref[:, t * O:(t + 1) * O] = out[t * BB:(t + 1) * BB, :]


# ----------------------- one-time parameter repacking ------------------------
def _pack_lstm(w_ih, w_hh, b_ih, b_hh, in_pad):
    """PyTorch (4H, D)/(4H, H) with gate order [i,f,g,o] -> transposed,
    lane-striped (in_pad, 4*Hp)/(Hp, 4*Hp) with gate order [i,f,o,g], each
    gate starting on a 128-lane boundary, and a single folded bias (1, 4*Hp).
    Padded rows/columns are zero, so padded h/c lanes stay exactly 0."""
    H = w_hh.shape[1]
    D = w_ih.shape[1]
    Hp = _round_up(H, 128)
    src = [0, 1, 3, 2]                       # emit stripes in order i, f, o, g
    wx = jnp.zeros((in_pad, 4 * Hp), jnp.float32)
    wh = jnp.zeros((Hp, 4 * Hp), jnp.float32)
    b = jnp.zeros((1, 4 * Hp), jnp.float32)
    bias = b_ih + b_hh
    for s, g in enumerate(src):
        wx = wx.at[:D, s * Hp:s * Hp + H].set(w_ih[g * H:(g + 1) * H, :].T)
        wh = wh.at[:H, s * Hp:s * Hp + H].set(w_hh[g * H:(g + 1) * H, :].T)
        b = b.at[0, s * Hp:s * Hp + H].set(bias[g * H:(g + 1) * H])
    return wx, wh, b


def pack_decoder_params(params):
    """One-time repack (transpose / gate-stripe / bias-fold) for the kernel."""
    raw = params["lstmdec"] + params["lstm1"]
    layers = []
    in_pad = _round_up(raw[0][0].shape[1], 128)          # latent dim -> lanes
    for (w_ih, w_hh, b_ih, b_hh) in raw:
        wx, wh, b = _pack_lstm(w_ih, w_hh, b_ih, b_hh, in_pad)
        layers.append((wx, wh, b))
        in_pad = wh.shape[0]                             # next layer's padded in
    H_last = raw[-1][1].shape[1]
    Hp_last = layers[-1][1].shape[0]
    fc_wt = (jnp.zeros((Hp_last, params["fc_w"].shape[0]), jnp.float32)
             .at[:H_last, :].set(params["fc_w"].T))
    return dict(layers=layers, fc_wt=fc_wt,
                fc_b=params["fc_b"].reshape(1, -1),
                seq_len=params["seq_len"])


# --------------------------------- wrapper ------------------------------------
def decoder_forward(x, packed):
    """x: (B, latent_dim) -> (B, seq_len, output_size)."""
    T = packed["seq_len"]
    layers = packed["layers"]
    L = len(layers)
    B = x.shape[0]
    O = packed["fc_wt"].shape[1]
    Din_p = layers[0][0].shape[0]

    # ---- batch tiling: sublane-aligned blocks, batch-parallel grid ----
    Bp = _round_up(max(B, 1), 8)
    if Bp <= 8:
        BB = Bp
    else:
        # split across (up to) two TensorCores, cap block at 256 MXU rows
        BB = min(256, _round_up(-(-Bp // 2), 8))
        Bp = _round_up(Bp, BB)
    n_blocks = Bp // BB

    x_p = jnp.zeros((Bp, Din_p), jnp.float32).at[:B, :x.shape[1]].set(x)

    flat_w, scratch = [], []
    for (wx, wh, b) in layers:
        flat_w += [wx, wh, b]
        scratch.append(pltpu.VMEM((T * BB, wh.shape[0]), jnp.float32))
    hp_up = 0
    if L > 1:
        hp_up = max(layers[l][1].shape[0] for l in range(1, L))
        scratch.append(pltpu.VMEM((T * BB, 4 * hp_up), jnp.float32))

    weights = flat_w + [packed["fc_wt"], packed["fc_b"]]
    in_specs = [pl.BlockSpec((BB, Din_p), lambda i: (i, 0))]
    in_specs += [pl.BlockSpec(w.shape, lambda i: (0, 0)) for w in weights]
    out_specs = pl.BlockSpec((BB, T * O), lambda i: (i, 0))

    # ---- explicit VMEM budget (v7x has 64 MiB physical, 32 MiB default scoped)
    f32 = 4
    footprint = sum(int(np.prod(w.shape)) * f32 for w in weights)
    footprint += sum(T * BB * layers[l][1].shape[0] * f32 for l in range(L))
    if L > 1:
        footprint += T * BB * 4 * hp_up * f32
    footprint += 2 * (BB * Din_p + BB * T * O) * f32     # double-buffered I/O
    vmem_limit = int(min(64 * 1024 * 1024, max(32 * 1024 * 1024, 2 * footprint)))

    out_flat = pl.pallas_call(
        functools.partial(_decoder_fused_kernel, seq_len=T,
                          num_lstm_layers=L, batch_block=BB),
        out_shape=jax.ShapeDtypeStruct((Bp, T * O), jnp.float32),
        grid=(n_blocks,),
        in_specs=in_specs,
        out_specs=out_specs,
        scratch_shapes=scratch,
        compiler_params=pltpu.CompilerParams(
            dimension_semantics=("parallel",),
            vmem_limit_bytes=vmem_limit),
    )(x_p, *weights)

    return out_flat[:B].reshape(B, T, O)


# ------------------------------ initialization --------------------------------
def init_decoder_params(key, seq_out, embedding_size, output_size, latent_dim,
                        n_layers_1=2, n_layers_2=1):
    hidden_size = 2 * embedding_size
    ks = list(jax.random.split(key, 16))

    def lstm_weights(k, in_dim, hid):
        k1, k2, k3, k4 = jax.random.split(k, 4)
        s = 1.0 / jnp.sqrt(hid)
        return (jax.random.uniform(k1, (4 * hid, in_dim), jnp.float32, -s, s),
                jax.random.uniform(k2, (4 * hid, hid), jnp.float32, -s, s),
                jax.random.uniform(k3, (4 * hid,), jnp.float32, -s, s),
                jax.random.uniform(k4, (4 * hid,), jnp.float32, -s, s))

    lstmdec = []
    for l in range(n_layers_2):
        in_dim = latent_dim if l == 0 else embedding_size
        lstmdec.append(lstm_weights(ks.pop(), in_dim, embedding_size))

    lstm1 = []
    for l in range(n_layers_1):
        in_dim = embedding_size if l == 0 else hidden_size
        lstm1.append(lstm_weights(ks.pop(), in_dim, hidden_size))

    # fc: kaiming_normal weight, zero bias (per Decoder.weight_init)
    fc_w = jax.random.normal(ks.pop(), (output_size, hidden_size),
                             jnp.float32) * jnp.sqrt(2.0 / hidden_size)
    fc_b = jnp.zeros((output_size,), jnp.float32)

    return dict(lstmdec=lstmdec, lstm1=lstm1, fc_w=fc_w, fc_b=fc_b,
                seq_len=seq_out, hidden=hidden_size)


# -------------------------- pure-JAX reference check ---------------------------
def _lstm_layer_ref(x_tm, w_ih, w_hh, b_ih, b_hh):
    H = w_hh.shape[1]
    B = x_tm.shape[1]

    def step(carry, xt):
        h, c = carry
        gates = xt @ w_ih.T + b_ih + h @ w_hh.T + b_hh
        i, f, g, o = jnp.split(gates, 4, axis=-1)
        i, f, o = jax.nn.sigmoid(i), jax.nn.sigmoid(f), jax.nn.sigmoid(o)
        g = jnp.tanh(g)
        c = f * c + i * g
        h = o * jnp.tanh(c)
        return (h, c), h

    init = (jnp.zeros((B, H), jnp.float32), jnp.zeros((B, H), jnp.float32))
    _, ys = jax.lax.scan(step, init, x_tm)
    return ys


def _decoder_ref(x, params):
    seq_len = params["seq_len"]
    B = x.shape[0]
    h = jnp.broadcast_to(x[None, :, :], (seq_len, B, x.shape[1]))
    for w in params["lstmdec"]:
        h = _lstm_layer_ref(h, *w)
    for w in params["lstm1"]:
        h = _lstm_layer_ref(h, *w)
    y = jnp.transpose(h, (1, 0, 2)).reshape(B * seq_len, params["hidden"])
    out = y @ params["fc_w"].T + params["fc_b"]
    return out.reshape(B, seq_len, -1)


if __name__ == "__main__":
    B, seq_out = 2, 8
    latent_dim, embedding_size, output_size = 32, 32, 16

    key = jax.random.PRNGKey(0)
    kp, kx = jax.random.split(key)
    params = init_decoder_params(kp, seq_out, embedding_size, output_size,
                                 latent_dim, n_layers_1=2, n_layers_2=1)
    packed = pack_decoder_params(params)          # one-time weight repack
    x = jax.random.normal(kx, (B, latent_dim), jnp.float32)

    out = jax.block_until_ready(decoder_forward(x, packed))
    ref = jax.block_until_ready(_decoder_ref(x, params))

    assert out.shape == (B, seq_out, output_size), out.shape
    np.testing.assert_allclose(np.asarray(out), np.asarray(ref),
                               rtol=1e-4, atol=1e-4)
    print("KERNEL_OK")
</pallas_src>

<mosaic_0001>
module attributes {stable_mosaic.version = 11 : i64} {
  func.func @_decoder_fused_kernel(%arg0: i32, %arg1: memref<8x128xf32, #tpu.memory_space<vmem>>, %arg2: memref<128x512xf32, #tpu.memory_space<vmem>>, %arg3: memref<128x512xf32, #tpu.memory_space<vmem>>, %arg4: memref<1x512xf32, #tpu.memory_space<vmem>>, %arg5: memref<128x512xf32, #tpu.memory_space<vmem>>, %arg6: memref<128x512xf32, #tpu.memory_space<vmem>>, %arg7: memref<1x512xf32, #tpu.memory_space<vmem>>, %arg8: memref<128x512xf32, #tpu.memory_space<vmem>>, %arg9: memref<128x512xf32, #tpu.memory_space<vmem>>, %arg10: memref<1x512xf32, #tpu.memory_space<vmem>>, %arg11: memref<128x16xf32, #tpu.memory_space<vmem>>, %arg12: memref<1x16xf32, #tpu.memory_space<vmem>>, %arg13: memref<8x128xf32, #tpu.memory_space<vmem>>, %arg14: memref<64x128xf32, #tpu.memory_space<vmem>>, %arg15: memref<64x128xf32, #tpu.memory_space<vmem>>, %arg16: memref<64x128xf32, #tpu.memory_space<vmem>>, %arg17: memref<64x512xf32, #tpu.memory_space<vmem>>) attributes {dimension_semantics = [#tpu.dimension_semantics<parallel>], iteration_bounds = array<i64: 1>, scalar_prefetch = 0 : i64, scratch_operands = 4 : i64, tpu.core_type = #tpu.core_type<tc>, window_params = [{transform_indices = @transform_0, window_bounds = array<i64: 8, 128>}, {pipeline_mode = #tpu.pipeline_mode<synchronous>, transform_indices = @transform_1, window_bounds = array<i64: 128, 512>}, {pipeline_mode = #tpu.pipeline_mode<synchronous>, transform_indices = @transform_2, window_bounds = array<i64: 128, 512>}, {pipeline_mode = #tpu.pipeline_mode<synchronous>, transform_indices = @transform_3, window_bounds = array<i64: 1, 512>}, {pipeline_mode = #tpu.pipeline_mode<synchronous>, transform_indices = @transform_4, window_bounds = array<i64: 128, 512>}, {pipeline_mode = #tpu.pipeline_mode<synchronous>, transform_indices = @transform_5, window_bounds = array<i64: 128, 512>}, {pipeline_mode = #tpu.pipeline_mode<synchronous>, transform_indices = @transform_6, window_bounds = array<i64: 1, 512>}, {pipeline_mode = #tpu.pipeline_mode<synchronous>, transform_indices = @transform_7, window_bounds = array<i64: 128, 512>}, {pipeline_mode = #tpu.pipeline_mode<synchronous>, transform_indices = @transform_8, window_bounds = array<i64: 128, 512>}, {pipeline_mode = #tpu.pipeline_mode<synchronous>, transform_indices = @transform_9, window_bounds = array<i64: 1, 512>}, {pipeline_mode = #tpu.pipeline_mode<synchronous>, transform_indices = @transform_10, window_bounds = array<i64: 128, 16>}, {pipeline_mode = #tpu.pipeline_mode<synchronous>, transform_indices = @transform_11, window_bounds = array<i64: 1, 16>}, {transform_indices = @transform_12, window_bounds = array<i64: 8, 128>}]} {
    %c0 = arith.constant 0 : index
    %c0_0 = arith.constant 0 : index
    %0 = vector.load %arg1[%c0, %c0_0] : memref<8x128xf32, #tpu.memory_space<vmem>>, vector<8x128xf32>
    %c0_1 = arith.constant 0 : index
    %c0_2 = arith.constant 0 : index
    %1 = vector.load %arg2[%c0_1, %c0_2] : memref<128x512xf32, #tpu.memory_space<vmem>>, vector<128x512xf32>
    %cst = arith.constant dense<0.000000e+00> : vector<8x512xf32>
    %2 = tpu.matmul %0, %1, %cst {dimension_numbers = #tpu.dot_dimension_numbers<[1], [0], [0], [1], [0, 0, 1, 1], [], []>} : vector<8x128xf32>, vector<128x512xf32>, vector<8x512xf32> -> vector<8x512xf32>
    %c0_3 = arith.constant 0 : index
    %c0_4 = arith.constant 0 : index
    %3 = vector.load %arg4[%c0_3, %c0_4] : memref<1x512xf32, #tpu.memory_space<vmem>>, vector<1x512xf32>
    %4 = vector.broadcast %3 : vector<1x512xf32> to vector<8x512xf32>
    %5 = arith.addf %2, %4 : vector<8x512xf32>
    %cst_5 = arith.constant 0.000000e+00 : f32
    %6 = vector.broadcast %cst_5 : f32 to vector<8x128xf32>
    %c0_i32 = arith.constant 0 : i32
    %c0_6 = arith.constant 0 : index
    %c0_7 = arith.constant 0 : index
    %7 = vector.load %arg3[%c0_6, %c0_7] : memref<128x512xf32, #tpu.memory_space<vmem>>, vector<128x512xf32>
    %cst_8 = arith.constant dense<0.000000e+00> : vector<8x512xf32>
    %8 = tpu.matmul %6, %7, %cst_8 {dimension_numbers = #tpu.dot_dimension_numbers<[1], [0], [0], [1], [0, 0, 1, 1], [], []>} : vector<8x128xf32>, vector<128x512xf32>, vector<8x512xf32> -> vector<8x512xf32>
    %9 = arith.addf %5, %8 : vector<8x512xf32>
    %10 = vector.extract_strided_slice %9 {offsets = [0, 0], sizes = [8, 384], strides = [1, 1]} : vector<8x512xf32> to vector<8x384xf32>
    %11 = arith.negf %10 : vector<8x384xf32>
    %12 = math.exp %11 : vector<8x384xf32>
    %cst_9 = arith.constant 1.000000e+00 : f32
    %13 = vector.broadcast %cst_9 : f32 to vector<8x384xf32>
    %14 = arith.addf %13, %12 : vector<8x384xf32>
    %15 = arith.divf %13, %14 : vector<8x384xf32>
    %16 = vector.extract_strided_slice %9 {offsets = [0, 384], sizes = [8, 128], strides = [1, 1]} : vector<8x512xf32> to vector<8x128xf32>
    %17 = math.tanh %16 : vector<8x128xf32>
    %18 = vector.extract_strided_slice %15 {offsets = [0, 128], sizes = [8, 128], strides = [1, 1]} : vector<8x384xf32> to vector<8x128xf32>
    %19 = arith.mulf %18, %6 : vector<8x128xf32>
    %20 = vector.extract_strided_slice %15 {offsets = [0, 0], sizes = [8, 128], strides = [1, 1]} : vector<8x384xf32> to vector<8x128xf32>
    %21 = arith.mulf %20, %17 : vector<8x128xf32>
    %22 = arith.addf %19, %21 : vector<8x128xf32>
    %23 = vector.extract_strided_slice %15 {offsets = [0, 256], sizes = [8, 128], strides = [1, 1]} : vector<8x384xf32> to vector<8x128xf32>
    %24 = math.tanh %22 : vector<8x128xf32>
    %25 = arith.mulf %23, %24 : vector<8x128xf32>
    %c8_i32 = arith.constant 8 : i32
    %26 = arith.muli %c0_i32, %c8_i32 : i32
    %27 = tpu.assume_multiple %26, 8 : i32
    %28 = arith.index_cast %27 : i32 to index
    %c0_10 = arith.constant 0 : index
    %29 = vector.load %arg14[%28, %c0_10] : memref<64x128xf32, #tpu.memory_space<vmem>>, vector<8x128xf32>
    tpu.vector_store %arg14[%28, %c0_10], %25 {strides = array<i32>} : memref<64x128xf32, #tpu.memory_space<vmem>>, vector<8x128xf32>,
    %c1_i32 = arith.constant 1 : i32
    %c0_11 = arith.constant 0 : index
    %c0_12 = arith.constant 0 : index
    %30 = vector.load %arg3[%c0_11, %c0_12] : memref<128x512xf32, #tpu.memory_space<vmem>>, vector<128x512xf32>
    %cst_13 = arith.constant dense<0.000000e+00> : vector<8x512xf32>
    %31 = tpu.matmul %25, %30, %cst_13 {dimension_numbers = #tpu.dot_dimension_numbers<[1], [0], [0], [1], [0, 0, 1, 1], [], []>} : vector<8x128xf32>, vector<128x512xf32>, vector<8x512xf32> -> vector<8x512xf32>
    %32 = arith.addf %5, %31 : vector<8x512xf32>
    %33 = vector.extract_strided_slice %32 {offsets = [0, 0], sizes = [8, 384], strides = [1, 1]} : vector<8x512xf32> to vector<8x384xf32>
    %34 = arith.negf %33 : vector<8x384xf32>
    %35 = math.exp %34 : vector<8x384xf32>
    %cst_14 = arith.constant 1.000000e+00 : f32
    %36 = vector.broadcast %cst_14 : f32 to vector<8x384xf32>
    %37 = arith.addf %36, %35 : vector<8x384xf32>
    %38 = arith.divf %36, %37 : vector<8x384xf32>
    %39 = vector.extract_strided_slice %32 {offsets = [0, 384], sizes = [8, 128], strides = [1, 1]} : vector<8x512xf32> to vector<8x128xf32>
    %40 = math.tanh %39 : vector<8x128xf32>
    %41 = vector.extract_strided_slice %38 {offsets = [0, 128], sizes = [8, 128], strides = [1, 1]} : vector<8x384xf32> to vector<8x128xf32>
    %42 = arith.mulf %41, %22 : vector<8x128xf32>
    %43 = vector.extract_strided_slice %38 {offsets = [0, 0], sizes = [8, 128], strides = [1, 1]} : vector<8x384xf32> to vector<8x128xf32>
    %44 = arith.mulf %43, %40 : vector<8x128xf32>
    %45 = arith.addf %42, %44 : vector<8x128xf32>
    %46 = vector.extract_strided_slice %38 {offsets = [0, 256], sizes = [8, 128], strides = [1, 1]} : vector<8x384xf32> to vector<8x128xf32>
    %47 = math.tanh %45 : vector<8x128xf32>
    %48 = arith.mulf %46, %47 : vector<8x128xf32>
    %c8_i32_15 = arith.constant 8 : i32
    %49 = arith.muli %c1_i32, %c8_i32_15 : i32
    %50 = tpu.assume_multiple %49, 8 : i32
    %51 = arith.index_cast %50 : i32 to index
    %c0_16 = arith.constant 0 : index
    %52 = vector.load %arg14[%51, %c0_16] : memref<64x128xf32, #tpu.memory_space<vmem>>, vector<8x128xf32>
    tpu.vector_store %arg14[%51, %c0_16], %48 {strides = array<i32>} : memref<64x128xf32, #tpu.memory_space<vmem>>, vector<8x128xf32>,
    %c2_i32 = arith.constant 2 : i32
    %c0_17 = arith.constant 0 : index
    %c0_18 = arith.constant 0 : index
    %53 = vector.load %arg3[%c0_17, %c0_18] : memref<128x512xf32, #tpu.memory_space<vmem>>, vector<128x512xf32>
    %cst_19 = arith.constant dense<0.000000e+00> : vector<8x512xf32>
    %54 = tpu.matmul %48, %53, %cst_19 {dimension_numbers = #tpu.dot_dimension_numbers<[1], [0], [0], [1], [0, 0, 1, 1], [], []>} : vector<8x128xf32>, vector<128x512xf32>, vector<8x512xf32> -> vector<8x512xf32>
    %55 = arith.addf %5, %54 : vector<8x512xf32>
    %56 = vector.extract_strided_slice %55 {offsets = [0, 0], sizes = [8, 384], strides = [1, 1]} : vector<8x512xf32> to vector<8x384xf32>
    %57 = arith.negf %56 : vector<8x384xf32>
    %58 = math.exp %57 : vector<8x384xf32>
    %cst_20 = arith.constant 1.000000e+00 : f32
    %59 = vector.broadcast %cst_20 : f32 to vector<8x384xf32>
    %60 = arith.addf %59, %58 : vector<8x384xf32>
    %61 = arith.divf %59, %60 : vector<8x384xf32>
    %62 = vector.extract_strided_slice %55 {offsets = [0, 384], sizes = [8, 128], strides = [1, 1]} : vector<8x512xf32> to vector<8x128xf32>
    %63 = math.tanh %62 : vector<8x128xf32>
    %64 = vector.extract_strided_slice %61 {offsets = [0, 128], sizes = [8, 128], strides = [1, 1]} : vector<8x384xf32> to vector<8x128xf32>
    %65 = arith.mulf %64, %45 : vector<8x128xf32>
    %66 = vector.extract_strided_slice %61 {offsets = [0, 0], sizes = [8, 128], strides = [1, 1]} : vector<8x384xf32> to vector<8x128xf32>
    %67 = arith.mulf %66, %63 : vector<8x128xf32>
    %68 = arith.addf %65, %67 : vector<8x128xf32>
    %69 = vector.extract_strided_slice %61 {offsets = [0, 256], sizes = [8, 128], strides = [1, 1]} : vector<8x384xf32> to vector<8x128xf32>
    %70 = math.tanh %68 : vector<8x128xf32>
    %71 = arith.mulf %69, %70 : vector<8x128xf32>
    %c8_i32_21 = arith.constant 8 : i32
    %72 = arith.muli %c2_i32, %c8_i32_21 : i32
    %73 = tpu.assume_multiple %72, 8 : i32
    %74 = arith.index_cast %73 : i32 to index
    %c0_22 = arith.constant 0 : index
    %75 = vector.load %arg14[%74, %c0_22] : memref<64x128xf32, #tpu.memory_space<vmem>>, vector<8x128xf32>
    tpu.vector_store %arg14[%74, %c0_22], %71 {strides = array<i32>} : memref<64x128xf32, #tpu.memory_space<vmem>>, vector<8x128xf32>,
    %c3_i32 = arith.constant 3 : i32
    %c0_23 = arith.constant 0 : index
    %c0_24 = arith.constant 0 : index
    %76 = vector.load %arg3[%c0_23, %c0_24] : memref<128x512xf32, #tpu.memory_space<vmem>>, vector<128x512xf32>
    %cst_25 = arith.constant dense<0.000000e+00> : vector<8x512xf32>
    %77 = tpu.matmul %71, %76, %cst_25 {dimension_numbers = #tpu.dot_dimension_numbers<[1], [0], [0], [1], [0, 0, 1, 1], [], []>} : vector<8x128xf32>, vector<128x512xf32>, vector<8x512xf32> -> vector<8x512xf32>
    %78 = arith.addf %5, %77 : vector<8x512xf32>
    %79 = vector.extract_strided_slice %78 {offsets = [0, 0], sizes = [8, 384], strides = [1, 1]} : vector<8x512xf32> to vector<8x384xf32>
    %80 = arith.negf %79 : vector<8x384xf32>
    %81 = math.exp %80 : vector<8x384xf32>
    %cst_26 = arith.constant 1.000000e+00 : f32
    %82 = vector.broadcast %cst_26 : f32 to vector<8x384xf32>
    %83 = arith.addf %82, %81 : vector<8x384xf32>
    %84 = arith.divf %82, %83 : vector<8x384xf32>
    %85 = vector.extract_strided_slice %78 {offsets = [0, 384], sizes = [8, 128], strides = [1, 1]} : vector<8x512xf32> to vector<8x128xf32>
    %86 = math.tanh %85 : vector<8x128xf32>
    %87 = vector.extract_strided_slice %84 {offsets = [0, 128], sizes = [8, 128], strides = [1, 1]} : vector<8x384xf32> to vector<8x128xf32>
    %88 = arith.mulf %87, %68 : vector<8x128xf32>
    %89 = vector.extract_strided_slice %84 {offsets = [0, 0], sizes = [8, 128], strides = [1, 1]} : vector<8x384xf32> to vector<8x128xf32>
    %90 = arith.mulf %89, %86 : vector<8x128xf32>
    %91 = arith.addf %88, %90 : vector<8x128xf32>
    %92 = vector.extract_strided_slice %84 {offsets = [0, 256], sizes = [8, 128], strides = [1, 1]} : vector<8x384xf32> to vector<8x128xf32>
    %93 = math.tanh %91 : vector<8x128xf32>
    %94 = arith.mulf %92, %93 : vector<8x128xf32>
    %c8_i32_27 = arith.constant 8 : i32
    %95 = arith.muli %c3_i32, %c8_i32_27 : i32
    %96 = tpu.assume_multiple %95, 8 : i32
    %97 = arith.index_cast %96 : i32 to index
    %c0_28 = arith.constant 0 : index
    %98 = vector.load %arg14[%97, %c0_28] : memref<64x128xf32, #tpu.memory_space<vmem>>, vector<8x128xf32>
    tpu.vector_store %arg14[%97, %c0_28], %94 {strides = array<i32>} : memref<64x128xf32, #tpu.memory_space<vmem>>, vector<8x128xf32>,
    %c4_i32 = arith.constant 4 : i32
    %c0_29 = arith.constant 0 : index
    %c0_30 = arith.constant 0 : index
    %99 = vector.load %arg3[%c0_29, %c0_30] : memref<128x512xf32, #tpu.memory_space<vmem>>, vector<128x512xf32>
    %cst_31 = arith.constant dense<0.000000e+00> : vector<8x512xf32>
    %100 = tpu.matmul %94, %99, %cst_31 {dimension_numbers = #tpu.dot_dimension_numbers<[1], [0], [0], [1], [0, 0, 1, 1], [], []>} : vector<8x128xf32>, vector<128x512xf32>, vector<8x512xf32> -> vector<8x512xf32>
    %101 = arith.addf %5, %100 : vector<8x512xf32>
    %102 = vector.extract_strided_slice %101 {offsets = [0, 0], sizes = [8, 384], strides = [1, 1]} : vector<8x512xf32> to vector<8x384xf32>
    %103 = arith.negf %102 : vector<8x384xf32>
    %104 = math.exp %103 : vector<8x384xf32>
    %cst_32 = arith.constant 1.000000e+00 : f32
    %105 = vector.broadcast %cst_32 : f32 to vector<8x384xf32>
    %106 = arith.addf %105, %104 : vector<8x384xf32>
    %107 = arith.divf %105, %106 : vector<8x384xf32>
    %108 = vector.extract_strided_slice %101 {offsets = [0, 384], sizes = [8, 128], strides = [1, 1]} : vector<8x512xf32> to vector<8x128xf32>
    %109 = math.tanh %108 : vector<8x128xf32>
    %110 = vector.extract_strided_slice %107 {offsets = [0, 128], sizes = [8, 128], strides = [1, 1]} : vector<8x384xf32> to vector<8x128xf32>
    %111 = arith.mulf %110, %91 : vector<8x128xf32>
    %112 = vector.extract_strided_slice %107 {offsets = [0, 0], sizes = [8, 128], strides = [1, 1]} : vector<8x384xf32> to vector<8x128xf32>
    %113 = arith.mulf %112, %109 : vector<8x128xf32>
    %114 = arith.addf %111, %113 : vector<8x128xf32>
    %115 = vector.extract_strided_slice %107 {offsets = [0, 256], sizes = [8, 128], strides = [1, 1]} : vector<8x384xf32> to vector<8x128xf32>
    %116 = math.tanh %114 : vector<8x128xf32>
    %117 = arith.mulf %115, %116 : vector<8x128xf32>
    %c8_i32_33 = arith.constant 8 : i32
    %118 = arith.muli %c4_i32, %c8_i32_33 : i32
    %119 = tpu.assume_multiple %118, 8 : i32
    %120 = arith.index_cast %119 : i32 to index
    %c0_34 = arith.constant 0 : index
    %121 = vector.load %arg14[%120, %c0_34] : memref<64x128xf32, #tpu.memory_space<vmem>>, vector<8x128xf32>
    tpu.vector_store %arg14[%120, %c0_34], %117 {strides = array<i32>} : memref<64x128xf32, #tpu.memory_space<vmem>>, vector<8x128xf32>,
    %c5_i32 = arith.constant 5 : i32
    %c0_35 = arith.constant 0 : index
    %c0_36 = arith.constant 0 : index
    %122 = vector.load %arg3[%c0_35, %c0_36] : memref<128x512xf32, #tpu.memory_space<vmem>>, vector<128x512xf32>
    %cst_37 = arith.constant dense<0.000000e+00> : vector<8x512xf32>
    %123 = tpu.matmul %117, %122, %cst_37 {dimension_numbers = #tpu.dot_dimension_numbers<[1], [0], [0], [1], [0, 0, 1, 1], [], []>} : vector<8x128xf32>, vector<128x512xf32>, vector<8x512xf32> -> vector<8x512xf32>
    %124 = arith.addf %5, %123 : vector<8x512xf32>
    %125 = vector.extract_strided_slice %124 {offsets = [0, 0], sizes = [8, 384], strides = [1, 1]} : vector<8x512xf32> to vector<8x384xf32>
    %126 = arith.negf %125 : vector<8x384xf32>
    %127 = math.exp %126 : vector<8x384xf32>
    %cst_38 = arith.constant 1.000000e+00 : f32
    %128 = vector.broadcast %cst_38 : f32 to vector<8x384xf32>
    %129 = arith.addf %128, %127 : vector<8x384xf32>
    %130 = arith.divf %128, %129 : vector<8x384xf32>
    %131 = vector.extract_strided_slice %124 {offsets = [0, 384], sizes = [8, 128], strides = [1, 1]} : vector<8x512xf32> to vector<8x128xf32>
    %132 = math.tanh %131 : vector<8x128xf32>
    %133 = vector.extract_strided_slice %130 {offsets = [0, 128], sizes = [8, 128], strides = [1, 1]} : vector<8x384xf32> to vector<8x128xf32>
    %134 = arith.mulf %133, %114 : vector<8x128xf32>
    %135 = vector.extract_strided_slice %130 {offsets = [0, 0], sizes = [8, 128], strides = [1, 1]} : vector<8x384xf32> to vector<8x128xf32>
    %136 = arith.mulf %135, %132 : vector<8x128xf32>
    %137 = arith.addf %134, %136 : vector<8x128xf32>
    %138 = vector.extract_strided_slice %130 {offsets = [0, 256], sizes = [8, 128], strides = [1, 1]} : vector<8x384xf32> to vector<8x128xf32>
    %139 = math.tanh %137 : vector<8x128xf32>
    %140 = arith.mulf %138, %139 : vector<8x128xf32>
    %c8_i32_39 = arith.constant 8 : i32
    %141 = arith.muli %c5_i32, %c8_i32_39 : i32
    %142 = tpu.assume_multiple %141, 8 : i32
    %143 = arith.index_cast %142 : i32 to index
    %c0_40 = arith.constant 0 : index
    %144 = vector.load %arg14[%143, %c0_40] : memref<64x128xf32, #tpu.memory_space<vmem>>, vector<8x128xf32>
    tpu.vector_store %arg14[%143, %c0_40], %140 {strides = array<i32>} : memref<64x128xf32, #tpu.memory_space<vmem>>, vector<8x128xf32>,
    %c6_i32 = arith.constant 6 : i32
    %c0_41 = arith.constant 0 : index
    %c0_42 = arith.constant 0 : index
    %145 = vector.load %arg3[%c0_41, %c0_42] : memref<128x512xf32, #tpu.memory_space<vmem>>, vector<128x512xf32>
    %cst_43 = arith.constant dense<0.000000e+00> : vector<8x512xf32>
    %146 = tpu.matmul %140, %145, %cst_43 {dimension_numbers = #tpu.dot_dimension_numbers<[1], [0], [0], [1], [0, 0, 1, 1], [], []>} : vector<8x128xf32>, vector<128x512xf32>, vector<8x512xf32> -> vector<8x512xf32>
    %147 = arith.addf %5, %146 : vector<8x512xf32>
    %148 = vector.extract_strided_slice %147 {offsets = [0, 0], sizes = [8, 384], strides = [1, 1]} : vector<8x512xf32> to vector<8x384xf32>
    %149 = arith.negf %148 : vector<8x384xf32>
    %150 = math.exp %149 : vector<8x384xf32>
    %cst_44 = arith.constant 1.000000e+00 : f32
    %151 = vector.broadcast %cst_44 : f32 to vector<8x384xf32>
    %152 = arith.addf %151, %150 : vector<8x384xf32>
    %153 = arith.divf %151, %152 : vector<8x384xf32>
    %154 = vector.extract_strided_slice %147 {offsets = [0, 384], sizes = [8, 128], strides = [1, 1]} : vector<8x512xf32> to vector<8x128xf32>
    %155 = math.tanh %154 : vector<8x128xf32>
    %156 = vector.extract_strided_slice %153 {offsets = [0, 128], sizes = [8, 128], strides = [1, 1]} : vector<8x384xf32> to vector<8x128xf32>
    %157 = arith.mulf %156, %137 : vector<8x128xf32>
    %158 = vector.extract_strided_slice %153 {offsets = [0, 0], sizes = [8, 128], strides = [1, 1]} : vector<8x384xf32> to vector<8x128xf32>
    %159 = arith.mulf %158, %155 : vector<8x128xf32>
    %160 = arith.addf %157, %159 : vector<8x128xf32>
    %161 = vector.extract_strided_slice %153 {offsets = [0, 256], sizes = [8, 128], strides = [1, 1]} : vector<8x384xf32> to vector<8x128xf32>
    %162 = math.tanh %160 : vector<8x128xf32>
    %163 = arith.mulf %161, %162 : vector<8x128xf32>
    %c8_i32_45 = arith.constant 8 : i32
    %164 = arith.muli %c6_i32, %c8_i32_45 : i32
    %165 = tpu.assume_multiple %164, 8 : i32
    %166 = arith.index_cast %165 : i32 to index
    %c0_46 = arith.constant 0 : index
    %167 = vector.load %arg14[%166, %c0_46] : memref<64x128xf32, #tpu.memory_space<vmem>>, vector<8x128xf32>
    tpu.vector_store %arg14[%166, %c0_46], %163 {strides = array<i32>} : memref<64x128xf32, #tpu.memory_space<vmem>>, vector<8x128xf32>,
    %c7_i32 = arith.constant 7 : i32
    %c0_47 = arith.constant 0 : index
    %c0_48 = arith.constant 0 : index
    %168 = vector.load %arg3[%c0_47, %c0_48] : memref<128x512xf32, #tpu.memory_space<vmem>>, vector<128x512xf32>
    %cst_49 = arith.constant dense<0.000000e+00> : vector<8x512xf32>
    %169 = tpu.matmul %163, %168, %cst_49 {dimension_numbers = #tpu.dot_dimension_numbers<[1], [0], [0], [1], [0, 0, 1, 1], [], []>} : vector<8x128xf32>, vector<128x512xf32>, vector<8x512xf32> -> vector<8x512xf32>
    %170 = arith.addf %5, %169 : vector<8x512xf32>
    %171 = vector.extract_strided_slice %170 {offsets = [0, 0], sizes = [8, 384], strides = [1, 1]} : vector<8x512xf32> to vector<8x384xf32>
    %172 = arith.negf %171 : vector<8x384xf32>
    %173 = math.exp %172 : vector<8x384xf32>
    %cst_50 = arith.constant 1.000000e+00 : f32
    %174 = vector.broadcast %cst_50 : f32 to vector<8x384xf32>
    %175 = arith.addf %174, %173 : vector<8x384xf32>
    %176 = arith.divf %174, %175 : vector<8x384xf32>
    %177 = vector.extract_strided_slice %170 {offsets = [0, 384], sizes = [8, 128], strides = [1, 1]} : vector<8x512xf32> to vector<8x128xf32>
    %178 = math.tanh %177 : vector<8x128xf32>
    %179 = vector.extract_strided_slice %176 {offsets = [0, 128], sizes = [8, 128], strides = [1, 1]} : vector<8x384xf32> to vector<8x128xf32>
    %180 = arith.mulf %179, %160 : vector<8x128xf32>
    %181 = vector.extract_strided_slice %176 {offsets = [0, 0], sizes = [8, 128], strides = [1, 1]} : vector<8x384xf32> to vector<8x128xf32>
    %182 = arith.mulf %181, %178 : vector<8x128xf32>
    %183 = arith.addf %180, %182 : vector<8x128xf32>
    %184 = vector.extract_strided_slice %176 {offsets = [0, 256], sizes = [8, 128], strides = [1, 1]} : vector<8x384xf32> to vector<8x128xf32>
    %185 = math.tanh %183 : vector<8x128xf32>
    %186 = arith.mulf %184, %185 : vector<8x128xf32>
    %c8_i32_51 = arith.constant 8 : i32
    %187 = arith.muli %c7_i32, %c8_i32_51 : i32
    %188 = tpu.assume_multiple %187, 8 : i32
    %189 = arith.index_cast %188 : i32 to index
    %c0_52 = arith.constant 0 : index
    %190 = vector.load %arg14[%189, %c0_52] : memref<64x128xf32, #tpu.memory_space<vmem>>, vector<8x128xf32>
    tpu.vector_store %arg14[%189, %c0_52], %186 {strides = array<i32>} : memref<64x128xf32, #tpu.memory_space<vmem>>, vector<8x128xf32>,
    %c8_i32_53 = arith.constant 8 : i32
    %c0_54 = arith.constant 0 : index
    %c0_55 = arith.constant 0 : index
    %191 = vector.load %arg14[%c0_54, %c0_55] : memref<64x128xf32, #tpu.memory_space<vmem>>, vector<64x128xf32>
    %c0_56 = arith.constant 0 : index
    %c0_57 = arith.constant 0 : index
    %192 = vector.load %arg5[%c0_56, %c0_57] : memref<128x512xf32, #tpu.memory_space<vmem>>, vector<128x512xf32>
    %cst_58 = arith.constant dense<0.000000e+00> : vector<64x512xf32>
    %193 = tpu.matmul %191, %192, %cst_58 {dimension_numbers = #tpu.dot_dimension_numbers<[1], [0], [0], [1], [0, 0, 1, 1], [], []>} : vector<64x128xf32>, vector<128x512xf32>, vector<64x512xf32> -> vector<64x512xf32>
    %c0_59 = arith.constant 0 : index
    %c0_60 = arith.constant 0 : index
    %194 = vector.load %arg7[%c0_59, %c0_60] : memref<1x512xf32, #tpu.memory_space<vmem>>, vector<1x512xf32>
    %195 = vector.broadcast %194 : vector<1x512xf32> to vector<64x512xf32>
    %196 = arith.addf %193, %195 : vector<64x512xf32>
    %c0_61 = arith.constant 0 : index
    %c0_62 = arith.constant 0 : index
    %197 = vector.load %arg17[%c0_61, %c0_62] : memref<64x512xf32, #tpu.memory_space<vmem>>, vector<64x512xf32>
    tpu.vector_store %arg17[%c0_61, %c0_62], %196 {strides = array<i32>} : memref<64x512xf32, #tpu.memory_space<vmem>>, vector<64x512xf32>,
    %cst_63 = arith.constant 0.000000e+00 : f32
    %198 = vector.broadcast %cst_63 : f32 to vector<8x128xf32>
    %c0_i32_64 = arith.constant 0 : i32
    %c8_i32_65 = arith.constant 8 : i32
    %199 = arith.muli %c0_i32_64, %c8_i32_65 : i32
    %200 = tpu.assume_multiple %199, 8 : i32
    %201 = arith.index_cast %200 : i32 to index
    %c0_66 = arith.constant 0 : index
    %202 = vector.load %arg17[%201, %c0_66] : memref<64x512xf32, #tpu.memory_space<vmem>>, vector<8x512xf32>
    %c0_67 = arith.constant 0 : index
    %c0_68 = arith.constant 0 : index
    %203 = vector.load %arg6[%c0_67, %c0_68] : memref<128x512xf32, #tpu.memory_space<vmem>>, vector<128x512xf32>
    %cst_69 = arith.constant dense<0.000000e+00> : vector<8x512xf32>
    %204 = tpu.matmul %198, %203, %cst_69 {dimension_numbers = #tpu.dot_dimension_numbers<[1], [0], [0], [1], [0, 0, 1, 1], [], []>} : vector<8x128xf32>, vector<128x512xf32>, vector<8x512xf32> -> vector<8x512xf32>
    %205 = arith.addf %202, %204 : vector<8x512xf32>
    %206 = vector.extract_strided_slice %205 {offsets = [0, 0], sizes = [8, 384], strides = [1, 1]} : vector<8x512xf32> to vector<8x384xf32>
    %207 = arith.negf %206 : vector<8x384xf32>
    %208 = math.exp %207 : vector<8x384xf32>
    %cst_70 = arith.constant 1.000000e+00 : f32
    %209 = vector.broadcast %cst_70 : f32 to vector<8x384xf32>
    %210 = arith.addf %209, %208 : vector<8x384xf32>
    %211 = arith.divf %209, %210 : vector<8x384xf32>
    %212 = vector.extract_strided_slice %205 {offsets = [0, 384], sizes = [8, 128], strides = [1, 1]} : vector<8x512xf32> to vector<8x128xf32>
    %213 = math.tanh %212 : vector<8x128xf32>
    %214 = vector.extract_strided_slice %211 {offsets = [0, 128], sizes = [8, 128], strides = [1, 1]} : vector<8x384xf32> to vector<8x128xf32>
    %215 = arith.mulf %214, %198 : vector<8x128xf32>
    %216 = vector.extract_strided_slice %211 {offsets = [0, 0], sizes = [8, 128], strides = [1, 1]} : vector<8x384xf32> to vector<8x128xf32>
    %217 = arith.mulf %216, %213 : vector<8x128xf32>
    %218 = arith.addf %215, %217 : vector<8x128xf32>
    %219 = vector.extract_strided_slice %211 {offsets = [0, 256], sizes = [8, 128], strides = [1, 1]} : vector<8x384xf32> to vector<8x128xf32>
    %220 = math.tanh %218 : vector<8x128xf32>
    %221 = arith.mulf %219, %220 : vector<8x128xf32>
    %c8_i32_71 = arith.constant 8 : i32
    %222 = arith.muli %c0_i32_64, %c8_i32_71 : i32
    %223 = tpu.assume_multiple %222, 8 : i32
    %224 = arith.index_cast %223 : i32 to index
    %c0_72 = arith.constant 0 : index
    %225 = vector.load %arg15[%224, %c0_72] : memref<64x128xf32, #tpu.memory_space<vmem>>, vector<8x128xf32>
    tpu.vector_store %arg15[%224, %c0_72], %221 {strides = array<i32>} : memref<64x128xf32, #tpu.memory_space<vmem>>, vector<8x128xf32>,
    %c1_i32_73 = arith.constant 1 : i32
    %c8_i32_74 = arith.constant 8 : i32
    %226 = arith.muli %c1_i32_73, %c8_i32_74 : i32
    %227 = tpu.assume_multiple %226, 8 : i32
    %228 = arith.index_cast %227 : i32 to index
    %c0_75 = arith.constant 0 : index
    %229 = vector.load %arg17[%228, %c0_75] : memref<64x512xf32, #tpu.memory_space<vmem>>, vector<8x512xf32>
    %c0_76 = arith.constant 0 : index
    %c0_77 = arith.constant 0 : index
    %230 = vector.load %arg6[%c0_76, %c0_77] : memref<128x512xf32, #tpu.memory_space<vmem>>, vector<128x512xf32>
    %cst_78 = arith.constant dense<0.000000e+00> : vector<8x512xf32>
    %231 = tpu.matmul %221, %230, %cst_78 {dimension_numbers = #tpu.dot_dimension_numbers<[1], [0], [0], [1], [0, 0, 1, 1], [], []>} : vector<8x128xf32>, vector<128x512xf32>, vector<8x512xf32> -> vector<8x512xf32>
    %232 = arith.addf %229, %231 : vector<8x512xf32>
    %233 = vector.extract_strided_slice %232 {offsets = [0, 0], sizes = [8, 384], strides = [1, 1]} : vector<8x512xf32> to vector<8x384xf32>
    %234 = arith.negf %233 : vector<8x384xf32>
    %235 = math.exp %234 : vector<8x384xf32>
    %cst_79 = arith.constant 1.000000e+00 : f32
    %236 = vector.broadcast %cst_79 : f32 to vector<8x384xf32>
    %237 = arith.addf %236, %235 : vector<8x384xf32>
    %238 = arith.divf %236, %237 : vector<8x384xf32>
    %239 = vector.extract_strided_slice %232 {offsets = [0, 384], sizes = [8, 128], strides = [1, 1]} : vector<8x512xf32> to vector<8x128xf32>
    %240 = math.tanh %239 : vector<8x128xf32>
    %241 = vector.extract_strided_slice %238 {offsets = [0, 128], sizes = [8, 128], strides = [1, 1]} : vector<8x384xf32> to vector<8x128xf32>
    %242 = arith.mulf %241, %218 : vector<8x128xf32>
    %243 = vector.extract_strided_slice %238 {offsets = [0, 0], sizes = [8, 128], strides = [1, 1]} : vector<8x384xf32> to vector<8x128xf32>
    %244 = arith.mulf %243, %240 : vector<8x128xf32>
    %245 = arith.addf %242, %244 : vector<8x128xf32>
    %246 = vector.extract_strided_slice %238 {offsets = [0, 256], sizes = [8, 128], strides = [1, 1]} : vector<8x384xf32> to vector<8x128xf32>
    %247 = math.tanh %245 : vector<8x128xf32>
    %248 = arith.mulf %246, %247 : vector<8x128xf32>
    %c8_i32_80 = arith.constant 8 : i32
    %249 = arith.muli %c1_i32_73, %c8_i32_80 : i32
    %250 = tpu.assume_multiple %249, 8 : i32
    %251 = arith.index_cast %250 : i32 to index
    %c0_81 = arith.constant 0 : index
    %252 = vector.load %arg15[%251, %c0_81] : memref<64x128xf32, #tpu.memory_space<vmem>>, vector<8x128xf32>
    tpu.vector_store %arg15[%251, %c0_81], %248 {strides = array<i32>} : memref<64x128xf32, #tpu.memory_space<vmem>>, vector<8x128xf32>,
    %c2_i32_82 = arith.constant 2 : i32
    %c8_i32_83 = arith.constant 8 : i32
    %253 = arith.muli %c2_i32_82, %c8_i32_83 : i32
    %254 = tpu.assume_multiple %253, 8 : i32
    %255 = arith.index_cast %254 : i32 to index
    %c0_84 = arith.constant 0 : index
    %256 = vector.load %arg17[%255, %c0_84] : memref<64x512xf32, #tpu.memory_space<vmem>>, vector<8x512xf32>
    %c0_85 = arith.constant 0 : index
    %c0_86 = arith.constant 0 : index
    %257 = vector.load %arg6[%c0_85, %c0_86] : memref<128x512xf32, #tpu.memory_space<vmem>>, vector<128x512xf32>
    %cst_87 = arith.constant dense<0.000000e+00> : vector<8x512xf32>
    %258 = tpu.matmul %248, %257, %cst_87 {dimension_numbers = #tpu.dot_dimension_numbers<[1], [0], [0], [1], [0, 0, 1, 1], [], []>} : vector<8x128xf32>, vector<128x512xf32>, vector<8x512xf32> -> vector<8x512xf32>
    %259 = arith.addf %256, %258 : vector<8x512xf32>
    %260 = vector.extract_strided_slice %259 {offsets = [0, 0], sizes = [8, 384], strides = [1, 1]} : vector<8x512xf32> to vector<8x384xf32>
    %261 = arith.negf %260 : vector<8x384xf32>
    %262 = math.exp %261 : vector<8x384xf32>
    %cst_88 = arith.constant 1.000000e+00 : f32
    %263 = vector.broadcast %cst_88 : f32 to vector<8x384xf32>
    %264 = arith.addf %263, %262 : vector<8x384xf32>
    %265 = arith.divf %263, %264 : vector<8x384xf32>
    %266 = vector.extract_strided_slice %259 {offsets = [0, 384], sizes = [8, 128], strides = [1, 1]} : vector<8x512xf32> to vector<8x128xf32>
    %267 = math.tanh %266 : vector<8x128xf32>
    %268 = vector.extract_strided_slice %265 {offsets = [0, 128], sizes = [8, 128], strides = [1, 1]} : vector<8x384xf32> to vector<8x128xf32>
    %269 = arith.mulf %268, %245 : vector<8x128xf32>
    %270 = vector.extract_strided_slice %265 {offsets = [0, 0], sizes = [8, 128], strides = [1, 1]} : vector<8x384xf32> to vector<8x128xf32>
    %271 = arith.mulf %270, %267 : vector<8x128xf32>
    %272 = arith.addf %269, %271 : vector<8x128xf32>
    %273 = vector.extract_strided_slice %265 {offsets = [0, 256], sizes = [8, 128], strides = [1, 1]} : vector<8x384xf32> to vector<8x128xf32>
    %274 = math.tanh %272 : vector<8x128xf32>
    %275 = arith.mulf %273, %274 : vector<8x128xf32>
    %c8_i32_89 = arith.constant 8 : i32
    %276 = arith.muli %c2_i32_82, %c8_i32_89 : i32
    %277 = tpu.assume_multiple %276, 8 : i32
    %278 = arith.index_cast %277 : i32 to index
    %c0_90 = arith.constant 0 : index
    %279 = vector.load %arg15[%278, %c0_90] : memref<64x128xf32, #tpu.memory_space<vmem>>, vector<8x128xf32>
    tpu.vector_store %arg15[%278, %c0_90], %275 {strides = array<i32>} : memref<64x128xf32, #tpu.memory_space<vmem>>, vector<8x128xf32>,
    %c3_i32_91 = arith.constant 3 : i32
    %c8_i32_92 = arith.constant 8 : i32
    %280 = arith.muli %c3_i32_91, %c8_i32_92 : i32
    %281 = tpu.assume_multiple %280, 8 : i32
    %282 = arith.index_cast %281 : i32 to index
    %c0_93 = arith.constant 0 : index
    %283 = vector.load %arg17[%282, %c0_93] : memref<64x512xf32, #tpu.memory_space<vmem>>, vector<8x512xf32>
    %c0_94 = arith.constant 0 : index
    %c0_95 = arith.constant 0 : index
    %284 = vector.load %arg6[%c0_94, %c0_95] : memref<128x512xf32, #tpu.memory_space<vmem>>, vector<128x512xf32>
    %cst_96 = arith.constant dense<0.000000e+00> : vector<8x512xf32>
    %285 = tpu.matmul %275, %284, %cst_96 {dimension_numbers = #tpu.dot_dimension_numbers<[1], [0], [0], [1], [0, 0, 1, 1], [], []>} : vector<8x128xf32>, vector<128x512xf32>, vector<8x512xf32> -> vector<8x512xf32>
    %286 = arith.addf %283, %285 : vector<8x512xf32>
    %287 = vector.extract_strided_slice %286 {offsets = [0, 0], sizes = [8, 384], strides = [1, 1]} : vector<8x512xf32> to vector<8x384xf32>
    %288 = arith.negf %287 : vector<8x384xf32>
    %289 = math.exp %288 : vector<8x384xf32>
    %cst_97 = arith.constant 1.000000e+00 : f32
    %290 = vector.broadcast %cst_97 : f32 to vector<8x384xf32>
    %291 = arith.addf %290, %289 : vector<8x384xf32>
    %292 = arith.divf %290, %291 : vector<8x384xf32>
    %293 = vector.extract_strided_slice %286 {offsets = [0, 384], sizes = [8, 128], strides = [1, 1]} : vector<8x512xf32> to vector<8x128xf32>
    %294 = math.tanh %293 : vector<8x128xf32>
    %295 = vector.extract_strided_slice %292 {offsets = [0, 128], sizes = [8, 128], strides = [1, 1]} : vector<8x384xf32> to vector<8x128xf32>
    %296 = arith.mulf %295, %272 : vector<8x128xf32>
    %297 = vector.extract_strided_slice %292 {offsets = [0, 0], sizes = [8, 128], strides = [1, 1]} : vector<8x384xf32> to vector<8x128xf32>
    %298 = arith.mulf %297, %294 : vector<8x128xf32>
    %299 = arith.addf %296, %298 : vector<8x128xf32>
    %300 = vector.extract_strided_slice %292 {offsets = [0, 256], sizes = [8, 128], strides = [1, 1]} : vector<8x384xf32> to vector<8x128xf32>
    %301 = math.tanh %299 : vector<8x128xf32>
    %302 = arith.mulf %300, %301 : vector<8x128xf32>
    %c8_i32_98 = arith.constant 8 : i32
    %303 = arith.muli %c3_i32_91, %c8_i32_98 : i32
    %304 = tpu.assume_multiple %303, 8 : i32
    %305 = arith.index_cast %304 : i32 to index
    %c0_99 = arith.constant 0 : index
    %306 = vector.load %arg15[%305, %c0_99] : memref<64x128xf32, #tpu.memory_space<vmem>>, vector<8x128xf32>
    tpu.vector_store %arg15[%305, %c0_99], %302 {strides = array<i32>} : memref<64x128xf32, #tpu.memory_space<vmem>>, vector<8x128xf32>,
    %c4_i32_100 = arith.constant 4 : i32
    %c8_i32_101 = arith.constant 8 : i32
    %307 = arith.muli %c4_i32_100, %c8_i32_101 : i32
    %308 = tpu.assume_multiple %307, 8 : i32
    %309 = arith.index_cast %308 : i32 to index
    %c0_102 = arith.constant 0 : index
    %310 = vector.load %arg17[%309, %c0_102] : memref<64x512xf32, #tpu.memory_space<vmem>>, vector<8x512xf32>
    %c0_103 = arith.constant 0 : index
    %c0_104 = arith.constant 0 : index
    %311 = vector.load %arg6[%c0_103, %c0_104] : memref<128x512xf32, #tpu.memory_space<vmem>>, vector<128x512xf32>
    %cst_105 = arith.constant dense<0.000000e+00> : vector<8x512xf32>
    %312 = tpu.matmul %302, %311, %cst_105 {dimension_numbers = #tpu.dot_dimension_numbers<[1], [0], [0], [1], [0, 0, 1, 1], [], []>} : vector<8x128xf32>, vector<128x512xf32>, vector<8x512xf32> -> vector<8x512xf32>
    %313 = arith.addf %310, %312 : vector<8x512xf32>
    %314 = vector.extract_strided_slice %313 {offsets = [0, 0], sizes = [8, 384], strides = [1, 1]} : vector<8x512xf32> to vector<8x384xf32>
    %315 = arith.negf %314 : vector<8x384xf32>
    %316 = math.exp %315 : vector<8x384xf32>
    %cst_106 = arith.constant 1.000000e+00 : f32
    %317 = vector.broadcast %cst_106 : f32 to vector<8x384xf32>
    %318 = arith.addf %317, %316 : vector<8x384xf32>
    %319 = arith.divf %317, %318 : vector<8x384xf32>
    %320 = vector.extract_strided_slice %313 {offsets = [0, 384], sizes = [8, 128], strides = [1, 1]} : vector<8x512xf32> to vector<8x128xf32>
    %321 = math.tanh %320 : vector<8x128xf32>
    %322 = vector.extract_strided_slice %319 {offsets = [0, 128], sizes = [8, 128], strides = [1, 1]} : vector<8x384xf32> to vector<8x128xf32>
    %323 = arith.mulf %322, %299 : vector<8x128xf32>
    %324 = vector.extract_strided_slice %319 {offsets = [0, 0], sizes = [8, 128], strides = [1, 1]} : vector<8x384xf32> to vector<8x128xf32>
    %325 = arith.mulf %324, %321 : vector<8x128xf32>
    %326 = arith.addf %323, %325 : vector<8x128xf32>
    %327 = vector.extract_strided_slice %319 {offsets = [0, 256], sizes = [8, 128], strides = [1, 1]} : vector<8x384xf32> to vector<8x128xf32>
    %328 = math.tanh %326 : vector<8x128xf32>
    %329 = arith.mulf %327, %328 : vector<8x128xf32>
    %c8_i32_107 = arith.constant 8 : i32
    %330 = arith.muli %c4_i32_100, %c8_i32_107 : i32
    %331 = tpu.assume_multiple %330, 8 : i32
    %332 = arith.index_cast %331 : i32 to index
    %c0_108 = arith.constant 0 : index
    %333 = vector.load %arg15[%332, %c0_108] : memref<64x128xf32, #tpu.memory_space<vmem>>, vector<8x128xf32>
    tpu.vector_store %arg15[%332, %c0_108], %329 {strides = array<i32>} : memref<64x128xf32, #tpu.memory_space<vmem>>, vector<8x128xf32>,
    %c5_i32_109 = arith.constant 5 : i32
    %c8_i32_110 = arith.constant 8 : i32
    %334 = arith.muli %c5_i32_109, %c8_i32_110 : i32
    %335 = tpu.assume_multiple %334, 8 : i32
    %336 = arith.index_cast %335 : i32 to index
    %c0_111 = arith.constant 0 : index
    %337 = vector.load %arg17[%336, %c0_111] : memref<64x512xf32, #tpu.memory_space<vmem>>, vector<8x512xf32>
    %c0_112 = arith.constant 0 : index
    %c0_113 = arith.constant 0 : index
    %338 = vector.load %arg6[%c0_112, %c0_113] : memref<128x512xf32, #tpu.memory_space<vmem>>, vector<128x512xf32>
    %cst_114 = arith.constant dense<0.000000e+00> : vector<8x512xf32>
    %339 = tpu.matmul %329, %338, %cst_114 {dimension_numbers = #tpu.dot_dimension_numbers<[1], [0], [0], [1], [0, 0, 1, 1], [], []>} : vector<8x128xf32>, vector<128x512xf32>, vector<8x512xf32> -> vector<8x512xf32>
    %340 = arith.addf %337, %339 : vector<8x512xf32>
    %341 = vector.extract_strided_slice %340 {offsets = [0, 0], sizes = [8, 384], strides = [1, 1]} : vector<8x512xf32> to vector<8x384xf32>
    %342 = arith.negf %341 : vector<8x384xf32>
    %343 = math.exp %342 : vector<8x384xf32>
    %cst_115 = arith.constant 1.000000e+00 : f32
    %344 = vector.broadcast %cst_115 : f32 to vector<8x384xf32>
    %345 = arith.addf %344, %343 : vector<8x384xf32>
    %346 = arith.divf %344, %345 : vector<8x384xf32>
    %347 = vector.extract_strided_slice %340 {offsets = [0, 384], sizes = [8, 128], strides = [1, 1]} : vector<8x512xf32> to vector<8x128xf32>
    %348 = math.tanh %347 : vector<8x128xf32>
    %349 = vector.extract_strided_slice %346 {offsets = [0, 128], sizes = [8, 128], strides = [1, 1]} : vector<8x384xf32> to vector<8x128xf32>
    %350 = arith.mulf %349, %326 : vector<8x128xf32>
    %351 = vector.extract_strided_slice %346 {offsets = [0, 0], sizes = [8, 128], strides = [1, 1]} : vector<8x384xf32> to vector<8x128xf32>
    %352 = arith.mulf %351, %348 : vector<8x128xf32>
    %353 = arith.addf %350, %352 : vector<8x128xf32>
    %354 = vector.extract_strided_slice %346 {offsets = [0, 256], sizes = [8, 128], strides = [1, 1]} : vector<8x384xf32> to vector<8x128xf32>
    %355 = math.tanh %353 : vector<8x128xf32>
    %356 = arith.mulf %354, %355 : vector<8x128xf32>
    %c8_i32_116 = arith.constant 8 : i32
    %357 = arith.muli %c5_i32_109, %c8_i32_116 : i32
    %358 = tpu.assume_multiple %357, 8 : i32
    %359 = arith.index_cast %358 : i32 to index
    %c0_117 = arith.constant 0 : index
    %360 = vector.load %arg15[%359, %c0_117] : memref<64x128xf32, #tpu.memory_space<vmem>>, vector<8x128xf32>
    tpu.vector_store %arg15[%359, %c0_117], %356 {strides = array<i32>} : memref<64x128xf32, #tpu.memory_space<vmem>>, vector<8x128xf32>,
    %c6_i32_118 = arith.constant 6 : i32
    %c8_i32_119 = arith.constant 8 : i32
    %361 = arith.muli %c6_i32_118, %c8_i32_119 : i32
    %362 = tpu.assume_multiple %361, 8 : i32
    %363 = arith.index_cast %362 : i32 to index
    %c0_120 = arith.constant 0 : index
    %364 = vector.load %arg17[%363, %c0_120] : memref<64x512xf32, #tpu.memory_space<vmem>>, vector<8x512xf32>
    %c0_121 = arith.constant 0 : index
    %c0_122 = arith.constant 0 : index
    %365 = vector.load %arg6[%c0_121, %c0_122] : memref<128x512xf32, #tpu.memory_space<vmem>>, vector<128x512xf32>
    %cst_123 = arith.constant dense<0.000000e+00> : vector<8x512xf32>
    %366 = tpu.matmul %356, %365, %cst_123 {dimension_numbers = #tpu.dot_dimension_numbers<[1], [0], [0], [1], [0, 0, 1, 1], [], []>} : vector<8x128xf32>, vector<128x512xf32>, vector<8x512xf32> -> vector<8x512xf32>
    %367 = arith.addf %364, %366 : vector<8x512xf32>
    %368 = vector.extract_strided_slice %367 {offsets = [0, 0], sizes = [8, 384], strides = [1, 1]} : vector<8x512xf32> to vector<8x384xf32>
    %369 = arith.negf %368 : vector<8x384xf32>
    %370 = math.exp %369 : vector<8x384xf32>
    %cst_124 = arith.constant 1.000000e+00 : f32
    %371 = vector.broadcast %cst_124 : f32 to vector<8x384xf32>
    %372 = arith.addf %371, %370 : vector<8x384xf32>
    %373 = arith.divf %371, %372 : vector<8x384xf32>
    %374 = vector.extract_strided_slice %367 {offsets = [0, 384], sizes = [8, 128], strides = [1, 1]} : vector<8x512xf32> to vector<8x128xf32>
    %375 = math.tanh %374 : vector<8x128xf32>
    %376 = vector.extract_strided_slice %373 {offsets = [0, 128], sizes = [8, 128], strides = [1, 1]} : vector<8x384xf32> to vector<8x128xf32>
    %377 = arith.mulf %376, %353 : vector<8x128xf32>
    %378 = vector.extract_strided_slice %373 {offsets = [0, 0], sizes = [8, 128], strides = [1, 1]} : vector<8x384xf32> to vector<8x128xf32>
    %379 = arith.mulf %378, %375 : vector<8x128xf32>
    %380 = arith.addf %377, %379 : vector<8x128xf32>
    %381 = vector.extract_strided_slice %373 {offsets = [0, 256], sizes = [8, 128], strides = [1, 1]} : vector<8x384xf32> to vector<8x128xf32>
    %382 = math.tanh %380 : vector<8x128xf32>
    %383 = arith.mulf %381, %382 : vector<8x128xf32>
    %c8_i32_125 = arith.constant 8 : i32
    %384 = arith.muli %c6_i32_118, %c8_i32_125 : i32
    %385 = tpu.assume_multiple %384, 8 : i32
    %386 = arith.index_cast %385 : i32 to index
    %c0_126 = arith.constant 0 : index
    %387 = vector.load %arg15[%386, %c0_126] : memref<64x128xf32, #tpu.memory_space<vmem>>, vector<8x128xf32>
    tpu.vector_store %arg15[%386, %c0_126], %383 {strides = array<i32>} : memref<64x128xf32, #tpu.memory_space<vmem>>, vector<8x128xf32>,
    %c7_i32_127 = arith.constant 7 : i32
    %c8_i32_128 = arith.constant 8 : i32
    %388 = arith.muli %c7_i32_127, %c8_i32_128 : i32
    %389 = tpu.assume_multiple %388, 8 : i32
    %390 = arith.index_cast %389 : i32 to index
    %c0_129 = arith.constant 0 : index
    %391 = vector.load %arg17[%390, %c0_129] : memref<64x512xf32, #tpu.memory_space<vmem>>, vector<8x512xf32>
    %c0_130 = arith.constant 0 : index
    %c0_131 = arith.constant 0 : index
    %392 = vector.load %arg6[%c0_130, %c0_131] : memref<128x512xf32, #tpu.memory_space<vmem>>, vector<128x512xf32>
    %cst_132 = arith.constant dense<0.000000e+00> : vector<8x512xf32>
    %393 = tpu.matmul %383, %392, %cst_132 {dimension_numbers = #tpu.dot_dimension_numbers<[1], [0], [0], [1], [0, 0, 1, 1], [], []>} : vector<8x128xf32>, vector<128x512xf32>, vector<8x512xf32> -> vector<8x512xf32>
    %394 = arith.addf %391, %393 : vector<8x512xf32>
    %395 = vector.extract_strided_slice %394 {offsets = [0, 0], sizes = [8, 384], strides = [1, 1]} : vector<8x512xf32> to vector<8x384xf32>
    %396 = arith.negf %395 : vector<8x384xf32>
    %397 = math.exp %396 : vector<8x384xf32>
    %cst_133 = arith.constant 1.000000e+00 : f32
    %398 = vector.broadcast %cst_133 : f32 to vector<8x384xf32>
    %399 = arith.addf %398, %397 : vector<8x384xf32>
    %400 = arith.divf %398, %399 : vector<8x384xf32>
    %401 = vector.extract_strided_slice %394 {offsets = [0, 384], sizes = [8, 128], strides = [1, 1]} : vector<8x512xf32> to vector<8x128xf32>
    %402 = math.tanh %401 : vector<8x128xf32>
    %403 = vector.extract_strided_slice %400 {offsets = [0, 128], sizes = [8, 128], strides = [1, 1]} : vector<8x384xf32> to vector<8x128xf32>
    %404 = arith.mulf %403, %380 : vector<8x128xf32>
    %405 = vector.extract_strided_slice %400 {offsets = [0, 0], sizes = [8, 128], strides = [1, 1]} : vector<8x384xf32> to vector<8x128xf32>
    %406 = arith.mulf %405, %402 : vector<8x128xf32>
    %407 = arith.addf %404, %406 : vector<8x128xf32>
    %408 = vector.extract_strided_slice %400 {offsets = [0, 256], sizes = [8, 128], strides = [1, 1]} : vector<8x384xf32> to vector<8x128xf32>
    %409 = math.tanh %407 : vector<8x128xf32>
    %410 = arith.mulf %408, %409 : vector<8x128xf32>
    %c8_i32_134 = arith.constant 8 : i32
    %411 = arith.muli %c7_i32_127, %c8_i32_134 : i32
    %412 = tpu.assume_multiple %411, 8 : i32
    %413 = arith.index_cast %412 : i32 to index
    %c0_135 = arith.constant 0 : index
    %414 = vector.load %arg15[%413, %c0_135] : memref<64x128xf32, #tpu.memory_space<vmem>>, vector<8x128xf32>
    tpu.vector_store %arg15[%413, %c0_135], %410 {strides = array<i32>} : memref<64x128xf32, #tpu.memory_space<vmem>>, vector<8x128xf32>,
    %c8_i32_136 = arith.constant 8 : i32
    %c0_137 = arith.constant 0 : index
    %c0_138 = arith.constant 0 : index
    %415 = vector.load %arg15[%c0_137, %c0_138] : memref<64x128xf32, #tpu.memory_space<vmem>>, vector<64x128xf32>
    %c0_139 = arith.constant 0 : index
    %c0_140 = arith.constant 0 : index
    %416 = vector.load %arg8[%c0_139, %c0_140] : memref<128x512xf32, #tpu.memory_space<vmem>>, vector<128x512xf32>
    %cst_141 = arith.constant dense<0.000000e+00> : vector<64x512xf32>
    %417 = tpu.matmul %415, %416, %cst_141 {dimension_numbers = #tpu.dot_dimension_numbers<[1], [0], [0], [1], [0, 0, 1, 1], [], []>} : vector<64x128xf32>, vector<128x512xf32>, vector<64x512xf32> -> vector<64x512xf32>
    %c0_142 = arith.constant 0 : index
    %c0_143 = arith.constant 0 : index
    %418 = vector.load %arg10[%c0_142, %c0_143] : memref<1x512xf32, #tpu.memory_space<vmem>>, vector<1x512xf32>
    %419 = vector.broadcast %418 : vector<1x512xf32> to vector<64x512xf32>
    %420 = arith.addf %417, %419 : vector<64x512xf32>
    %c0_144 = arith.constant 0 : index
    %c0_145 = arith.constant 0 : index
    %421 = vector.load %arg17[%c0_144, %c0_145] : memref<64x512xf32, #tpu.memory_space<vmem>>, vector<64x512xf32>
    tpu.vector_store %arg17[%c0_144, %c0_145], %420 {strides = array<i32>} : memref<64x512xf32, #tpu.memory_space<vmem>>, vector<64x512xf32>,
    %cst_146 = arith.constant 0.000000e+00 : f32
    %422 = vector.broadcast %cst_146 : f32 to vector<8x128xf32>
    %c0_i32_147 = arith.constant 0 : i32
    %c8_i32_148 = arith.constant 8 : i32
    %423 = arith.muli %c0_i32_147, %c8_i32_148 : i32
    %424 = tpu.assume_multiple %423, 8 : i32
    %425 = arith.index_cast %424 : i32 to index
    %c0_149 = arith.constant 0 : index
    %426 = vector.load %arg17[%425, %c0_149] : memref<64x512xf32, #tpu.memory_space<vmem>>, vector<8x512xf32>
    %c0_150 = arith.constant 0 : index
    %c0_151 = arith.constant 0 : index
    %427 = vector.load %arg9[%c0_150, %c0_151] : memref<128x512xf32, #tpu.memory_space<vmem>>, vector<128x512xf32>
    %cst_152 = arith.constant dense<0.000000e+00> : vector<8x512xf32>
    %428 = tpu.matmul %422, %427, %cst_152 {dimension_numbers = #tpu.dot_dimension_numbers<[1], [0], [0], [1], [0, 0, 1, 1], [], []>} : vector<8x128xf32>, vector<128x512xf32>, vector<8x512xf32> -> vector<8x512xf32>
    %429 = arith.addf %426, %428 : vector<8x512xf32>
    %430 = vector.extract_strided_slice %429 {offsets = [0, 0], sizes = [8, 384], strides = [1, 1]} : vector<8x512xf32> to vector<8x384xf32>
    %431 = arith.negf %430 : vector<8x384xf32>
    %432 = math.exp %431 : vector<8x384xf32>
    %cst_153 = arith.constant 1.000000e+00 : f32
    %433 = vector.broadcast %cst_153 : f32 to vector<8x384xf32>
    %434 = arith.addf %433, %432 : vector<8x384xf32>
    %435 = arith.divf %433, %434 : vector<8x384xf32>
    %436 = vector.extract_strided_slice %429 {offsets = [0, 384], sizes = [8, 128], strides = [1, 1]} : vector<8x512xf32> to vector<8x128xf32>
    %437 = math.tanh %436 : vector<8x128xf32>
    %438 = vector.extract_strided_slice %435 {offsets = [0, 128], sizes = [8, 128], strides = [1, 1]} : vector<8x384xf32> to vector<8x128xf32>
    %439 = arith.mulf %438, %422 : vector<8x128xf32>
    %440 = vector.extract_strided_slice %435 {offsets = [0, 0], sizes = [8, 128], strides = [1, 1]} : vector<8x384xf32> to vector<8x128xf32>
    %441 = arith.mulf %440, %437 : vector<8x128xf32>
    %442 = arith.addf %439, %441 : vector<8x128xf32>
    %443 = vector.extract_strided_slice %435 {offsets = [0, 256], sizes = [8, 128], strides = [1, 1]} : vector<8x384xf32> to vector<8x128xf32>
    %444 = math.tanh %442 : vector<8x128xf32>
    %445 = arith.mulf %443, %444 : vector<8x128xf32>
    %c8_i32_154 = arith.constant 8 : i32
    %446 = arith.muli %c0_i32_147, %c8_i32_154 : i32
    %447 = tpu.assume_multiple %446, 8 : i32
    %448 = arith.index_cast %447 : i32 to index
    %c0_155 = arith.constant 0 : index
    %449 = vector.load %arg16[%448, %c0_155] : memref<64x128xf32, #tpu.memory_space<vmem>>, vector<8x128xf32>
    tpu.vector_store %arg16[%448, %c0_155], %445 {strides = array<i32>} : memref<64x128xf32, #tpu.memory_space<vmem>>, vector<8x128xf32>,
    %c1_i32_156 = arith.constant 1 : i32
    %c8_i32_157 = arith.constant 8 : i32
    %450 = arith.muli %c1_i32_156, %c8_i32_157 : i32
    %451 = tpu.assume_multiple %450, 8 : i32
    %452 = arith.index_cast %451 : i32 to index
    %c0_158 = arith.constant 0 : index
    %453 = vector.load %arg17[%452, %c0_158] : memref<64x512xf32, #tpu.memory_space<vmem>>, vector<8x512xf32>
    %c0_159 = arith.constant 0 : index
    %c0_160 = arith.constant 0 : index
    %454 = vector.load %arg9[%c0_159, %c0_160] : memref<128x512xf32, #tpu.memory_space<vmem>>, vector<128x512xf32>
    %cst_161 = arith.constant dense<0.000000e+00> : vector<8x512xf32>
    %455 = tpu.matmul %445, %454, %cst_161 {dimension_numbers = #tpu.dot_dimension_numbers<[1], [0], [0], [1], [0, 0, 1, 1], [], []>} : vector<8x128xf32>, vector<128x512xf32>, vector<8x512xf32> -> vector<8x512xf32>
    %456 = arith.addf %453, %455 : vector<8x512xf32>
    %457 = vector.extract_strided_slice %456 {offsets = [0, 0], sizes = [8, 384], strides = [1, 1]} : vector<8x512xf32> to vector<8x384xf32>
    %458 = arith.negf %457 : vector<8x384xf32>
    %459 = math.exp %458 : vector<8x384xf32>
    %cst_162 = arith.constant 1.000000e+00 : f32
    %460 = vector.broadcast %cst_162 : f32 to vector<8x384xf32>
    %461 = arith.addf %460, %459 : vector<8x384xf32>
    %462 = arith.divf %460, %461 : vector<8x384xf32>
    %463 = vector.extract_strided_slice %456 {offsets = [0, 384], sizes = [8, 128], strides = [1, 1]} : vector<8x512xf32> to vector<8x128xf32>
    %464 = math.tanh %463 : vector<8x128xf32>
    %465 = vector.extract_strided_slice %462 {offsets = [0, 128], sizes = [8, 128], strides = [1, 1]} : vector<8x384xf32> to vector<8x128xf32>
    %466 = arith.mulf %465, %442 : vector<8x128xf32>
    %467 = vector.extract_strided_slice %462 {offsets = [0, 0], sizes = [8, 128], strides = [1, 1]} : vector<8x384xf32> to vector<8x128xf32>
    %468 = arith.mulf %467, %464 : vector<8x128xf32>
    %469 = arith.addf %466, %468 : vector<8x128xf32>
    %470 = vector.extract_strided_slice %462 {offsets = [0, 256], sizes = [8, 128], strides = [1, 1]} : vector<8x384xf32> to vector<8x128xf32>
    %471 = math.tanh %469 : vector<8x128xf32>
    %472 = arith.mulf %470, %471 : vector<8x128xf32>
    %c8_i32_163 = arith.constant 8 : i32
    %473 = arith.muli %c1_i32_156, %c8_i32_163 : i32
    %474 = tpu.assume_multiple %473, 8 : i32
    %475 = arith.index_cast %474 : i32 to index
    %c0_164 = arith.constant 0 : index
    %476 = vector.load %arg16[%475, %c0_164] : memref<64x128xf32, #tpu.memory_space<vmem>>, vector<8x128xf32>
    tpu.vector_store %arg16[%475, %c0_164], %472 {strides = array<i32>} : memref<64x128xf32, #tpu.memory_space<vmem>>, vector<8x128xf32>,
    %c2_i32_165 = arith.constant 2 : i32
    %c8_i32_166 = arith.constant 8 : i32
    %477 = arith.muli %c2_i32_165, %c8_i32_166 : i32
    %478 = tpu.assume_multiple %477, 8 : i32
    %479 = arith.index_cast %478 : i32 to index
    %c0_167 = arith.constant 0 : index
    %480 = vector.load %arg17[%479, %c0_167] : memref<64x512xf32, #tpu.memory_space<vmem>>, vector<8x512xf32>
    %c0_168 = arith.constant 0 : index
    %c0_169 = arith.constant 0 : index
    %481 = vector.load %arg9[%c0_168, %c0_169] : memref<128x512xf32, #tpu.memory_space<vmem>>, vector<128x512xf32>
    %cst_170 = arith.constant dense<0.000000e+00> : vector<8x512xf32>
    %482 = tpu.matmul %472, %481, %cst_170 {dimension_numbers = #tpu.dot_dimension_numbers<[1], [0], [0], [1], [0, 0, 1, 1], [], []>} : vector<8x128xf32>, vector<128x512xf32>, vector<8x512xf32> -> vector<8x512xf32>
    %483 = arith.addf %480, %482 : vector<8x512xf32>
    %484 = vector.extract_strided_slice %483 {offsets = [0, 0], sizes = [8, 384], strides = [1, 1]} : vector<8x512xf32> to vector<8x384xf32>
    %485 = arith.negf %484 : vector<8x384xf32>
    %486 = math.exp %485 : vector<8x384xf32>
    %cst_171 = arith.constant 1.000000e+00 : f32
    %487 = vector.broadcast %cst_171 : f32 to vector<8x384xf32>
    %488 = arith.addf %487, %486 : vector<8x384xf32>
    %489 = arith.divf %487, %488 : vector<8x384xf32>
    %490 = vector.extract_strided_slice %483 {offsets = [0, 384], sizes = [8, 128], strides = [1, 1]} : vector<8x512xf32> to vector<8x128xf32>
    %491 = math.tanh %490 : vector<8x128xf32>
    %492 = vector.extract_strided_slice %489 {offsets = [0, 128], sizes = [8, 128], strides = [1, 1]} : vector<8x384xf32> to vector<8x128xf32>
    %493 = arith.mulf %492, %469 : vector<8x128xf32>
    %494 = vector.extract_strided_slice %489 {offsets = [0, 0], sizes = [8, 128], strides = [1, 1]} : vector<8x384xf32> to vector<8x128xf32>
    %495 = arith.mulf %494, %491 : vector<8x128xf32>
    %496 = arith.addf %493, %495 : vector<8x128xf32>
    %497 = vector.extract_strided_slice %489 {offsets = [0, 256], sizes = [8, 128], strides = [1, 1]} : vector<8x384xf32> to vector<8x128xf32>
    %498 = math.tanh %496 : vector<8x128xf32>
    %499 = arith.mulf %497, %498 : vector<8x128xf32>
    %c8_i32_172 = arith.constant 8 : i32
    %500 = arith.muli %c2_i32_165, %c8_i32_172 : i32
    %501 = tpu.assume_multiple %500, 8 : i32
    %502 = arith.index_cast %501 : i32 to index
    %c0_173 = arith.constant 0 : index
    %503 = vector.load %arg16[%502, %c0_173] : memref<64x128xf32, #tpu.memory_space<vmem>>, vector<8x128xf32>
    tpu.vector_store %arg16[%502, %c0_173], %499 {strides = array<i32>} : memref<64x128xf32, #tpu.memory_space<vmem>>, vector<8x128xf32>,
    %c3_i32_174 = arith.constant 3 : i32
    %c8_i32_175 = arith.constant 8 : i32
    %504 = arith.muli %c3_i32_174, %c8_i32_175 : i32
    %505 = tpu.assume_multiple %504, 8 : i32
    %506 = arith.index_cast %505 : i32 to index
    %c0_176 = arith.constant 0 : index
    %507 = vector.load %arg17[%506, %c0_176] : memref<64x512xf32, #tpu.memory_space<vmem>>, vector<8x512xf32>
    %c0_177 = arith.constant 0 : index
    %c0_178 = arith.constant 0 : index
    %508 = vector.load %arg9[%c0_177, %c0_178] : memref<128x512xf32, #tpu.memory_space<vmem>>, vector<128x512xf32>
    %cst_179 = arith.constant dense<0.000000e+00> : vector<8x512xf32>
    %509 = tpu.matmul %499, %508, %cst_179 {dimension_numbers = #tpu.dot_dimension_numbers<[1], [0], [0], [1], [0, 0, 1, 1], [], []>} : vector<8x128xf32>, vector<128x512xf32>, vector<8x512xf32> -> vector<8x512xf32>
    %510 = arith.addf %507, %509 : vector<8x512xf32>
    %511 = vector.extract_strided_slice %510 {offsets = [0, 0], sizes = [8, 384], strides = [1, 1]} : vector<8x512xf32> to vector<8x384xf32>
    %512 = arith.negf %511 : vector<8x384xf32>
    %513 = math.exp %512 : vector<8x384xf32>
    %cst_180 = arith.constant 1.000000e+00 : f32
    %514 = vector.broadcast %cst_180 : f32 to vector<8x384xf32>
    %515 = arith.addf %514, %513 : vector<8x384xf32>
    %516 = arith.divf %514, %515 : vector<8x384xf32>
    %517 = vector.extract_strided_slice %510 {offsets = [0, 384], sizes = [8, 128], strides = [1, 1]} : vector<8x512xf32> to vector<8x128xf32>
    %518 = math.tanh %517 : vector<8x128xf32>
    %519 = vector.extract_strided_slice %516 {offsets = [0, 128], sizes = [8, 128], strides = [1, 1]} : vector<8x384xf32> to vector<8x128xf32>
    %520 = arith.mulf %519, %496 : vector<8x128xf32>
    %521 = vector.extract_strided_slice %516 {offsets = [0, 0], sizes = [8, 128], strides = [1, 1]} : vector<8x384xf32> to vector<8x128xf32>
    %522 = arith.mulf %521, %518 : vector<8x128xf32>
    %523 = arith.addf %520, %522 : vector<8x128xf32>
    %524 = vector.extract_strided_slice %516 {offsets = [0, 256], sizes = [8, 128], strides = [1, 1]} : vector<8x384xf32> to vector<8x128xf32>
    %525 = math.tanh %523 : vector<8x128xf32>
    %526 = arith.mulf %524, %525 : vector<8x128xf32>
    %c8_i32_181 = arith.constant 8 : i32
    %527 = arith.muli %c3_i32_174, %c8_i32_181 : i32
    %528 = tpu.assume_multiple %527, 8 : i32
    %529 = arith.index_cast %528 : i32 to index
    %c0_182 = arith.constant 0 : index
    %530 = vector.load %arg16[%529, %c0_182] : memref<64x128xf32, #tpu.memory_space<vmem>>, vector<8x128xf32>
    tpu.vector_store %arg16[%529, %c0_182], %526 {strides = array<i32>} : memref<64x128xf32, #tpu.memory_space<vmem>>, vector<8x128xf32>,
    %c4_i32_183 = arith.constant 4 : i32
    %c8_i32_184 = arith.constant 8 : i32
    %531 = arith.muli %c4_i32_183, %c8_i32_184 : i32
    %532 = tpu.assume_multiple %531, 8 : i32
    %533 = arith.index_cast %532 : i32 to index
    %c0_185 = arith.constant 0 : index
    %534 = vector.load %arg17[%533, %c0_185] : memref<64x512xf32, #tpu.memory_space<vmem>>, vector<8x512xf32>
    %c0_186 = arith.constant 0 : index
    %c0_187 = arith.constant 0 : index
    %535 = vector.load %arg9[%c0_186, %c0_187] : memref<128x512xf32, #tpu.memory_space<vmem>>, vector<128x512xf32>
    %cst_188 = arith.constant dense<0.000000e+00> : vector<8x512xf32>
    %536 = tpu.matmul %526, %535, %cst_188 {dimension_numbers = #tpu.dot_dimension_numbers<[1], [0], [0], [1], [0, 0, 1, 1], [], []>} : vector<8x128xf32>, vector<128x512xf32>, vector<8x512xf32> -> vector<8x512xf32>
    %537 = arith.addf %534, %536 : vector<8x512xf32>
    %538 = vector.extract_strided_slice %537 {offsets = [0, 0], sizes = [8, 384], strides = [1, 1]} : vector<8x512xf32> to vector<8x384xf32>
    %539 = arith.negf %538 : vector<8x384xf32>
    %540 = math.exp %539 : vector<8x384xf32>
    %cst_189 = arith.constant 1.000000e+00 : f32
    %541 = vector.broadcast %cst_189 : f32 to vector<8x384xf32>
    %542 = arith.addf %541, %540 : vector<8x384xf32>
    %543 = arith.divf %541, %542 : vector<8x384xf32>
    %544 = vector.extract_strided_slice %537 {offsets = [0, 384], sizes = [8, 128], strides = [1, 1]} : vector<8x512xf32> to vector<8x128xf32>
    %545 = math.tanh %544 : vector<8x128xf32>
    %546 = vector.extract_strided_slice %543 {offsets = [0, 128], sizes = [8, 128], strides = [1, 1]} : vector<8x384xf32> to vector<8x128xf32>
    %547 = arith.mulf %546, %523 : vector<8x128xf32>
    %548 = vector.extract_strided_slice %543 {offsets = [0, 0], sizes = [8, 128], strides = [1, 1]} : vector<8x384xf32> to vector<8x128xf32>
    %549 = arith.mulf %548, %545 : vector<8x128xf32>
    %550 = arith.addf %547, %549 : vector<8x128xf32>
    %551 = vector.extract_strided_slice %543 {offsets = [0, 256], sizes = [8, 128], strides = [1, 1]} : vector<8x384xf32> to vector<8x128xf32>
    %552 = math.tanh %550 : vector<8x128xf32>
    %553 = arith.mulf %551, %552 : vector<8x128xf32>
    %c8_i32_190 = arith.constant 8 : i32
    %554 = arith.muli %c4_i32_183, %c8_i32_190 : i32
    %555 = tpu.assume_multiple %554, 8 : i32
    %556 = arith.index_cast %555 : i32 to index
    %c0_191 = arith.constant 0 : index
    %557 = vector.load %arg16[%556, %c0_191] : memref<64x128xf32, #tpu.memory_space<vmem>>, vector<8x128xf32>
    tpu.vector_store %arg16[%556, %c0_191], %553 {strides = array<i32>} : memref<64x128xf32, #tpu.memory_space<vmem>>, vector<8x128xf32>,
    %c5_i32_192 = arith.constant 5 : i32
    %c8_i32_193 = arith.constant 8 : i32
    %558 = arith.muli %c5_i32_192, %c8_i32_193 : i32
    %559 = tpu.assume_multiple %558, 8 : i32
    %560 = arith.index_cast %559 : i32 to index
    %c0_194 = arith.constant 0 : index
    %561 = vector.load %arg17[%560, %c0_194] : memref<64x512xf32, #tpu.memory_space<vmem>>, vector<8x512xf32>
    %c0_195 = arith.constant 0 : index
    %c0_196 = arith.constant 0 : index
    %562 = vector.load %arg9[%c0_195, %c0_196] : memref<128x512xf32, #tpu.memory_space<vmem>>, vector<128x512xf32>
    %cst_197 = arith.constant dense<0.000000e+00> : vector<8x512xf32>
    %563 = tpu.matmul %553, %562, %cst_197 {dimension_numbers = #tpu.dot_dimension_numbers<[1], [0], [0], [1], [0, 0, 1, 1], [], []>} : vector<8x128xf32>, vector<128x512xf32>, vector<8x512xf32> -> vector<8x512xf32>
    %564 = arith.addf %561, %563 : vector<8x512xf32>
    %565 = vector.extract_strided_slice %564 {offsets = [0, 0], sizes = [8, 384], strides = [1, 1]} : vector<8x512xf32> to vector<8x384xf32>
    %566 = arith.negf %565 : vector<8x384xf32>
    %567 = math.exp %566 : vector<8x384xf32>
    %cst_198 = arith.constant 1.000000e+00 : f32
    %568 = vector.broadcast %cst_198 : f32 to vector<8x384xf32>
    %569 = arith.addf %568, %567 : vector<8x384xf32>
    %570 = arith.divf %568, %569 : vector<8x384xf32>
    %571 = vector.extract_strided_slice %564 {offsets = [0, 384], sizes = [8, 128], strides = [1, 1]} : vector<8x512xf32> to vector<8x128xf32>
    %572 = math.tanh %571 : vector<8x128xf32>
    %573 = vector.extract_strided_slice %570 {offsets = [0, 128], sizes = [8, 128], strides = [1, 1]} : vector<8x384xf32> to vector<8x128xf32>
    %574 = arith.mulf %573, %550 : vector<8x128xf32>
    %575 = vector.extract_strided_slice %570 {offsets = [0, 0], sizes = [8, 128], strides = [1, 1]} : vector<8x384xf32> to vector<8x128xf32>
    %576 = arith.mulf %575, %572 : vector<8x128xf32>
    %577 = arith.addf %574, %576 : vector<8x128xf32>
    %578 = vector.extract_strided_slice %570 {offsets = [0, 256], sizes = [8, 128], strides = [1, 1]} : vector<8x384xf32> to vector<8x128xf32>
    %579 = math.tanh %577 : vector<8x128xf32>
    %580 = arith.mulf %578, %579 : vector<8x128xf32>
    %c8_i32_199 = arith.constant 8 : i32
    %581 = arith.muli %c5_i32_192, %c8_i32_199 : i32
    %582 = tpu.assume_multiple %581, 8 : i32
    %583 = arith.index_cast %582 : i32 to index
    %c0_200 = arith.constant 0 : index
    %584 = vector.load %arg16[%583, %c0_200] : memref<64x128xf32, #tpu.memory_space<vmem>>, vector<8x128xf32>
    tpu.vector_store %arg16[%583, %c0_200], %580 {strides = array<i32>} : memref<64x128xf32, #tpu.memory_space<vmem>>, vector<8x128xf32>,
    %c6_i32_201 = arith.constant 6 : i32
    %c8_i32_202 = arith.constant 8 : i32
    %585 = arith.muli %c6_i32_201, %c8_i32_202 : i32
    %586 = tpu.assume_multiple %585, 8 : i32
    %587 = arith.index_cast %586 : i32 to index
    %c0_203 = arith.constant 0 : index
    %588 = vector.load %arg17[%587, %c0_203] : memref<64x512xf32, #tpu.memory_space<vmem>>, vector<8x512xf32>
    %c0_204 = arith.constant 0 : index
    %c0_205 = arith.constant 0 : index
    %589 = vector.load %arg9[%c0_204, %c0_205] : memref<128x512xf32, #tpu.memory_space<vmem>>, vector<128x512xf32>
    %cst_206 = arith.constant dense<0.000000e+00> : vector<8x512xf32>
    %590 = tpu.matmul %580, %589, %cst_206 {dimension_numbers = #tpu.dot_dimension_numbers<[1], [0], [0], [1], [0, 0, 1, 1], [], []>} : vector<8x128xf32>, vector<128x512xf32>, vector<8x512xf32> -> vector<8x512xf32>
    %591 = arith.addf %588, %590 : vector<8x512xf32>
    %592 = vector.extract_strided_slice %591 {offsets = [0, 0], sizes = [8, 384], strides = [1, 1]} : vector<8x512xf32> to vector<8x384xf32>
    %593 = arith.negf %592 : vector<8x384xf32>
    %594 = math.exp %593 : vector<8x384xf32>
    %cst_207 = arith.constant 1.000000e+00 : f32
    %595 = vector.broadcast %cst_207 : f32 to vector<8x384xf32>
    %596 = arith.addf %595, %594 : vector<8x384xf32>
    %597 = arith.divf %595, %596 : vector<8x384xf32>
    %598 = vector.extract_strided_slice %591 {offsets = [0, 384], sizes = [8, 128], strides = [1, 1]} : vector<8x512xf32> to vector<8x128xf32>
    %599 = math.tanh %598 : vector<8x128xf32>
    %600 = vector.extract_strided_slice %597 {offsets = [0, 128], sizes = [8, 128], strides = [1, 1]} : vector<8x384xf32> to vector<8x128xf32>
    %601 = arith.mulf %600, %577 : vector<8x128xf32>
    %602 = vector.extract_strided_slice %597 {offsets = [0, 0], sizes = [8, 128], strides = [1, 1]} : vector<8x384xf32> to vector<8x128xf32>
    %603 = arith.mulf %602, %599 : vector<8x128xf32>
    %604 = arith.addf %601, %603 : vector<8x128xf32>
    %605 = vector.extract_strided_slice %597 {offsets = [0, 256], sizes = [8, 128], strides = [1, 1]} : vector<8x384xf32> to vector<8x128xf32>
    %606 = math.tanh %604 : vector<8x128xf32>
    %607 = arith.mulf %605, %606 : vector<8x128xf32>
    %c8_i32_208 = arith.constant 8 : i32
    %608 = arith.muli %c6_i32_201, %c8_i32_208 : i32
    %609 = tpu.assume_multiple %608, 8 : i32
    %610 = arith.index_cast %609 : i32 to index
    %c0_209 = arith.constant 0 : index
    %611 = vector.load %arg16[%610, %c0_209] : memref<64x128xf32, #tpu.memory_space<vmem>>, vector<8x128xf32>
    tpu.vector_store %arg16[%610, %c0_209], %607 {strides = array<i32>} : memref<64x128xf32, #tpu.memory_space<vmem>>, vector<8x128xf32>,
    %c7_i32_210 = arith.constant 7 : i32
    %c8_i32_211 = arith.constant 8 : i32
    %612 = arith.muli %c7_i32_210, %c8_i32_211 : i32
    %613 = tpu.assume_multiple %612, 8 : i32
    %614 = arith.index_cast %613 : i32 to index
    %c0_212 = arith.constant 0 : index
    %615 = vector.load %arg17[%614, %c0_212] : memref<64x512xf32, #tpu.memory_space<vmem>>, vector<8x512xf32>
    %c0_213 = arith.constant 0 : index
    %c0_214 = arith.constant 0 : index
    %616 = vector.load %arg9[%c0_213, %c0_214] : memref<128x512xf32, #tpu.memory_space<vmem>>, vector<128x512xf32>
    %cst_215 = arith.constant dense<0.000000e+00> : vector<8x512xf32>
    %617 = tpu.matmul %607, %616, %cst_215 {dimension_numbers = #tpu.dot_dimension_numbers<[1], [0], [0], [1], [0, 0, 1, 1], [], []>} : vector<8x128xf32>, vector<128x512xf32>, vector<8x512xf32> -> vector<8x512xf32>
    %618 = arith.addf %615, %617 : vector<8x512xf32>
    %619 = vector.extract_strided_slice %618 {offsets = [0, 0], sizes = [8, 384], strides = [1, 1]} : vector<8x512xf32> to vector<8x384xf32>
    %620 = arith.negf %619 : vector<8x384xf32>
    %621 = math.exp %620 : vector<8x384xf32>
    %cst_216 = arith.constant 1.000000e+00 : f32
    %622 = vector.broadcast %cst_216 : f32 to vector<8x384xf32>
    %623 = arith.addf %622, %621 : vector<8x384xf32>
    %624 = arith.divf %622, %623 : vector<8x384xf32>
    %625 = vector.extract_strided_slice %618 {offsets = [0, 384], sizes = [8, 128], strides = [1, 1]} : vector<8x512xf32> to vector<8x128xf32>
    %626 = math.tanh %625 : vector<8x128xf32>
    %627 = vector.extract_strided_slice %624 {offsets = [0, 128], sizes = [8, 128], strides = [1, 1]} : vector<8x384xf32> to vector<8x128xf32>
    %628 = arith.mulf %627, %604 : vector<8x128xf32>
    %629 = vector.extract_strided_slice %624 {offsets = [0, 0], sizes = [8, 128], strides = [1, 1]} : vector<8x384xf32> to vector<8x128xf32>
    %630 = arith.mulf %629, %626 : vector<8x128xf32>
    %631 = arith.addf %628, %630 : vector<8x128xf32>
    %632 = vector.extract_strided_slice %624 {offsets = [0, 256], sizes = [8, 128], strides = [1, 1]} : vector<8x384xf32> to vector<8x128xf32>
    %633 = math.tanh %631 : vector<8x128xf32>
    %634 = arith.mulf %632, %633 : vector<8x128xf32>
    %c8_i32_217 = arith.constant 8 : i32
    %635 = arith.muli %c7_i32_210, %c8_i32_217 : i32
    %636 = tpu.assume_multiple %635, 8 : i32
    %637 = arith.index_cast %636 : i32 to index
    %c0_218 = arith.constant 0 : index
    %638 = vector.load %arg16[%637, %c0_218] : memref<64x128xf32, #tpu.memory_space<vmem>>, vector<8x128xf32>
    tpu.vector_store %arg16[%637, %c0_218], %634 {strides = array<i32>} : memref<64x128xf32, #tpu.memory_space<vmem>>, vector<8x128xf32>,
    %c8_i32_219 = arith.constant 8 : i32
    %c0_220 = arith.constant 0 : index
    %c0_221 = arith.constant 0 : index
    %639 = vector.load %arg16[%c0_220, %c0_221] : memref<64x128xf32, #tpu.memory_space<vmem>>, vector<64x128xf32>
    %c0_222 = arith.constant 0 : index
    %c0_223 = arith.constant 0 : index
    %640 = vector.load %arg11[%c0_222, %c0_223] : memref<128x16xf32, #tpu.memory_space<vmem>>, vector<128x16xf32>
    %cst_224 = arith.constant dense<0.000000e+00> : vector<64x16xf32>
    %641 = tpu.matmul %639, %640, %cst_224 {dimension_numbers = #tpu.dot_dimension_numbers<[1], [0], [0], [1], [0, 0, 1, 1], [], []>} : vector<64x128xf32>, vector<128x16xf32>, vector<64x16xf32> -> vector<64x16xf32>
    %c0_225 = arith.constant 0 : index
    %c0_226 = arith.constant 0 : index
    %642 = vector.load %arg12[%c0_225, %c0_226] : memref<1x16xf32, #tpu.memory_space<vmem>>, vector<1x16xf32>
    %643 = vector.broadcast %642 : vector<1x16xf32> to vector<64x16xf32>
    %644 = arith.addf %641, %643 : vector<64x16xf32>
    %645 = vector.extract_strided_slice %644 {offsets = [0, 0], sizes = [8, 16], strides = [1, 1]} : vector<64x16xf32> to vector<8x16xf32>
    %c0_227 = arith.constant 0 : index
    %c0_228 = arith.constant 0 : index
    %646 = vector.load %arg13[%c0_227, %c0_228] : memref<8x128xf32, #tpu.memory_space<vmem>>, vector<8x16xf32>
    tpu.vector_store %arg13[%c0_227, %c0_228], %645 {strides = array<i32>} : memref<8x128xf32, #tpu.memory_space<vmem>>, vector<8x16xf32>,
    %647 = vector.extract_strided_slice %644 {offsets = [8, 0], sizes = [8, 16], strides = [1, 1]} : vector<64x16xf32> to vector<8x16xf32>
    %c0_229 = arith.constant 0 : index
    %c16 = arith.constant 16 : index
    %648 = vector.load %arg13[%c0_229, %c16] : memref<8x128xf32, #tpu.memory_space<vmem>>, vector<8x16xf32>
    tpu.vector_store %arg13[%c0_229, %c16], %647 {strides = array<i32>} : memref<8x128xf32, #tpu.memory_space<vmem>>, vector<8x16xf32>,
    %649 = vector.extract_strided_slice %644 {offsets = [16, 0], sizes = [8, 16], strides = [1, 1]} : vector<64x16xf32> to vector<8x16xf32>
    %c0_230 = arith.constant 0 : index
    %c32 = arith.constant 32 : index
    %650 = vector.load %arg13[%c0_230, %c32] : memref<8x128xf32, #tpu.memory_space<vmem>>, vector<8x16xf32>
    tpu.vector_store %arg13[%c0_230, %c32], %649 {strides = array<i32>} : memref<8x128xf32, #tpu.memory_space<vmem>>, vector<8x16xf32>,
    %651 = vector.extract_strided_slice %644 {offsets = [24, 0], sizes = [8, 16], strides = [1, 1]} : vector<64x16xf32> to vector<8x16xf32>
    %c0_231 = arith.constant 0 : index
    %c48 = arith.constant 48 : index
    %652 = vector.load %arg13[%c0_231, %c48] : memref<8x128xf32, #tpu.memory_space<vmem>>, vector<8x16xf32>
    tpu.vector_store %arg13[%c0_231, %c48], %651 {strides = array<i32>} : memref<8x128xf32, #tpu.memory_space<vmem>>, vector<8x16xf32>,
    %653 = vector.extract_strided_slice %644 {offsets = [32, 0], sizes = [8, 16], strides = [1, 1]} : vector<64x16xf32> to vector<8x16xf32>
    %c0_232 = arith.constant 0 : index
    %c64 = arith.constant 64 : index
    %654 = vector.load %arg13[%c0_232, %c64] : memref<8x128xf32, #tpu.memory_space<vmem>>, vector<8x16xf32>
    tpu.vector_store %arg13[%c0_232, %c64], %653 {strides = array<i32>} : memref<8x128xf32, #tpu.memory_space<vmem>>, vector<8x16xf32>,
    %655 = vector.extract_strided_slice %644 {offsets = [40, 0], sizes = [8, 16], strides = [1, 1]} : vector<64x16xf32> to vector<8x16xf32>
    %c0_233 = arith.constant 0 : index
    %c80 = arith.constant 80 : index
    %656 = vector.load %arg13[%c0_233, %c80] : memref<8x128xf32, #tpu.memory_space<vmem>>, vector<8x16xf32>
    tpu.vector_store %arg13[%c0_233, %c80], %655 {strides = array<i32>} : memref<8x128xf32, #tpu.memory_space<vmem>>, vector<8x16xf32>,
    %657 = vector.extract_strided_slice %644 {offsets = [48, 0], sizes = [8, 16], strides = [1, 1]} : vector<64x16xf32> to vector<8x16xf32>
    %c0_234 = arith.constant 0 : index
    %c96 = arith.constant 96 : index
    %658 = vector.load %arg13[%c0_234, %c96] : memref<8x128xf32, #tpu.memory_space<vmem>>, vector<8x16xf32>
    tpu.vector_store %arg13[%c0_234, %c96], %657 {strides = array<i32>} : memref<8x128xf32, #tpu.memory_space<vmem>>, vector<8x16xf32>,
    %659 = vector.extract_strided_slice %644 {offsets = [56, 0], sizes = [8, 16], strides = [1, 1]} : vector<64x16xf32> to vector<8x16xf32>
    %c0_235 = arith.constant 0 : index
    %c112 = arith.constant 112 : index
    %660 = vector.load %arg13[%c0_235, %c112] : memref<8x128xf32, #tpu.memory_space<vmem>>, vector<8x16xf32>
    tpu.vector_store %arg13[%c0_235, %c112], %659 {strides = array<i32>} : memref<8x128xf32, #tpu.memory_space<vmem>>, vector<8x16xf32>,
    return
  }
  func.func @transform_0(%arg0: i32) -> (i32, i32) {
    %c0_i32 = arith.constant 0 : i32
    %c0_i32_0 = arith.constant 0 : i32
    return %arg0, %c0_i32 : i32, i32
  }
  func.func @transform_1(%arg0: i32) -> (i32, i32) {
    %c0_i32 = arith.constant 0 : i32
    %c0_i32_0 = arith.constant 0 : i32
    %c0_i32_1 = arith.constant 0 : i32
    return %c0_i32, %c0_i32_0 : i32, i32
  }
  func.func @transform_2(%arg0: i32) -> (i32, i32) {
    %c0_i32 = arith.constant 0 : i32
    %c0_i32_0 = arith.constant 0 : i32
    %c0_i32_1 = arith.constant 0 : i32
    return %c0_i32, %c0_i32_0 : i32, i32
  }
  func.func @transform_3(%arg0: i32) -> (i32, i32) {
    %c0_i32 = arith.constant 0 : i32
    %c0_i32_0 = arith.constant 0 : i32
    %c0_i32_1 = arith.constant 0 : i32
    return %c0_i32, %c0_i32_0 : i32, i32
  }
  func.func @transform_4(%arg0: i32) -> (i32, i32) {
    %c0_i32 = arith.constant 0 : i32
    %c0_i32_0 = arith.constant 0 : i32
    %c0_i32_1 = arith.constant 0 : i32
    return %c0_i32, %c0_i32_0 : i32, i32
  }
  func.func @transform_5(%arg0: i32) -> (i32, i32) {
    %c0_i32 = arith.constant 0 : i32
    %c0_i32_0 = arith.constant 0 : i32
    %c0_i32_1 = arith.constant 0 : i32
    return %c0_i32, %c0_i32_0 : i32, i32
  }
  func.func @transform_6(%arg0: i32) -> (i32, i32) {
    %c0_i32 = arith.constant 0 : i32
    %c0_i32_0 = arith.constant 0 : i32
    %c0_i32_1 = arith.constant 0 : i32
    return %c0_i32, %c0_i32_0 : i32, i32
  }
  func.func @transform_7(%arg0: i32) -> (i32, i32) {
    %c0_i32 = arith.constant 0 : i32
    %c0_i32_0 = arith.constant 0 : i32
    %c0_i32_1 = arith.constant 0 : i32
    return %c0_i32, %c0_i32_0 : i32, i32
  }
  func.func @transform_8(%arg0: i32) -> (i32, i32) {
    %c0_i32 = arith.constant 0 : i32
    %c0_i32_0 = arith.constant 0 : i32
    %c0_i32_1 = arith.constant 0 : i32
    return %c0_i32, %c0_i32_0 : i32, i32
  }
  func.func @transform_9(%arg0: i32) -> (i32, i32) {
    %c0_i32 = arith.constant 0 : i32
    %c0_i32_0 = arith.constant 0 : i32
    %c0_i32_1 = arith.constant 0 : i32
    return %c0_i32, %c0_i32_0 : i32, i32
  }
  func.func @transform_10(%arg0: i32) -> (i32, i32) {
    %c0_i32 = arith.constant 0 : i32
    %c0_i32_0 = arith.constant 0 : i32
    %c0_i32_1 = arith.constant 0 : i32
    return %c0_i32, %c0_i32_0 : i32, i32
  }
  func.func @transform_11(%arg0: i32) -> (i32, i32) {
    %c0_i32 = arith.constant 0 : i32
    %c0_i32_0 = arith.constant 0 : i32
    %c0_i32_1 = arith.constant 0 : i32
    return %c0_i32, %c0_i32_0 : i32, i32
  }
  func.func @transform_12(%arg0: i32) -> (i32, i32) {
    %c0_i32 = arith.constant 0 : i32
    %c0_i32_0 = arith.constant 0 : i32
    return %arg0, %c0_i32 : i32, i32
  }
}

</mosaic_0001>

<bundles_post_ra>
// kernel: tpu_custom_call.1
= control target key start
LH: loop header
LB: loop body
LE: loop exit
PB: predicated region body
PF: predicated region fallthrough
CT: control target
= control target key end

     0   :  { %17 = vsyncpa [#allocation7], 0  ;;  %s11438_s0 = inlined_call_operand.vmem [shape: f32[8,128], index: 0, kind: input, shape index: {}]   ;;  %s11439_s1 = inlined_call_operand.hbm [shape: f32[128,512], index: 1, kind: input, shape index: {}]   ;;  %s11440_s2 = inlined_call_operand.hbm [shape: f32[128,512], index: 2, kind: input, shape index: {}]   ;;  %s11441_s3 = inlined_call_operand.vmem [shape: f32[1,512], index: 3, kind: input, shape index: {}]   ;;  %s11442_s4 = inlined_call_operand.hbm [shape: f32[128,512], index: 4, kind: input, shape index: {}]   ;;  %s11443_s5 = inlined_call_operand.hbm [shape: f32[128,512], index: 5, kind: input, shape index: {}]   ;;  %s11444_s6 = inlined_call_operand.vmem [shape: f32[1,512], index: 6, kind: input, shape index: {}]   ;;  %s11445_s7 = inlined_call_operand.hbm [shape: f32[128,512], index: 7, kind: input, shape index: {}]   ;;  %s11446_s8 = inlined_call_operand.hbm [shape: f32[128,512], index: 8, kind: input, shape index: {}]   ;;  %s11447_s9 = inlined_call_operand.vmem [shape: f32[1,512], index: 9, kind: input, shape index: {}]   ;;  %s11448_s10 = inlined_call_operand.vmem [shape: f32[128,16], index: 10, kind: input, shape index: {}]   ;;  %s11449_s11 = inlined_call_operand.vmem [shape: f32[1,16], index: 11, kind: input, shape index: {}]   ;;  %s11450_s12 = inlined_call_operand.hbm [shape: f32[8,128], index: 12, kind: output, shape index: {}]  }
   0x1   :  { %18 = vsyncpa [#allocation10], 0 }
   0x2   :  { %19 = vsyncpa [#allocation13], 0 }
   0x3   :  { %20 = vsyncpa [#allocation16], 0 }
   0x4   :  { %21 = vsyncpa [#allocation8], 0  ;;  %s9604_s21 = smov [#allocation9]   ;;  %s9605_s23 = smov [#allocation12]  }
   0x5   :  { %s41_s22 = sshll.u32 %s9604_s21, 4  ;;  %s67_s24 = sshll.u32 %s9605_s23, 4  ;;  %s42_s22 = int_to_ptr.vmem [resolvable:$true] %s41_s22  ;;  %s9685_s24 = int_to_ptr.vmem [resolvable:$true] %s67_s24 }
   0x6   :  { %s9440_s27 = scalar_lea.hbm %s11440_s2, 8192 }
   0x7   :  { %p9441_p0 = scmp.ne.s32.totalorder %s11440_s2, %s9440_s27  ;;  %p9444_p1 = scmp.lt.u32.totalorder %s9440_s27, %s11440_s2 }
   0x9   :  { %p9446_p2 = pnand %p9444_p1, %p9441_p0 }
   0xb   :  { %9449 = shalt.err (!%p9446_p2)
}
   0xc   :  { %s9450_s14 = scalar_lea.vmem %s42_s22, 8192  ;;  %p9455_p4 = scmp.lt.s32.totalorder %s42_s22, %s42_s22 }
   0xd   :  { %p9451_p3 = scmp.ne.s32.totalorder %s42_s22, %s9450_s14  ;;  %p9456_p5 = scmp.lt.s32.totalorder %s9450_s14, %s9450_s14 }
   0xf   :  { %p9457_p6 = por %p9456_p5, %p9455_p4 }
  0x11   :  { %p9458_p7 = pnand %p9457_p6, %p9451_p3 }
  0x13   :  { %9461 = shalt.err (!%p9458_p7)
}
  0x14   :  { %s9606_s15 = smov 512   ;;  %s9607_s16 = smov 32  }
  0x15   :  { %47 = dma.hbm_to_vmem [thread:$0]  %s11440_s2, 8192, %s42_s22, [#allocation10], %s9606_s15, %s9606_s15, %s9607_s16  }
  0x16   :  { %s9462_s21 = scalar_lea.hbm %s11443_s5, 8192 }
  0x17   :  { %p9463_p8 = scmp.ne.s32.totalorder %s11443_s5, %s9462_s21  ;;  %p9466_p9 = scmp.lt.u32.totalorder %s9462_s21, %s11443_s5 }
  0x19   :  { %p9468_p10 = pnand %p9466_p9, %p9463_p8 }
  0x1b   :  { %9471 = shalt.err (!%p9468_p10)
}
  0x1c   :  { %s9472_s28 = scalar_lea.vmem %s9685_s24, 8192  ;;  %p9477_p12 = scmp.lt.s32.totalorder %s9685_s24, %s9685_s24 }
  0x1d   :  { %p9473_p11 = scmp.ne.s32.totalorder %s9685_s24, %s9472_s28  ;;  %p9478_p13 = scmp.lt.s32.totalorder %s9472_s28, %s9472_s28 }
  0x1f   :  { %p9479_p0 = por %p9478_p13, %p9477_p12 }
  0x21   :  { %p9480_p1 = pnand %p9479_p0, %p9473_p11 }
  0x23   :  { %9483 = shalt.err (!%p9480_p1)
}
  0x24   :  { %73 = dma.hbm_to_vmem [thread:$0]  %s11443_s5, 8192, %s9685_s24, [#allocation13], %s9606_s15, %s9606_s15, %s9607_s16  }
  0x25   :  { %s9608_s29 = smov [#allocation6]   ;;  %s9609_s13 = smov [#allocation11]  }
  0x26   :  { %s29_s30 = sshll.u32 %s9608_s29, 4  ;;  %s55_s14 = sshll.u32 %s9609_s13, 4  ;;  %s30_s30 = int_to_ptr.vmem [resolvable:$true] %s29_s30  ;;  %s9722_s14 = int_to_ptr.vmem [resolvable:$true] %s55_s14 }
  0x27   :  { %s9484_s19 = scalar_lea.hbm %s11439_s1, 8192 }
  0x28   :  { %p9485_p2 = scmp.ne.s32.totalorder %s11439_s1, %s9484_s19  ;;  %p9488_p3 = scmp.lt.u32.totalorder %s9484_s19, %s11439_s1 }
  0x2a   :  { %p9490_p4 = pnand %p9488_p3, %p9485_p2 }
  0x2c   :  { %9493 = shalt.err (!%p9490_p4)
}
  0x2d   :  { %s9494_s5 = scalar_lea.vmem %s30_s30, 8192  ;;  %p9499_p6 = scmp.lt.s32.totalorder %s30_s30, %s30_s30 }
  0x2e   :  { %p9495_p5 = scmp.ne.s32.totalorder %s30_s30, %s9494_s5  ;;  %p9500_p7 = scmp.lt.s32.totalorder %s9494_s5, %s9494_s5 }
  0x30   :  { %p9501_p8 = por %p9500_p7, %p9499_p6 }
  0x32   :  { %p9502_p9 = pnand %p9501_p8, %p9495_p5 }
  0x34   :  { %9505 = shalt.err (!%p9502_p9)
}
  0x35   :  { %35 = dma.hbm_to_vmem [thread:$0]  %s11439_s1, 8192, %s30_s30, [#allocation7], %s9606_s15, %s9606_s15, %s9607_s16  }
  0x36   :  { %s9506_s2 = scalar_lea.hbm %s11442_s4, 8192 }
  0x37   :  { %p9507_p10 = scmp.ne.s32.totalorder %s11442_s4, %s9506_s2  ;;  %p9510_p11 = scmp.lt.u32.totalorder %s9506_s2, %s11442_s4 }
  0x39   :  { %p9512_p12 = pnand %p9510_p11, %p9507_p10 }
  0x3b   :  { %9515 = shalt.err (!%p9512_p12)
}
  0x3c   :  { %s9516_s18 = scalar_lea.vmem %s9722_s14, 8192  ;;  %p9521_p0 = scmp.lt.s32.totalorder %s9722_s14, %s9722_s14 }
  0x3d   :  { %p9517_p13 = scmp.ne.s32.totalorder %s9722_s14, %s9516_s18  ;;  %p9522_p1 = scmp.lt.s32.totalorder %s9516_s18, %s9516_s18 }
  0x3f   :  { %p9523_p2 = por %p9522_p1, %p9521_p0 }
  0x41   :  { %p9524_p3 = pnand %p9523_p2, %p9517_p13 }
  0x43   :  { %9527 = shalt.err (!%p9524_p3)
}
  0x44   :  { %61 = dma.hbm_to_vmem [thread:$0]  %s11442_s4, 8192, %s9722_s14, [#allocation10], %s9606_s15, %s9606_s15, %s9607_s16  }
  0x45   :  { %s9610_s19 = smov [#allocation14]   ;;  %s9611_s21 = smov [#allocation15]  }
  0x46   :  { %s81_s20 = sshll.u32 %s9610_s19, 4  ;;  %s93_s23 = sshll.u32 %s9611_s21, 4  ;;  %s82_s20 = int_to_ptr.vmem [resolvable:$true] %s81_s20  ;;  %s9759_s23 = int_to_ptr.vmem [resolvable:$true] %s93_s23 }
  0x47   :  { %s9528_s24 = scalar_lea.hbm %s11445_s7, 8192 }
  0x48   :  { %p9529_p4 = scmp.ne.s32.totalorder %s11445_s7, %s9528_s24  ;;  %p9532_p5 = scmp.lt.u32.totalorder %s9528_s24, %s11445_s7 }
  0x4a   :  { %p9534_p6 = pnand %p9532_p5, %p9529_p4 }
  0x4c   :  { %9537 = shalt.err (!%p9534_p6)
}
  0x4d   :  { %s9538_s4 = scalar_lea.vmem %s82_s20, 8192  ;;  %p9543_p8 = scmp.lt.s32.totalorder %s82_s20, %s82_s20 }
  0x4e   :  { %p9539_p7 = scmp.ne.s32.totalorder %s82_s20, %s9538_s4  ;;  %p9544_p9 = scmp.lt.s32.totalorder %s9538_s4, %s9538_s4 }
  0x50   :  { %p9545_p10 = por %p9544_p9, %p9543_p8 }
  0x52   :  { %p9546_p11 = pnand %p9545_p10, %p9539_p7 }
  0x54   :  { %9549 = shalt.err (!%p9546_p11)
}
  0x55   :  { %87 = dma.hbm_to_vmem [thread:$0]  %s11445_s7, 8192, %s82_s20, [#allocation13], %s9606_s15, %s9606_s15, %s9607_s16  }
  0x56   :  { %s9550_s17 = scalar_lea.hbm %s11446_s8, 8192 }
  0x57   :  { %p9551_p12 = scmp.ne.s32.totalorder %s11446_s8, %s9550_s17  ;;  %p9554_p13 = scmp.lt.u32.totalorder %s9550_s17, %s11446_s8 }
  0x59   :  { %p9556_p0 = pnand %p9554_p13, %p9551_p12 }
  0x5b   :  { %9559 = shalt.err (!%p9556_p0)
}
  0x5c   :  { %s9560_s21 = scalar_lea.vmem %s9759_s23, 8192  ;;  %p9565_p2 = scmp.lt.s32.totalorder %s9759_s23, %s9759_s23 }
  0x5d   :  { %p9561_p1 = scmp.ne.s32.totalorder %s9759_s23, %s9560_s21  ;;  %p9566_p3 = scmp.lt.s32.totalorder %s9560_s21, %s9560_s21 }
  0x5f   :  { %p9567_p4 = por %p9566_p3, %p9565_p2 }
  0x61   :  { %p9568_p5 = pnand %p9567_p4, %p9561_p1 }
  0x63   :  { %9571 = shalt.err (!%p9568_p5)
}
  0x64   :  { %99 = dma.hbm_to_vmem [thread:$0]  %s11446_s8, 8192, %s9759_s23, [#allocation16], %s9606_s15, %s9606_s15, %s9607_s16  }
  0x65   :  { %9594 = dma.done.wait [#allocation7], 8192  }
  0x66   :  { %9595 = vsyncadd [#allocation7], 4294959104 }
  0x67   :  { %9596 = dma.done.wait [#allocation10], 16384  }
  0x68   :  { %9597 = vsyncadd [#allocation10], 4294950912 }
  0x69   :  { %9598 = dma.done.wait [#allocation13], 16384  }
  0x6a   :  { %9599 = vsyncadd [#allocation13], 4294950912 }
  0x6b   :  { %9600 = dma.done.wait [#allocation16], 8192  }
  0x6c   :  { %9601 = vsyncadd [#allocation16], 4294959104  ;;  %v9612_v0 = vmov 0.0   ;;  %v126_v1 = vld [vmem:[#allocation6 + $0x8] sm:$0xff]  ;;  %v125_v3 = vld [vmem:[#allocation6] sm:$0xff]  ;;  %vm6942_vm0 = vcmask 130048  }
  0x6d   :  { %275 = vmatprep.mubr.f32.mxu1 %v9612_v0  ;;  %481 = vmatprep.mubr.f32.mxu0 %v9612_v0  ;;  %v130_v2 = vld [vmem:[#allocation6 + $0x28] sm:$0xff]  ;;  %v129_v5 = vld [vmem:[#allocation6 + $0x20] sm:$0xff]  ;;  %s9613_s4 = smov 16   ;;  %s9614_s14 = smov 48   ;;  %vm6948_vm1 = vcmask 261248   ;;  %vm6954_vm2 = vcmask 392448  }
  0x6e   :  { %v7152_v4 = vpack.c.bf16 %v130_v2, %v126_v1  ;;  %v354_v6 = vld [vmem:[#allocation9 + $0x8] sm:$0xff]  ;;  %v7154_v8 = vpack.c.bf16 %v129_v5, %v125_v3  ;;  %v353_v10 = vld [vmem:[#allocation9] sm:$0xff]  ;;  %s9616_s22 = smov 80   ;;  %vm6960_vm3 = vcmask 523648   ;;  %vm6966_vm4 = vcmask 654848   ;;  %s9618_s29 = smov 96  }
  0x6f   :  { %v358_v7 = vld [vmem:[#allocation9 + $0x28] sm:$0xff]  ;;  %v357_v11 = vld [vmem:[#allocation9 + $0x20] sm:$0xff]  ;;  %vm6972_vm5 = vcmask 786048   ;;  %s9619_s13 = smov [#allocation17]   ;;  %vm6978_vm6 = vcmask 917248   ;;  %vm6984_vm7 = vcmask 1048448  }
  0x70   :  { %v9798_v9 = vpack.c.bf16 %v358_v7, %v354_v6  ;;  %v134_v12 = vld [vmem:[#allocation6 + $0x48] sm:$0xff]  ;;  %7153 = vmatprep.subr.bf16.mxu1 %v7152_v4  ;;  %v9800_v13 = vpack.c.bf16 %v357_v11, %v353_v10  ;;  %v133_v15 = vld [vmem:[#allocation6 + $0x40] sm:$0xff]  ;;  %s6992_s17 = sshll.u32 %s9619_s13, 4  ;;  %s6993_s17 = int_to_ptr.vmem [resolvable:$true] %s6992_s17 }
  0x71   :  { %v138_v14 = vld [vmem:[#allocation6 + $0x68] sm:$0xff]  ;;  %v137_v16 = vld [vmem:[#allocation6 + $0x60] sm:$0xff]  ;;  %7155 = vmatpush1.bf16.msra.mxu1 %v7154_v8  ;;  %s9572_s18 = scalar_lea.vmem %s6993_s17, 128  ;;  %p9577_p7 = scmp.lt.s32.totalorder %s6993_s17, %s6993_s17 }
  0x72   :  { %7217 = vmatprep.subr.bf16.mxu0 %v9798_v9  ;;  %v7156_v17 = vpack.c.bf16 %v138_v14, %v134_v12  ;;  %v7158_v18 = vpack.c.bf16 %v137_v16, %v133_v15  ;;  %v362_v19 = vld [vmem:[#allocation9 + $0x48] sm:$0xff]  ;;  %v361_v21 = vld [vmem:[#allocation9 + $0x40] sm:$0xff]  ;;  %p9573_p6 = scmp.ne.s32.totalorder %s6993_s17, %s9572_s18  ;;  %p9578_p8 = scmp.lt.s32.totalorder %s9572_s18, %s9572_s18 }
  0x73   :  { %v366_v20 = vld [vmem:[#allocation9 + $0x68] sm:$0xff]  ;;  %7219 = vmatpush1.bf16.msra.mxu0 %v9800_v13  ;;  %v365_v23 = vld [vmem:[#allocation9 + $0x60] sm:$0xff] }
  0x74   :  { %v9804_v22 = vpack.c.bf16 %v366_v20, %v362_v19  ;;  %v142_v24 = vld [vmem:[#allocation6 + $0x88] sm:$0xff]  ;;  %7157 = vmatprep.subr.bf16.mxu1 %v7156_v17  ;;  %v9806_v26 = vpack.c.bf16 %v365_v23, %v361_v21  ;;  %v141_v28 = vld [vmem:[#allocation6 + $0x80] sm:$0xff]  ;;  %p9579_p9 = por %p9578_p8, %p9577_p7 }
  0x75   :  { %v146_v25 = vld [vmem:[#allocation6 + $0xa8] sm:$0xff]  ;;  %v145_v29 = vld [vmem:[#allocation6 + $0xa0] sm:$0xff]  ;;  %7159 = vmatpush1.bf16.msra.mxu1 %v7158_v18 }
  0x76   :  { %v7160_v27 = vpack.c.bf16 %v146_v25, %v142_v24  ;;  %v370_v30 = vld [vmem:[#allocation9 + $0x88] sm:$0xff]  ;;  %7221 = vmatprep.subr.bf16.mxu0 %v9804_v22  ;;  %v369_v32 = vld [vmem:[#allocation9 + $0x80] sm:$0xff]  ;;  %v7162_v34 = vpack.c.bf16 %v145_v29, %v141_v28  ;;  %p9580_p10 = pnand %p9579_p9, %p9573_p6 }
  0x77   :  { %v374_v31 = vld [vmem:[#allocation9 + $0xa8] sm:$0xff]  ;;  %v373_v33 = vld [vmem:[#allocation9 + $0xa0] sm:$0xff]  ;;  %7223 = vmatpush1.bf16.msra.mxu0 %v9806_v26 }
  0x78   :  { %v9809_v35 = vpack.c.bf16 %v374_v31, %v370_v30  ;;  %v150_v36 = vld [vmem:[#allocation6 + $0xc8] sm:$0xff]  ;;  %v149_v38 = vld [vmem:[#allocation6 + $0xc0] sm:$0xff]  ;;  %7161 = vmatprep.subr.bf16.mxu1 %v7160_v27  ;;  %v9812_v39 = vpack.c.bf16 %v373_v33, %v369_v32 }
  0x79   :  { %v154_v37 = vld [vmem:[#allocation6 + $0xe8] sm:$0xff]  ;;  %v153_v41 = vld [vmem:[#allocation6 + $0xe0] sm:$0xff]  ;;  %7163 = vmatpush1.bf16.msra.mxu1 %v7162_v34 }
  0x7a   :  { %v7164_v40 = vpack.c.bf16 %v154_v37, %v150_v36  ;;  %v378_v42 = vld [vmem:[#allocation9 + $0xc8] sm:$0xff]  ;;  %7225 = vmatprep.subr.bf16.mxu0 %v9809_v35  ;;  %v377_v45 = vld [vmem:[#allocation9 + $0xc0] sm:$0xff]  ;;  %v7166_v49 = vpack.c.bf16 %v153_v41, %v149_v38  ;;  %v128_v37 = vld [vmem:[#allocation6 + $0x18] sm:$0xff] }
  0x7b   :  { %v382_v43 = vld [vmem:[#allocation9 + $0xe8] sm:$0xff]  ;;  %v381_v46 = vld [vmem:[#allocation9 + $0xe0] sm:$0xff]  ;;  %7227 = vmatpush1.bf16.msra.mxu0 %v9812_v39  ;;  %v132_v38 = vld [vmem:[#allocation6 + $0x38] sm:$0xff] }
  0x7c   :  { %v9815_v44 = vpack.c.bf16 %v382_v43, %v378_v42  ;;  %v158_v47 = vld [vmem:[#allocation6 + $0x108] sm:$0xff]  ;;  %7165 = vmatprep.subr.bf16.mxu1 %v7164_v40  ;;  %v9818_v52 = vpack.c.bf16 %v381_v46, %v377_v45  ;;  %v157_v54 = vld [vmem:[#allocation6 + $0x100] sm:$0xff]  ;;  %v7184_v42 = vpack.c.bf16 %v132_v38, %v128_v37  ;;  %v127_v43 = vld [vmem:[#allocation6 + $0x10] sm:$0xff] }
  0x7d   :  { %v162_v48 = vld [vmem:[#allocation6 + $0x128] sm:$0xff]  ;;  %v161_v55 = vld [vmem:[#allocation6 + $0x120] sm:$0xff]  ;;  %7167 = vmatpush1.bf16.msra.mxu1 %v7166_v49  ;;  %v131_v45 = vld [vmem:[#allocation6 + $0x30] sm:$0xff] }
  0x7e   :  { %v386_v50 = vld [vmem:[#allocation9 + $0x108] sm:$0xff]  ;;  %v7168_v53 = vpack.c.bf16 %v162_v48, %v158_v47  ;;  %v385_v56 = vld [vmem:[#allocation9 + $0x100] sm:$0xff]  ;;  %7229 = vmatprep.subr.bf16.mxu0 %v9815_v44  ;;  %v7170_v63 = vpack.c.bf16 %v161_v55, %v157_v54  ;;  %v136_v46 = vld [vmem:[#allocation6 + $0x58] sm:$0xff]  ;;  %v7186_v49 = vpack.c.bf16 %v131_v45, %v127_v43 }
  0x7f   :  { %v390_v51 = vld [vmem:[#allocation9 + $0x128] sm:$0xff]  ;;  %v389_v58 = vld [vmem:[#allocation9 + $0x120] sm:$0xff]  ;;  %7231 = vmatpush1.bf16.msra.mxu0 %v9818_v52  ;;  %v140_v47 = vld [vmem:[#allocation6 + $0x78] sm:$0xff] }
  0x80   :  { %v9821_v57 = vpack.c.bf16 %v390_v51, %v386_v50  ;;  %v166_v59 = vld [vmem:[#allocation6 + $0x148] sm:$0xff]  ;;  %7169 = vmatprep.subr.bf16.mxu1 %v7168_v53  ;;  %v9824_v1 = vpack.c.bf16 %v389_v58, %v385_v56  ;;  %v165_v3 = vld [vmem:[#allocation6 + $0x140] sm:$0xff]  ;;  %v7188_v50 = vpack.c.bf16 %v140_v47, %v136_v46  ;;  %v135_v51 = vld [vmem:[#allocation6 + $0x50] sm:$0xff] }
  0x81   :  { %v170_v60 = vld [vmem:[#allocation6 + $0x168] sm:$0xff]  ;;  %v169_v4 = vld [vmem:[#allocation6 + $0x160] sm:$0xff]  ;;  %7171 = vmatpush1.bf16.msra.mxu1 %v7170_v63  ;;  %v139_v53 = vld [vmem:[#allocation6 + $0x70] sm:$0xff] }
  0x82   :  { %v394_v61 = vld [vmem:[#allocation9 + $0x148] sm:$0xff]  ;;  %v7172_v2 = vpack.c.bf16 %v170_v60, %v166_v59  ;;  %v393_v5 = vld [vmem:[#allocation9 + $0x140] sm:$0xff]  ;;  %7233 = vmatprep.subr.bf16.mxu0 %v9821_v57  ;;  %v7174_v14 = vpack.c.bf16 %v169_v4, %v165_v3  ;;  %v144_v54 = vld [vmem:[#allocation6 + $0x98] sm:$0xff]  ;;  %v7190_v56 = vpack.c.bf16 %v139_v53, %v135_v51 }
  0x83   :  { %v398_v62 = vld [vmem:[#allocation9 + $0x168] sm:$0xff]  ;;  %v397_v7 = vld [vmem:[#allocation9 + $0x160] sm:$0xff]  ;;  %7235 = vmatpush1.bf16.msra.mxu0 %v9824_v1  ;;  %v148_v55 = vld [vmem:[#allocation6 + $0xb8] sm:$0xff] }
  0x84   :  { %v9827_v6 = vpack.c.bf16 %v398_v62, %v394_v61  ;;  %v174_v8 = vld [vmem:[#allocation6 + $0x188] sm:$0xff]  ;;  %7173 = vmatprep.subr.bf16.mxu1 %v7172_v2  ;;  %v9830_v15 = vpack.c.bf16 %v397_v7, %v393_v5  ;;  %v173_v17 = vld [vmem:[#allocation6 + $0x180] sm:$0xff]  ;;  %v7192_v58 = vpack.c.bf16 %v148_v55, %v144_v54  ;;  %v143_v59 = vld [vmem:[#allocation6 + $0x90] sm:$0xff] }
  0x85   :  { %v178_v10 = vld [vmem:[#allocation6 + $0x1a8] sm:$0xff]  ;;  %v177_v18 = vld [vmem:[#allocation6 + $0x1a0] sm:$0xff]  ;;  %7175 = vmatpush1.bf16.msra.mxu1 %v7174_v14  ;;  %v147_v60 = vld [vmem:[#allocation6 + $0xb0] sm:$0xff] }
  0x86   :  { %v402_v11 = vld [vmem:[#allocation9 + $0x188] sm:$0xff]  ;;  %v7176_v16 = vpack.c.bf16 %v178_v10, %v174_v8  ;;  %v401_v19 = vld [vmem:[#allocation9 + $0x180] sm:$0xff]  ;;  %7237 = vmatprep.subr.bf16.mxu0 %v9827_v6  ;;  %v7178_v28 = vpack.c.bf16 %v177_v18, %v173_v17  ;;  %v152_v61 = vld [vmem:[#allocation6 + $0xd8] sm:$0xff]  ;;  %v7194_v63 = vpack.c.bf16 %v147_v60, %v143_v59 }
  0x87   :  { %v406_v12 = vld [vmem:[#allocation9 + $0x1a8] sm:$0xff]  ;;  %v405_v21 = vld [vmem:[#allocation9 + $0x1a0] sm:$0xff]  ;;  %7239 = vmatpush1.bf16.msra.mxu0 %v9830_v15  ;;  %v156_v62 = vld [vmem:[#allocation6 + $0xf8] sm:$0xff] }
  0x88   :  { %v9833_v20 = vpack.c.bf16 %v406_v12, %v402_v11  ;;  %v182_v23 = vld [vmem:[#allocation6 + $0x1c8] sm:$0xff]  ;;  %7177 = vmatprep.subr.bf16.mxu1 %v7176_v16  ;;  %v9836_v29 = vpack.c.bf16 %v405_v21, %v401_v19  ;;  %v181_v31 = vld [vmem:[#allocation6 + $0x1c0] sm:$0xff]  ;;  %v7196_v2 = vpack.c.bf16 %v156_v62, %v152_v61  ;;  %v151_v3 = vld [vmem:[#allocation6 + $0xd0] sm:$0xff] }
  0x89   :  { %v186_v24 = vld [vmem:[#allocation6 + $0x1e8] sm:$0xff]  ;;  %v185_v32 = vld [vmem:[#allocation6 + $0x1e0] sm:$0xff]  ;;  %7179 = vmatpush1.bf16.msra.mxu1 %v7178_v28  ;;  %v155_v4 = vld [vmem:[#allocation6 + $0xf0] sm:$0xff] }
  0x8a   :  { %v410_v25 = vld [vmem:[#allocation9 + $0x1c8] sm:$0xff]  ;;  %v7180_v30 = vpack.c.bf16 %v186_v24, %v182_v23  ;;  %v409_v33 = vld [vmem:[#allocation9 + $0x1c0] sm:$0xff]  ;;  %7241 = vmatprep.subr.bf16.mxu0 %v9833_v20  ;;  %v7182_v40 = vpack.c.bf16 %v185_v32, %v181_v31  ;;  %v160_v5 = vld [vmem:[#allocation6 + $0x118] sm:$0xff]  ;;  %v7198_v8 = vpack.c.bf16 %v155_v4, %v151_v3 }
  0x8b   :  { %v414_v27 = vld [vmem:[#allocation9 + $0x1e8] sm:$0xff]  ;;  %v413_v36 = vld [vmem:[#allocation9 + $0x1e0] sm:$0xff]  ;;  %7243 = vmatpush1.bf16.msra.mxu0 %v9836_v29  ;;  %v164_v7 = vld [vmem:[#allocation6 + $0x138] sm:$0xff] }
  0x8c   :  { %v9839_v34 = vpack.c.bf16 %v414_v27, %v410_v25  ;;  %7181 = vmatprep.subr.bf16.mxu1 %v7180_v30  ;;  %v9842_v41 = vpack.c.bf16 %v413_v36, %v409_v33  ;;  %v9848_v48 = vld [vmem:[%s11438_s0] sm:$0xff]  ;;  %v7200_v10 = vpack.c.bf16 %v164_v7, %v160_v5  ;;  %v159_v11 = vld [vmem:[#allocation6 + $0x110] sm:$0xff]  ;;  %v168_v14 = vld [vmem:[#allocation6 + $0x158] sm:$0xff] }
  0x8d   :  { %7183 = vmatpush1.bf16.msra.mxu1 %v7182_v40  ;;  %v163_v12 = vld [vmem:[#allocation6 + $0x130] sm:$0xff]  ;;  %v172_v16 = vld [vmem:[#allocation6 + $0x178] sm:$0xff] }
  0x8e   :  { %7245 = vmatprep.subr.bf16.mxu0 %v9839_v34  ;;  %7185 = vmatprep.subr.bf16.mxu1 %v7184_v42  ;;  %v7202_v17 = vpack.c.bf16 %v163_v12, %v159_v11  ;;  %v7204_v18 = vpack.c.bf16 %v172_v16, %v168_v14  ;;  %v167_v19 = vld [vmem:[#allocation6 + $0x150] sm:$0xff]  ;;  %v176_v23 = vld [vmem:[#allocation6 + $0x198] sm:$0xff] }
  0x8f   :  { %7247 = vmatpush1.bf16.msra.mxu0 %v9842_v41  ;;  %v171_v21 = vld [vmem:[#allocation6 + $0x170] sm:$0xff]  ;;  %v180_v24 = vld [vmem:[#allocation6 + $0x1b8] sm:$0xff] }
  0x90   :  { %7281 = vmatprep.subr.bf16.mxu0 %v9798_v9  ;;  %276 = vmatmul.mubr.f32.vlgmr.msra.gmra.mrb[0].mxu1 %v9848_v48  ;;  %v7206_v25 = vpack.c.bf16 %v171_v21, %v167_v19  ;;  %v7208_v27 = vpack.c.bf16 %v180_v24, %v176_v23  ;;  %v175_v28 = vld [vmem:[#allocation6 + $0x190] sm:$0xff]  ;;  %v184_v31 = vld [vmem:[#allocation6 + $0x1d8] sm:$0xff] }
  0x91   :  { %7187 = vmatpush1.bf16.msra.mxu1 %v7186_v49  ;;  %346 = vmatprep.mubr.f32.mxu1 %v9612_v0  ;;  %v179_v30 = vld [vmem:[#allocation6 + $0x1b0] sm:$0xff]  ;;  %v188_v32 = vld [vmem:[#allocation6 + $0x1f8] sm:$0xff] }
  0x92   :  { %482 = vmatmul.mubr.f32.vlgmr.msra.gmra.mrb[0].mxu0 %v9612_v0  ;;  %7189 = vmatprep.subr.bf16.mxu1 %v7188_v50  ;;  %v7210_v33 = vpack.c.bf16 %v179_v30, %v175_v28  ;;  %v7212_v36 = vpack.c.bf16 %v188_v32, %v184_v31  ;;  %v183_v37 = vld [vmem:[#allocation6 + $0x1d0] sm:$0xff]  ;;  %v356_v40 = vld [vmem:[#allocation9 + $0x18] sm:$0xff] }
  0x93   :  { %7283 = vmatpush1.bf16.msra.mxu0 %v9800_v13  ;;  %716 = vmatprep.mubr.f32.mxu0 %v9612_v0  ;;  %v187_v38 = vld [vmem:[#allocation6 + $0x1f0] sm:$0xff]  ;;  %v360_v42 = vld [vmem:[#allocation9 + $0x38] sm:$0xff] }
  0x94   :  { %7285 = vmatprep.subr.bf16.mxu0 %v9804_v22  ;;  %v7214_v43 = vpack.c.bf16 %v187_v38, %v183_v37  ;;  %v9868_v45 = vpack.c.bf16 %v360_v42, %v356_v40  ;;  %v355_v46 = vld [vmem:[#allocation9 + $0x10] sm:$0xff]  ;;  %v364_v49 = vld [vmem:[#allocation9 + $0x58] sm:$0xff] }
  0x95   :  { %7191 = vmatpush1.bf16.msra.mxu1 %v7190_v56  ;;  %v359_v47 = vld [vmem:[#allocation9 + $0x30] sm:$0xff]  ;;  %v368_v50 = vld [vmem:[#allocation9 + $0x78] sm:$0xff] }
  0x96   :  { %7193 = vmatprep.subr.bf16.mxu1 %v7192_v58  ;;  %v9872_v51 = vpack.c.bf16 %v359_v47, %v355_v46  ;;  %v9875_v53 = vpack.c.bf16 %v368_v50, %v364_v49  ;;  %v363_v54 = vld [vmem:[#allocation9 + $0x50] sm:$0xff]  ;;  %v372_v56 = vld [vmem:[#allocation9 + $0x98] sm:$0xff]  ;;  %v191_v49 = vlaneseq }
  0x97   :  { %7287 = vmatpush1.bf16.msra.mxu0 %v9806_v26  ;;  %v367_v55 = vld [vmem:[#allocation9 + $0x70] sm:$0xff]  ;;  %v376_v58 = vld [vmem:[#allocation9 + $0xb8] sm:$0xff] }
  0x98   :  { %7289 = vmatprep.subr.bf16.mxu0 %v9809_v35  ;;  %v9881_v59 = vpack.c.bf16 %v367_v55, %v363_v54  ;;  %v9885_v60 = vpack.c.bf16 %v376_v58, %v372_v56  ;;  %v371_v61 = vld [vmem:[#allocation9 + $0x90] sm:$0xff]  ;;  %v388_v5 = vld [vmem:[#allocation9 + $0x118] sm:$0xff]  ;;  %v192_v50 = vshrl.u32 %v191_v49, 7  ;;  %v189_v55 = vld [vmem:[%s11441_s3] sm:$0xf] }
  0x99   :  { %7195 = vmatpush1.bf16.msra.mxu1 %v7194_v63  ;;  %v375_v62 = vld [vmem:[#allocation9 + $0xb0] sm:$0xff]  ;;  %v380_v63 = vld [vmem:[#allocation9 + $0xd8] sm:$0xff] }
  0x9a   :  { %7197 = vmatprep.subr.bf16.mxu1 %v7196_v2  ;;  %v384_v2 = vld [vmem:[#allocation9 + $0xf8] sm:$0xff]  ;;  %v9888_v3 = vpack.c.bf16 %v375_v62, %v371_v61  ;;  %v383_v4 = vld [vmem:[#allocation9 + $0xf0] sm:$0xff]  ;;  %v9941_v54 = vsub.s32 1, %v192_v50  ;;  %v9946_v56 = vsub.s32 0, %v192_v50 }
  0x9b   :  { %7291 = vmatpush1.bf16.msra.mxu0 %v9812_v39  ;;  %v392_v7 = vld [vmem:[#allocation9 + $0x138] sm:$0xff]  ;;  %v387_v11 = vld [vmem:[#allocation9 + $0x110] sm:$0xff] }
  0x9c   :  { %7293 = vmatprep.subr.bf16.mxu0 %v9815_v44  ;;  %v391_v12 = vld [vmem:[#allocation9 + $0x130] sm:$0xff]  ;;  %v396_v14 = vld [vmem:[#allocation9 + $0x158] sm:$0xff]  ;;  %v198_v61 = vrot.slane %v189_v55, %v9941_v54 }
  0x9d   :  { %7199 = vmatpush1.bf16.msra.mxu1 %v7198_v8  ;;  %v400_v16 = vld [vmem:[#allocation9 + $0x178] sm:$0xff]  ;;  %v395_v19 = vld [vmem:[#allocation9 + $0x150] sm:$0xff] }
  0x9e   :  { %7201 = vmatprep.subr.bf16.mxu1 %v7200_v10  ;;  %v9897_v10 = vpack.c.bf16 %v392_v7, %v388_v5  ;;  %v399_v21 = vld [vmem:[#allocation9 + $0x170] sm:$0xff]  ;;  %v404_v23 = vld [vmem:[#allocation9 + $0x198] sm:$0xff] }
  0x9f   :  { %7295 = vmatpush1.bf16.msra.mxu0 %v9818_v52  ;;  %v408_v24 = vld [vmem:[#allocation9 + $0x1b8] sm:$0xff]  ;;  %v403_v28 = vld [vmem:[#allocation9 + $0x190] sm:$0xff] }
  0xa0   :  { %7297 = vmatprep.subr.bf16.mxu0 %v9821_v57  ;;  %v407_v30 = vld [vmem:[#allocation9 + $0x1b0] sm:$0xff]  ;;  %v412_v31 = vld [vmem:[#allocation9 + $0x1d8] sm:$0xff] }
  0xa1   :  { %7203 = vmatpush1.bf16.msra.mxu1 %v7202_v17  ;;  %v9900_v17 = vpack.c.bf16 %v391_v12, %v387_v11  ;;  %v416_v32 = vld [vmem:[#allocation9 + $0x1f8] sm:$0xff]  ;;  %v411_v37 = vld [vmem:[#allocation9 + $0x1d0] sm:$0xff]  ;;  %v9956_v12 = vsub.s32 2, %v192_v50 }
  0xa2   :  { %7205 = vmatprep.subr.bf16.mxu1 %v7204_v18  ;;  %v9903_v18 = vpack.c.bf16 %v400_v16, %v396_v14  ;;  %v415_v38 = vld [vmem:[#allocation9 + $0x1f0] sm:$0xff]  ;;  %v9958_v14 = vsub.s32 3, %v192_v50 }
  0xa3   :  { %7299 = vmatpush1.bf16.msra.mxu0 %v9824_v1  ;;  %v9918_v40 = vpack.c.bf16 %v415_v38, %v411_v37 }
  0xa4   :  { %7301 = vmatprep.subr.bf16.mxu0 %v9827_v6 }
  0xa5   :  { %7207 = vmatpush1.bf16.msra.mxu1 %v7206_v25  ;;  %v9906_v25 = vpack.c.bf16 %v399_v21, %v395_v19  ;;  %v202_v19 = vrot.slane %v189_v55, %v9956_v12 }
  0xa6   :  { %7209 = vmatprep.subr.bf16.mxu1 %v7208_v27  ;;  %v9909_v27 = vpack.c.bf16 %v408_v24, %v404_v23  ;;  %v206_v23 = vrot.slane %v189_v55, %v9958_v14 }
  0xa7   :  { %7303 = vmatpush1.bf16.msra.mxu0 %v9830_v15 }
  0xa8   :  { %7305 = vmatprep.subr.bf16.mxu0 %v9833_v20 }
  0xa9   :  { %7211 = vmatpush1.bf16.msra.mxu1 %v7210_v33  ;;  %v9912_v33 = vpack.c.bf16 %v407_v30, %v403_v28 }
  0xaa   :  { %7213 = vmatprep.subr.bf16.mxu1 %v7212_v36  ;;  %v9915_v36 = vpack.c.bf16 %v416_v32, %v412_v31 }
  0xab   :  { %7307 = vmatpush1.bf16.msra.mxu0 %v9836_v29 }
  0xac   :  { %7309 = vmatprep.subr.bf16.mxu0 %v9839_v34 }
  0xad   :  { %7215 = vmatpush1.bf16.msra.mxu1 %v7214_v43 }
  0xae   :  { %7249 = vmatprep.subr.bf16.mxu1 %v9868_v45 }
  0xaf   :  { %7311 = vmatpush1.bf16.msra.mxu0 %v9842_v41 }
  0xb0   :  { %347 = vmatmul.mubr.f32.vlgmr.msra.gmra.mrb[2].mxu1 %v9848_v48  ;;  %7345 = vmatprep.subr.bf16.mxu0 %v9798_v9  ;;  %v9891_v9 = vpack.c.bf16 %v384_v2, %v380_v63  ;;  %v379_v48 = vld [vmem:[#allocation9 + $0xd0] sm:$0xff]  ;;  %v194_v63 = vrot.slane %v189_v55, %v9946_v56 }
  0xb1   :  { %7251 = vmatpush1.bf16.msra.mxu1 %v9872_v51  ;;  %552 = vmatprep.mubr.f32.mxu1 %v9612_v0  ;;  %v9894_v8 = vpack.c.bf16 %v383_v4, %v379_v48 }
  0xb2   :  { %7253 = vmatprep.subr.bf16.mxu1 %v9875_v53 }
  0xb5   :  { %7255 = vmatpush1.bf16.msra.mxu1 %v9881_v59 }
  0xb6   :  { %7257 = vmatprep.subr.bf16.mxu1 %v9885_v60 }
  0xb9   :  { %7259 = vmatpush1.bf16.msra.mxu1 %v9888_v3 }
  0xba   :  { %7261 = vmatprep.subr.bf16.mxu1 %v9891_v9 }
  0xbd   :  { %7263 = vmatpush1.bf16.msra.mxu1 %v9894_v8 }
  0xbe   :  { %7265 = vmatprep.subr.bf16.mxu1 %v9897_v10 }
  0xc1   :  { %7267 = vmatpush1.bf16.msra.mxu1 %v9900_v17 }
  0xc2   :  { %7269 = vmatprep.subr.bf16.mxu1 %v9903_v18 }
  0xc5   :  { %7271 = vmatpush1.bf16.msra.mxu1 %v9906_v25 }
  0xc6   :  { %7273 = vmatprep.subr.bf16.mxu1 %v9909_v27 }
  0xc9   :  { %7275 = vmatpush1.bf16.msra.mxu1 %v9912_v33 }
  0xca   :  { %7277 = vmatprep.subr.bf16.mxu1 %v9915_v36 }
  0xcd   :  { %7279 = vmatpush1.bf16.msra.mxu1 %v9918_v40 }
  0xce   :  { %7313 = vmatprep.subr.bf16.mxu1 %v9868_v45 }
  0xd0   :  { %553 = vmatmul.mubr.f32.vlgmr.msra.gmra.mrb[4].mxu1 %v9612_v0 }
  0xd1   :  { %7315 = vmatpush1.bf16.msra.mxu1 %v9872_v51  ;;  %787 = vmatprep.mubr.f32.mxu1 %v9612_v0 }
  0xd2   :  { %7317 = vmatprep.subr.bf16.mxu1 %v9875_v53 }
  0xd5   :  { %7319 = vmatpush1.bf16.msra.mxu1 %v9881_v59 }
  0xd6   :  { %7321 = vmatprep.subr.bf16.mxu1 %v9885_v60 }
  0xd9   :  { %7323 = vmatpush1.bf16.msra.mxu1 %v9888_v3 }
  0xda   :  { %7325 = vmatprep.subr.bf16.mxu1 %v9891_v9 }
  0xdd   :  { %7327 = vmatpush1.bf16.msra.mxu1 %v9894_v8 }
  0xde   :  { %7329 = vmatprep.subr.bf16.mxu1 %v9897_v10 }
  0xe1   :  { %7331 = vmatpush1.bf16.msra.mxu1 %v9900_v17 }
  0xe2   :  { %7333 = vmatprep.subr.bf16.mxu1 %v9903_v18 }
  0xe5   :  { %7335 = vmatpush1.bf16.msra.mxu1 %v9906_v25 }
  0xe6   :  { %7337 = vmatprep.subr.bf16.mxu1 %v9909_v27 }
  0xe9   :  { %7339 = vmatpush1.bf16.msra.mxu1 %v9912_v33 }
  0xea   :  { %7341 = vmatprep.subr.bf16.mxu1 %v9915_v36 }
  0xed   :  { %7343 = vmatpush1.bf16.msra.mxu1 %v9918_v40 }
  0xee   :  { %7377 = vmatprep.subr.bf16.mxu1 %v9868_v45 }
 0x163   :  { %v277_v42 = vpop.f32.mrb[0].mxu1 }
 0x164   :  { %v279_v43 = vpop.f32.mrb[1].mxu1  ;;  %v9952_v48 = vadd.f32 %v277_v42, %v194_v63 }
 0x165   :  { %v483_v46 = vpop.f32.mrb[0].mxu0  ;;  %v9950_v2 = vadd.f32 %v279_v43, %v198_v61 }
 0x166   :  { %v485_v47 = vpop.f32.mrb[1].mxu0  ;;  %v559_v5 = vadd.f32 %v483_v46, %v9952_v48 }
 0x167   :  { %v560_v4 = vadd.f32 %v485_v47, %v9950_v2 }
 0x168   :  { %v7011_v11 = vmul.f32 -1.442695, %v559_v5 }
 0x169   :  { %v7012_v7 = vmul.f32 -1.442695, %v560_v4 }
 0x16b   :  { %9056 = vpow2.f32 %v7012_v7 }
 0x16c   :  { %9058 = vpow2.f32 %v7011_v11 }
 0x175   :  { %v9057_v16 = vpop.eup %9056 }
 0x176   :  { %v9059_v21 = vpop.eup %9058  ;;  %v573_v24 = vadd.f32 1.0, %v9057_v16 }
 0x177   :  { %v572_v28 = vadd.f32 1.0, %v9059_v21 }
 0x178   :  { %9060 = vrcp.f32 %v573_v24 }
 0x179   :  { %9062 = vrcp.f32 %v572_v28 }
 0x182   :  { %v9061_v46 = vpop.eup %9060 }
 0x183   :  { %v348_v58 = vpop.f32.mrb[2].mxu1  ;;  %v9063_v47 = vpop.eup %9062  ;;  %v582_v55 = vmul.f32 0.0, %v9061_v46  ;;  %v1085_v46 = vld [vmem:[#allocation9 + $0xc8] sm:$0xff] }
 0x184   :  { %v350_v62 = vpop.f32.mrb[3].mxu1  ;;  %v9962_v30 = vadd.f32 %v348_v58, %v202_v19 }
 0x185   :  { %v9964_v31 = vadd.f32 %v350_v62, %v206_v23 }
 0x1a3   :  { %v554_v32 = vpop.f32.mrb[4].mxu1 }
 0x1a4   :  { %v561_v37 = vadd.f32 %v554_v32, %v9962_v30  ;;  %v556_v38 = vpop.f32.mrb[5].mxu1 }
 0x1a5   :  { %v562_v42 = vadd.f32 %v556_v38, %v9964_v31  ;;  %v1076_v38 = vld [vmem:[#allocation9 + $0x80] sm:$0xff] }
 0x1a6   :  { %v7013_v43 = vmul.f32 -1.442695, %v561_v37 }
 0x1a7   :  { %9064 = vtanh.f32 %v562_v42  ;;  %v1080_v42 = vld [vmem:[#allocation9 + $0xa0] sm:$0xff] }
 0x1a8   :  { %9066 = vpow2.f32 %v7013_v43  ;;  %v10051_v43 = vpack.c.bf16 %v1080_v42, %v1076_v38 }
 0x1b1   :  { %v9065_v49 = vpop.eup %9064 }
 0x1b2   :  { %v9067_v50 = vpop.eup %9066  ;;  %v583_v58 = vmul.f32 %v9065_v49, %v9063_v47  ;;  %v1089_v47 = vld [vmem:[#allocation9 + $0xe8] sm:$0xff] }
 0x1b3   :  { %v574_v61 = vadd.f32 1.0, %v9067_v50  ;;  %v10055_v49 = vpack.c.bf16 %v1089_v47, %v1085_v46  ;;  %v1084_v50 = vld [vmem:[#allocation9 + $0xc0] sm:$0xff] }
 0x1b4   :  { %v9968_v62 = vadd.f32 %v583_v58, %v582_v55  ;;  %v1088_v55 = vld [vmem:[#allocation9 + $0xe0] sm:$0xff] }
 0x1b5   :  { %9068 = vrcp.f32 %v574_v61  ;;  %v10057_v58 = vpack.c.bf16 %v1088_v55, %v1084_v50  ;;  %v1093_v61 = vld [vmem:[#allocation9 + $0x108] sm:$0xff] }
 0x1b6   :  { %9070 = vtanh.f32 %v9968_v62 }
 0x1bf   :  { %v9069_v63 = vpop.eup %9068 }
 0x1c0   :  { %v9071_v4 = vpop.eup %9070 }
 0x1c1   :  { %v9971_v5 = vmul.f32 %v9071_v4, %v9069_v63  ;;  %v1092_v4 = vld [vmem:[#allocation9 + $0x100] sm:$0xff] }
 0x1c3   :  { %717 = vmatmul.mubr.f32.vlgmr.msra.gmra.mrb[2].mxu0 %v9971_v5  ;;  %788 = vmatmul.mubr.f32.vlgmr.msra.gmra.mrb[6].mxu1 %v9971_v5 }
 0x1c4   :  { %7347 = vmatpush1.bf16.msra.mxu0 %v9800_v13  ;;  %7379 = vmatpush1.bf16.msra.mxu1 %v9872_v51 }
 0x1c5   :  { %7349 = vmatprep.subr.bf16.mxu0 %v9804_v22  ;;  %7381 = vmatprep.subr.bf16.mxu1 %v9875_v53 }
 0x1c6   :  { %952 = vmatprep.mubr.f32.mxu0 %v9612_v0  ;;  %1023 = vmatprep.mubr.f32.mxu1 %v9612_v0 }
 0x1c8   :  { %7351 = vmatpush1.bf16.msra.mxu0 %v9806_v26  ;;  %7383 = vmatpush1.bf16.msra.mxu1 %v9881_v59 }
 0x1c9   :  { %7353 = vmatprep.subr.bf16.mxu0 %v9809_v35  ;;  %7385 = vmatprep.subr.bf16.mxu1 %v9885_v60 }
 0x1cc   :  { %7355 = vmatpush1.bf16.msra.mxu0 %v9812_v39  ;;  %7387 = vmatpush1.bf16.msra.mxu1 %v9888_v3 }
 0x1cd   :  { %7357 = vmatprep.subr.bf16.mxu0 %v9815_v44  ;;  %7389 = vmatprep.subr.bf16.mxu1 %v9891_v9 }
 0x1d0   :  { %7359 = vmatpush1.bf16.msra.mxu0 %v9818_v52  ;;  %7391 = vmatpush1.bf16.msra.mxu1 %v9894_v8 }
 0x1d1   :  { %7361 = vmatprep.subr.bf16.mxu0 %v9821_v57  ;;  %7393 = vmatprep.subr.bf16.mxu1 %v9897_v10 }
 0x1d4   :  { %7363 = vmatpush1.bf16.msra.mxu0 %v9824_v1  ;;  %7395 = vmatpush1.bf16.msra.mxu1 %v9900_v17 }
 0x1d5   :  { %7365 = vmatprep.subr.bf16.mxu0 %v9827_v6  ;;  %7397 = vmatprep.subr.bf16.mxu1 %v9903_v18 }
 0x1d8   :  { %7367 = vmatpush1.bf16.msra.mxu0 %v9830_v15  ;;  %7399 = vmatpush1.bf16.msra.mxu1 %v9906_v25 }
 0x1d9   :  { %7369 = vmatprep.subr.bf16.mxu0 %v9833_v20  ;;  %7401 = vmatprep.subr.bf16.mxu1 %v9909_v27 }
 0x1dc   :  { %7371 = vmatpush1.bf16.msra.mxu0 %v9836_v29  ;;  %7403 = vmatpush1.bf16.msra.mxu1 %v9912_v33 }
 0x1dd   :  { %7373 = vmatprep.subr.bf16.mxu0 %v9839_v34  ;;  %7405 = vmatprep.subr.bf16.mxu1 %v9915_v36 }
 0x1e0   :  { %7375 = vmatpush1.bf16.msra.mxu0 %v9842_v41  ;;  %7407 = vmatpush1.bf16.msra.mxu1 %v9918_v40 }
 0x1e1   :  { %7441 = vmatprep.subr.bf16.mxu1 %v9868_v45 }
 0x296   :  { %v718_v13 = vpop.f32.mrb[2].mxu0  ;;  %v789_v22 = vpop.f32.mrb[6].mxu1 }
 0x297   :  { %v794_v26 = vadd.f32 %v718_v13, %v9952_v48  ;;  %v720_v35 = vpop.f32.mrb[3].mxu0  ;;  %v791_v39 = vpop.f32.mrb[7].mxu1  ;;  %v796_v1 = vadd.f32 %v789_v22, %v9962_v30  ;;  %v1096_v13 = vld [vmem:[#allocation9 + $0x120] sm:$0xff] }
 0x298   :  { %v795_v44 = vadd.f32 %v720_v35, %v9950_v2  ;;  %v797_v6 = vadd.f32 %v791_v39, %v9964_v31  ;;  %v10063_v22 = vpack.c.bf16 %v1096_v13, %v1092_v4  ;;  %v1105_v35 = vld [vmem:[#allocation9 + $0x168] sm:$0xff] }
 0x299   :  { %v7014_v52 = vmul.f32 -1.442695, %v794_v26  ;;  %v7016_v15 = vmul.f32 -1.442695, %v796_v1  ;;  %v1101_v26 = vld [vmem:[#allocation9 + $0x148] sm:$0xff] }
 0x29a   :  { %v7015_v57 = vmul.f32 -1.442695, %v795_v44  ;;  %v10067_v39 = vpack.c.bf16 %v1105_v35, %v1101_v26  ;;  %v1100_v44 = vld [vmem:[#allocation9 + $0x140] sm:$0xff]  ;;  %v1109_v1 = vld [vmem:[#allocation9 + $0x188] sm:$0xff] }
 0x29b   :  { %9072 = vpow2.f32 %v7014_v52  ;;  %v1104_v52 = vld [vmem:[#allocation9 + $0x160] sm:$0xff] }
 0x29c   :  { %9074 = vpow2.f32 %v7015_v57  ;;  %v10069_v57 = vpack.c.bf16 %v1104_v52, %v1100_v44  ;;  %v1303_v44 = vld [vmem:[#allocation9 + $0x38] sm:$0xff] }
 0x29d   :  { %9076 = vtanh.f32 %v797_v6  ;;  %v1113_v6 = vld [vmem:[#allocation9 + $0x1a8] sm:$0xff] }
 0x29e   :  { %9078 = vpow2.f32 %v7016_v15  ;;  %v1108_v15 = vld [vmem:[#allocation9 + $0x180] sm:$0xff] }
 0x2a5   :  { %v9073_v20 = vpop.eup %9072 }
 0x2a6   :  { %v807_v29 = vadd.f32 1.0, %v9073_v20  ;;  %v9075_v34 = vpop.eup %9074  ;;  %v10072_v20 = vpack.c.bf16 %v1113_v6, %v1109_v1  ;;  %v1298_v1 = vld [vmem:[#allocation9 + $0x10] sm:$0xff] }
 0x2a7   :  { %v808_v41 = vadd.f32 1.0, %v9075_v34  ;;  %v9077_v45 = vpop.eup %9076  ;;  %v1117_v34 = vld [vmem:[#allocation9 + $0x1c8] sm:$0xff]  ;;  %v1302_v6 = vld [vmem:[#allocation9 + $0x30] sm:$0xff] }
 0x2a8   :  { %9080 = vrcp.f32 %v807_v29  ;;  %v9079_v7 = vpop.eup %9078  ;;  %v1112_v29 = vld [vmem:[#allocation9 + $0x1a0] sm:$0xff] }
 0x2a9   :  { %9082 = vrcp.f32 %v808_v41  ;;  %v809_v21 = vadd.f32 1.0, %v9079_v7  ;;  %v1121_v41 = vld [vmem:[#allocation9 + $0x1e8] sm:$0xff] }
 0x2aa   :  { %v10078_v7 = vpack.c.bf16 %v1121_v41, %v1117_v34  ;;  %v1311_v34 = vld [vmem:[#allocation9 + $0x78] sm:$0xff] }
 0x2ab   :  { %9084 = vrcp.f32 %v809_v21 }
 0x2b2   :  { %v9081_v11 = vpop.eup %9080 }
 0x2b3   :  { %v818_v16 = vmul.f32 %v9081_v11, %v9077_v45  ;;  %v9083_v19 = vpop.eup %9082  ;;  %v10075_v45 = vpack.c.bf16 %v1112_v29, %v1108_v15  ;;  %v1116_v11 = vld [vmem:[#allocation9 + $0x1c0] sm:$0xff]  ;;  %v10118_v15 = vpack.c.bf16 %v1302_v6, %v1298_v1  ;;  %v1307_v29 = vld [vmem:[#allocation9 + $0x58] sm:$0xff]  ;;  %v1346_v6 = vld [vmem:[#allocation9 + $0x190] sm:$0xff] }
 0x2b4   :  { %v817_v23 = vmul.f32 %v9083_v19, %v9968_v62  ;;  %v1097_v62 = vld [vmem:[#allocation9 + $0x128] sm:$0xff]  ;;  %v10122_v41 = vpack.c.bf16 %v1311_v34, %v1307_v29  ;;  %v1351_v1 = vld [vmem:[#allocation9 + $0x1b8] sm:$0xff]  ;;  %v1350_v34 = vld [vmem:[#allocation9 + $0x1b0] sm:$0xff] }
 0x2b5   :  { %v9085_v28 = vpop.eup %9084  ;;  %v10061_v63 = vpack.c.bf16 %v1097_v62, %v1093_v61 }
 0x2b6   :  { %v10013_v24 = vadd.f32 %v818_v16, %v817_v23  ;;  %v1120_v16 = vld [vmem:[#allocation9 + $0x1e0] sm:$0xff] }
 0x2b7   :  { %v10081_v19 = vpack.c.bf16 %v1120_v16, %v1116_v11  ;;  %v1306_v11 = vld [vmem:[#allocation9 + $0x50] sm:$0xff] }
 0x2b8   :  { %9086 = vtanh.f32 %v10013_v24  ;;  %v1310_v16 = vld [vmem:[#allocation9 + $0x70] sm:$0xff] }
 0x2c2   :  { %v9087_v32 = vpop.eup %9086 }
 0x2c3   :  { %v10016_v37 = vmul.f32 %v9087_v32, %v9085_v28 }
 0x2c5   :  { %953 = vmatmul.mubr.f32.vlgmr.msra.gmra.mrb[4].mxu0 %v10016_v37  ;;  %1024 = vmatmul.mubr.f32.vlgmr.msra.gmra.mrb[8].mxu1 %v10016_v37 }
 0x2c6   :  { %7443 = vmatpush1.bf16.msra.mxu1 %v9872_v51  ;;  %1188 = vmatprep.mubr.f32.mxu0 %v9612_v0  ;;  %v1061_v51 = vld [vmem:[#allocation9 + $0x8] sm:$0xff] }
 0x2c7   :  { %7445 = vmatprep.subr.bf16.mxu1 %v9875_v53  ;;  %1259 = vmatprep.mubr.f32.mxu1 %v9612_v0  ;;  %v1065_v53 = vld [vmem:[#allocation9 + $0x28] sm:$0xff] }
 0x2ca   :  { %7447 = vmatpush1.bf16.msra.mxu1 %v9881_v59  ;;  %v10037_v59 = vpack.c.bf16 %v1065_v53, %v1061_v51 }
 0x2cb   :  { %7449 = vmatprep.subr.bf16.mxu1 %v9885_v60  ;;  %v1060_v60 = vld [vmem:[#allocation9] sm:$0xff] }
 0x2cc   :  { %7409 = vmatprep.subr.bf16.mxu0 %v10037_v59 }
 0x2ce   :  { %7451 = vmatpush1.bf16.msra.mxu1 %v9888_v3  ;;  %v1064_v3 = vld [vmem:[#allocation9 + $0x20] sm:$0xff] }
 0x2cf   :  { %7453 = vmatprep.subr.bf16.mxu1 %v9891_v9  ;;  %v10039_v9 = vpack.c.bf16 %v1064_v3, %v1060_v60 }
 0x2d1   :  { %7411 = vmatpush1.bf16.msra.mxu0 %v10039_v9 }
 0x2d2   :  { %7455 = vmatpush1.bf16.msra.mxu1 %v9894_v8  ;;  %v1069_v8 = vld [vmem:[#allocation9 + $0x48] sm:$0xff] }
 0x2d3   :  { %7457 = vmatprep.subr.bf16.mxu1 %v9897_v10  ;;  %v1073_v10 = vld [vmem:[#allocation9 + $0x68] sm:$0xff] }
 0x2d6   :  { %7459 = vmatpush1.bf16.msra.mxu1 %v9900_v17  ;;  %v10043_v17 = vpack.c.bf16 %v1073_v10, %v1069_v8 }
 0x2d7   :  { %7461 = vmatprep.subr.bf16.mxu1 %v9903_v18  ;;  %v1068_v18 = vld [vmem:[#allocation9 + $0x40] sm:$0xff] }
 0x2d8   :  { %7413 = vmatprep.subr.bf16.mxu0 %v10043_v17 }
 0x2da   :  { %7463 = vmatpush1.bf16.msra.mxu1 %v9906_v25  ;;  %v1072_v25 = vld [vmem:[#allocation9 + $0x60] sm:$0xff] }
 0x2db   :  { %7465 = vmatprep.subr.bf16.mxu1 %v9909_v27  ;;  %v10045_v27 = vpack.c.bf16 %v1072_v25, %v1068_v18 }
 0x2dd   :  { %7415 = vmatpush1.bf16.msra.mxu0 %v10045_v27 }
 0x2de   :  { %7467 = vmatpush1.bf16.msra.mxu1 %v9912_v33  ;;  %v1077_v33 = vld [vmem:[#allocation9 + $0x88] sm:$0xff] }
 0x2df   :  { %7469 = vmatprep.subr.bf16.mxu1 %v9915_v36  ;;  %v1081_v36 = vld [vmem:[#allocation9 + $0xa8] sm:$0xff] }
 0x2e2   :  { %7471 = vmatpush1.bf16.msra.mxu1 %v9918_v40  ;;  %v10049_v40 = vpack.c.bf16 %v1081_v36, %v1077_v33 }
 0x2e4   :  { %7417 = vmatprep.subr.bf16.mxu0 %v10049_v40 }
 0x2e5   :  { %7419 = vmatpush1.bf16.msra.mxu0 %v10051_v43 }
 0x2e6   :  { %7421 = vmatprep.subr.bf16.mxu0 %v10055_v49 }
 0x2e9   :  { %7423 = vmatpush1.bf16.msra.mxu0 %v10057_v58 }
 0x2ea   :  { %7425 = vmatprep.subr.bf16.mxu0 %v10061_v63 }
 0x2ed   :  { %7427 = vmatpush1.bf16.msra.mxu0 %v10063_v22 }
 0x2ee   :  { %7429 = vmatprep.subr.bf16.mxu0 %v10067_v39 }
 0x2f1   :  { %7431 = vmatpush1.bf16.msra.mxu0 %v10069_v57 }
 0x2f2   :  { %7433 = vmatprep.subr.bf16.mxu0 %v10072_v20 }
 0x2f5   :  { %7435 = vmatpush1.bf16.msra.mxu0 %v10075_v45 }
 0x2f6   :  { %7437 = vmatprep.subr.bf16.mxu0 %v10078_v7 }
 0x2f9   :  { %7439 = vmatpush1.bf16.msra.mxu0 %v10081_v19 }
 0x2fa   :  { %7473 = vmatprep.subr.bf16.mxu0 %v10037_v59 }
 0x398   :  { %v954_v21 = vpop.f32.mrb[4].mxu0  ;;  %v1025_v23 = vpop.f32.mrb[8].mxu1 }
 0x399   :  { %v1030_v28 = vadd.f32 %v954_v21, %v9952_v48  ;;  %v956_v32 = vpop.f32.mrb[5].mxu0  ;;  %v1027_v51 = vpop.f32.mrb[9].mxu1  ;;  %v1032_v8 = vadd.f32 %v1025_v23, %v9962_v30  ;;  %v10124_v21 = vpack.c.bf16 %v1310_v16, %v1306_v11  ;;  %v1315_v23 = vld [vmem:[#allocation9 + $0x98] sm:$0xff] }
 0x39a   :  { %v1031_v53 = vadd.f32 %v956_v32, %v9950_v2  ;;  %v1033_v10 = vadd.f32 %v1027_v51, %v9964_v31  ;;  %v1314_v51 = vld [vmem:[#allocation9 + $0x90] sm:$0xff]  ;;  %v1355_v11 = vld [vmem:[#allocation9 + $0x1d8] sm:$0xff] }
 0x39b   :  { %v7017_v60 = vmul.f32 -1.442695, %v1030_v28  ;;  %v7019_v18 = vmul.f32 -1.442695, %v1032_v8  ;;  %v1319_v28 = vld [vmem:[#allocation9 + $0xb8] sm:$0xff] }
 0x39c   :  { %v7018_v3 = vmul.f32 -1.442695, %v1031_v53  ;;  %v10128_v32 = vpack.c.bf16 %v1319_v28, %v1315_v23  ;;  %v1318_v53 = vld [vmem:[#allocation9 + $0xb0] sm:$0xff]  ;;  %v1327_v8 = vld [vmem:[#allocation9 + $0xf8] sm:$0xff]  ;;  %v10154_v23 = vpack.c.bf16 %v1350_v34, %v1346_v6 }
 0x39d   :  { %9088 = vpow2.f32 %v7017_v60  ;;  %v10130_v60 = vpack.c.bf16 %v1318_v53, %v1314_v51  ;;  %v1359_v16 = vld [vmem:[#allocation9 + $0x1f8] sm:$0xff]  ;;  %v1354_v51 = vld [vmem:[#allocation9 + $0x1d0] sm:$0xff] }
 0x39e   :  { %9090 = vpow2.f32 %v7018_v3  ;;  %v1323_v3 = vld [vmem:[#allocation9 + $0xd8] sm:$0xff]  ;;  %v10157_v28 = vpack.c.bf16 %v1359_v16, %v1355_v11  ;;  %v1358_v53 = vld [vmem:[#allocation9 + $0x1f0] sm:$0xff] }
 0x39f   :  { %9092 = vtanh.f32 %v1033_v10  ;;  %v10134_v10 = vpack.c.bf16 %v1327_v8, %v1323_v3  ;;  %v10160_v3 = vpack.c.bf16 %v1358_v53, %v1354_v51 }
 0x3a0   :  { %9094 = vpow2.f32 %v7019_v18  ;;  %v1322_v18 = vld [vmem:[#allocation9 + $0xd0] sm:$0xff] }
 0x3a7   :  { %v9089_v25 = vpop.eup %9088 }
 0x3a8   :  { %v1043_v33 = vadd.f32 1.0, %v9089_v25  ;;  %v9091_v36 = vpop.eup %9090  ;;  %v1326_v25 = vld [vmem:[#allocation9 + $0xf0] sm:$0xff] }
 0x3a9   :  { %v1044_v38 = vadd.f32 1.0, %v9091_v36  ;;  %v9093_v42 = vpop.eup %9092  ;;  %v1331_v36 = vld [vmem:[#allocation9 + $0x118] sm:$0xff] }
 0x3aa   :  { %9096 = vrcp.f32 %v1043_v33  ;;  %v9095_v46 = vpop.eup %9094  ;;  %v10136_v33 = vpack.c.bf16 %v1326_v25, %v1322_v18 }
 0x3ab   :  { %9098 = vrcp.f32 %v1044_v38  ;;  %v1045_v61 = vadd.f32 1.0, %v9095_v46  ;;  %v1335_v38 = vld [vmem:[#allocation9 + $0x138] sm:$0xff]  ;;  %v1330_v46 = vld [vmem:[#allocation9 + $0x110] sm:$0xff] }
 0x3ad   :  { %9100 = vrcp.f32 %v1045_v61  ;;  %v1343_v61 = vld [vmem:[#allocation9 + $0x178] sm:$0xff] }
 0x3b4   :  { %v9097_v47 = vpop.eup %9096 }
 0x3b5   :  { %v1054_v50 = vmul.f32 %v9097_v47, %v9093_v42  ;;  %v9099_v55 = vpop.eup %9098  ;;  %v10140_v42 = vpack.c.bf16 %v1335_v38, %v1331_v36  ;;  %v1334_v47 = vld [vmem:[#allocation9 + $0x130] sm:$0xff] }
 0x3b6   :  { %v1053_v62 = vmul.f32 %v9099_v55, %v10013_v24  ;;  %v1299_v24 = vld [vmem:[#allocation9 + $0x18] sm:$0xff] }
 0x3b7   :  { %v9101_v13 = vpop.eup %9100  ;;  %v10116_v52 = vpack.c.bf16 %v1303_v44, %v1299_v24  ;;  %v1339_v55 = vld [vmem:[#allocation9 + $0x158] sm:$0xff] }
 0x3b8   :  { %v10091_v4 = vadd.f32 %v1054_v50, %v1053_v62  ;;  %v10142_v50 = vpack.c.bf16 %v1334_v47, %v1330_v46  ;;  %v10146_v62 = vpack.c.bf16 %v1343_v61, %v1339_v55  ;;  %v1347_v44 = vld [vmem:[#allocation9 + $0x198] sm:$0xff] }
 0x3b9   :  { %7505 = vmatprep.subr.bf16.mxu1 %v10116_v52  ;;  %v10151_v29 = vpack.c.bf16 %v1351_v1, %v1347_v44 }
 0x3ba   :  { %9102 = vtanh.f32 %v10091_v4 }
 0x3c4   :  { %v9103_v26 = vpop.eup %9102 }
 0x3c5   :  { %v10094_v35 = vmul.f32 %v9103_v26, %v9101_v13  ;;  %v1338_v13 = vld [vmem:[#allocation9 + $0x150] sm:$0xff] }
 0x3c6   :  { %v1342_v26 = vld [vmem:[#allocation9 + $0x170] sm:$0xff] }
 0x3c7   :  { %1189 = vmatmul.mubr.f32.vlgmr.msra.gmra.mrb[6].mxu0 %v10094_v35  ;;  %1260 = vmatmul.mubr.f32.vlgmr.msra.gmra.mrb[10].mxu1 %v10094_v35  ;;  %v10148_v24 = vpack.c.bf16 %v1342_v26, %v1338_v13 }
 0x3c8   :  { %7475 = vmatpush1.bf16.msra.mxu0 %v10039_v9  ;;  %1424 = vmatprep.mubr.f32.mxu0 %v9612_v0 }
 0x3c9   :  { %7477 = vmatprep.subr.bf16.mxu0 %v10043_v17  ;;  %1495 = vmatprep.mubr.f32.mxu1 %v9612_v0 }
 0x3ca   :  { %7507 = vmatpush1.bf16.msra.mxu1 %v10118_v15 }
 0x3cb   :  { %7509 = vmatprep.subr.bf16.mxu1 %v10122_v41 }
 0x3cc   :  { %7479 = vmatpush1.bf16.msra.mxu0 %v10045_v27 }
 0x3cd   :  { %7481 = vmatprep.subr.bf16.mxu0 %v10049_v40 }
 0x3ce   :  { %7511 = vmatpush1.bf16.msra.mxu1 %v10124_v21 }
 0x3cf   :  { %7513 = vmatprep.subr.bf16.mxu1 %v10128_v32 }
 0x3d0   :  { %7483 = vmatpush1.bf16.msra.mxu0 %v10051_v43 }
 0x3d1   :  { %7485 = vmatprep.subr.bf16.mxu0 %v10055_v49 }
 0x3d2   :  { %7515 = vmatpush1.bf16.msra.mxu1 %v10130_v60 }
 0x3d3   :  { %7517 = vmatprep.subr.bf16.mxu1 %v10134_v10 }
 0x3d4   :  { %7487 = vmatpush1.bf16.msra.mxu0 %v10057_v58 }
 0x3d5   :  { %7489 = vmatprep.subr.bf16.mxu0 %v10061_v63 }
 0x3d6   :  { %7519 = vmatpush1.bf16.msra.mxu1 %v10136_v33 }
 0x3d7   :  { %7521 = vmatprep.subr.bf16.mxu1 %v10140_v42 }
 0x3d8   :  { %7491 = vmatpush1.bf16.msra.mxu0 %v10063_v22 }
 0x3d9   :  { %7493 = vmatprep.subr.bf16.mxu0 %v10067_v39 }
 0x3da   :  { %7523 = vmatpush1.bf16.msra.mxu1 %v10142_v50 }
 0x3db   :  { %7525 = vmatprep.subr.bf16.mxu1 %v10146_v62 }
 0x3dc   :  { %7495 = vmatpush1.bf16.msra.mxu0 %v10069_v57 }
 0x3dd   :  { %7497 = vmatprep.subr.bf16.mxu0 %v10072_v20 }
 0x3de   :  { %7527 = vmatpush1.bf16.msra.mxu1 %v10148_v24 }
 0x3df   :  { %7529 = vmatprep.subr.bf16.mxu1 %v10151_v29 }
 0x3e0   :  { %7499 = vmatpush1.bf16.msra.mxu0 %v10075_v45 }
 0x3e1   :  { %7501 = vmatprep.subr.bf16.mxu0 %v10078_v7 }
 0x3e2   :  { %7531 = vmatpush1.bf16.msra.mxu1 %v10154_v23 }
 0x3e3   :  { %7533 = vmatprep.subr.bf16.mxu1 %v10157_v28 }
 0x3e4   :  { %7503 = vmatpush1.bf16.msra.mxu0 %v10081_v19 }
 0x3e5   :  { %7537 = vmatprep.subr.bf16.mxu0 %v10037_v59 }
 0x3e6   :  { %7535 = vmatpush1.bf16.msra.mxu1 %v10160_v3 }
 0x3e7   :  { %7569 = vmatprep.subr.bf16.mxu1 %v10116_v52 }
 0x49a   :  { %v1190_v8 = vpop.f32.mrb[6].mxu0  ;;  %v1261_v18 = vpop.f32.mrb[10].mxu1 }
 0x49b   :  { %v1266_v25 = vadd.f32 %v1190_v8, %v9952_v48  ;;  %v1192_v36 = vpop.f32.mrb[7].mxu0  ;;  %v1263_v38 = vpop.f32.mrb[11].mxu1  ;;  %v1268_v61 = vadd.f32 %v1261_v18, %v9962_v30 }
 0x49c   :  { %v1267_v46 = vadd.f32 %v1192_v36, %v9950_v2  ;;  %v1269_v13 = vadd.f32 %v1263_v38, %v9964_v31 }
 0x49d   :  { %v7020_v47 = vmul.f32 -1.442695, %v1266_v25  ;;  %v7022_v26 = vmul.f32 -1.442695, %v1268_v61 }
 0x49e   :  { %v7021_v55 = vmul.f32 -1.442695, %v1267_v46 }
 0x49f   :  { %9104 = vpow2.f32 %v7020_v47 }
 0x4a0   :  { %9106 = vpow2.f32 %v7021_v55 }
 0x4a1   :  { %9108 = vtanh.f32 %v1269_v13 }
 0x4a2   :  { %9110 = vpow2.f32 %v7022_v26 }
 0x4a9   :  { %v9105_v44 = vpop.eup %9104 }
 0x4aa   :  { %v1279_v1 = vadd.f32 1.0, %v9105_v44  ;;  %v9107_v6 = vpop.eup %9106 }
 0x4ab   :  { %v1280_v34 = vadd.f32 1.0, %v9107_v6  ;;  %v9109_v11 = vpop.eup %9108 }
 0x4ac   :  { %9112 = vrcp.f32 %v1279_v1  ;;  %v9111_v16 = vpop.eup %9110 }
 0x4ad   :  { %9114 = vrcp.f32 %v1280_v34  ;;  %v1281_v25 = vadd.f32 1.0, %v9111_v16 }
 0x4af   :  { %9116 = vrcp.f32 %v1281_v25 }
 0x4b6   :  { %v9113_v51 = vpop.eup %9112 }
 0x4b7   :  { %v1290_v53 = vmul.f32 %v9113_v51, %v9109_v11  ;;  %v9115_v8 = vpop.eup %9114 }
 0x4b8   :  { %v1289_v36 = vmul.f32 %v9115_v8, %v10091_v4 }
 0x4b9   :  { %v9117_v38 = vpop.eup %9116 }
 0x4ba   :  { %v10170_v18 = vadd.f32 %v1290_v53, %v1289_v36 }
 0x4bc   :  { %9118 = vtanh.f32 %v10170_v18 }
 0x4c6   :  { %v9119_v46 = vpop.eup %9118 }
 0x4c7   :  { %v10173_v47 = vmul.f32 %v9119_v46, %v9117_v38 }
 0x4c9   :  { %1425 = vmatmul.mubr.f32.vlgmr.msra.gmra.mrb[8].mxu0 %v10173_v47  ;;  %1496 = vmatmul.mubr.f32.vlgmr.msra.gmra.mrb[12].mxu1 %v10173_v47 }
 0x4ca   :  { %7539 = vmatpush1.bf16.msra.mxu0 %v10039_v9  ;;  %7571 = vmatpush1.bf16.msra.mxu1 %v10118_v15 }
 0x4cb   :  { %7541 = vmatprep.subr.bf16.mxu0 %v10043_v17  ;;  %7573 = vmatprep.subr.bf16.mxu1 %v10122_v41 }
 0x4cc   :  { %1660 = vmatprep.mubr.f32.mxu0 %v9612_v0  ;;  %1731 = vmatprep.mubr.f32.mxu1 %v9612_v0 }
 0x4ce   :  { %7543 = vmatpush1.bf16.msra.mxu0 %v10045_v27  ;;  %7575 = vmatpush1.bf16.msra.mxu1 %v10124_v21 }
 0x4cf   :  { %7545 = vmatprep.subr.bf16.mxu0 %v10049_v40  ;;  %7577 = vmatprep.subr.bf16.mxu1 %v10128_v32 }
 0x4d2   :  { %7547 = vmatpush1.bf16.msra.mxu0 %v10051_v43  ;;  %7579 = vmatpush1.bf16.msra.mxu1 %v10130_v60 }
 0x4d3   :  { %7549 = vmatprep.subr.bf16.mxu0 %v10055_v49  ;;  %7581 = vmatprep.subr.bf16.mxu1 %v10134_v10 }
 0x4d6   :  { %7551 = vmatpush1.bf16.msra.mxu0 %v10057_v58  ;;  %7583 = vmatpush1.bf16.msra.mxu1 %v10136_v33 }
 0x4d7   :  { %7553 = vmatprep.subr.bf16.mxu0 %v10061_v63  ;;  %7585 = vmatprep.subr.bf16.mxu1 %v10140_v42 }
 0x4da   :  { %7555 = vmatpush1.bf16.msra.mxu0 %v10063_v22  ;;  %7587 = vmatpush1.bf16.msra.mxu1 %v10142_v50 }
 0x4db   :  { %7557 = vmatprep.subr.bf16.mxu0 %v10067_v39  ;;  %7589 = vmatprep.subr.bf16.mxu1 %v10146_v62 }
 0x4de   :  { %7559 = vmatpush1.bf16.msra.mxu0 %v10069_v57  ;;  %7591 = vmatpush1.bf16.msra.mxu1 %v10148_v24 }
 0x4df   :  { %7561 = vmatprep.subr.bf16.mxu0 %v10072_v20  ;;  %7593 = vmatprep.subr.bf16.mxu1 %v10151_v29 }
 0x4e2   :  { %7563 = vmatpush1.bf16.msra.mxu0 %v10075_v45  ;;  %7595 = vmatpush1.bf16.msra.mxu1 %v10154_v23 }
 0x4e3   :  { %7565 = vmatprep.subr.bf16.mxu0 %v10078_v7  ;;  %7597 = vmatprep.subr.bf16.mxu1 %v10157_v28 }
 0x4e6   :  { %7567 = vmatpush1.bf16.msra.mxu0 %v10081_v19  ;;  %7599 = vmatpush1.bf16.msra.mxu1 %v10160_v3 }
 0x4e7   :  { %7601 = vmatprep.subr.bf16.mxu0 %v10037_v59  ;;  %7633 = vmatprep.subr.bf16.mxu1 %v10116_v52 }
 0x59c   :  { %v1426_v4 = vpop.f32.mrb[8].mxu0  ;;  %v1497_v55 = vpop.f32.mrb[12].mxu1 }
 0x59d   :  { %v1502_v61 = vadd.f32 %v1426_v4, %v9952_v48  ;;  %v1428_v13 = vpop.f32.mrb[9].mxu0  ;;  %v1499_v26 = vpop.f32.mrb[13].mxu1  ;;  %v1504_v34 = vadd.f32 %v1497_v55, %v9962_v30 }
 0x59e   :  { %v1503_v44 = vadd.f32 %v1428_v13, %v9950_v2  ;;  %v1505_v11 = vadd.f32 %v1499_v26, %v9964_v31 }
 0x59f   :  { %v7023_v1 = vmul.f32 -1.442695, %v1502_v61  ;;  %v7025_v16 = vmul.f32 -1.442695, %v1504_v34 }
 0x5a0   :  { %v7024_v6 = vmul.f32 -1.442695, %v1503_v44 }
 0x5a1   :  { %9120 = vpow2.f32 %v7023_v1 }
 0x5a2   :  { %9122 = vpow2.f32 %v7024_v6 }
 0x5a3   :  { %9124 = vtanh.f32 %v1505_v11 }
 0x5a4   :  { %9126 = vpow2.f32 %v7025_v16 }
 0x5ab   :  { %v9121_v59 = vpop.eup %9120 }
 0x5ac   :  { %v1515_v51 = vadd.f32 1.0, %v9121_v59  ;;  %v9123_v53 = vpop.eup %9122 }
 0x5ad   :  { %v1516_v8 = vadd.f32 1.0, %v9123_v53  ;;  %v9125_v25 = vpop.eup %9124 }
 0x5ae   :  { %9128 = vrcp.f32 %v1515_v51  ;;  %v9127_v36 = vpop.eup %9126 }
 0x5af   :  { %9130 = vrcp.f32 %v1516_v8  ;;  %v1517_v61 = vadd.f32 1.0, %v9127_v36 }
 0x5b1   :  { %9132 = vrcp.f32 %v1517_v61  ;;  %v2033_v61 = vld [vmem:[#allocation9 + $0xe8] sm:$0xff] }
 0x5b8   :  { %v9129_v38 = vpop.eup %9128 }
 0x5b9   :  { %v1526_v46 = vmul.f32 %v9129_v38, %v9125_v25  ;;  %v9131_v4 = vpop.eup %9130  ;;  %v2024_v38 = vld [vmem:[#allocation9 + $0xa0] sm:$0xff] }
 0x5ba   :  { %v1525_v13 = vmul.f32 %v9131_v4, %v10170_v18  ;;  %v2029_v4 = vld [vmem:[#allocation9 + $0xc8] sm:$0xff] }
 0x5bb   :  { %v9133_v26 = vpop.eup %9132 }
 0x5bc   :  { %v10216_v55 = vadd.f32 %v1526_v46, %v1525_v13  ;;  %v7676_v13 = vpack.c.bf16 %v2033_v61, %v2029_v4 }
 0x5be   :  { %9134 = vtanh.f32 %v10216_v55 }
 0x5c8   :  { %v9135_v44 = vpop.eup %9134 }
 0x5c9   :  { %v10219_v1 = vmul.f32 %v9135_v44, %v9133_v26  ;;  %v2032_v26 = vld [vmem:[#allocation9 + $0xe0] sm:$0xff] }
 0x5cb   :  { %1661 = vmatmul.mubr.f32.vlgmr.msra.gmra.mrb[10].mxu0 %v10219_v1  ;;  %1732 = vmatmul.mubr.f32.vlgmr.msra.gmra.mrb[14].mxu1 %v10219_v1 }
 0x5cc   :  { %7603 = vmatpush1.bf16.msra.mxu0 %v10039_v9  ;;  %7635 = vmatpush1.bf16.msra.mxu1 %v10118_v15 }
 0x5cd   :  { %7605 = vmatprep.subr.bf16.mxu0 %v10043_v17  ;;  %7637 = vmatprep.subr.bf16.mxu1 %v10122_v41 }
 0x5ce   :  { %1896 = vmatprep.mubr.f32.mxu0 %v9612_v0  ;;  %1967 = vmatprep.mubr.f32.mxu1 %v9612_v0 }
 0x5d0   :  { %7607 = vmatpush1.bf16.msra.mxu0 %v10045_v27  ;;  %7639 = vmatpush1.bf16.msra.mxu1 %v10124_v21 }
 0x5d1   :  { %7609 = vmatprep.subr.bf16.mxu0 %v10049_v40  ;;  %7641 = vmatprep.subr.bf16.mxu1 %v10128_v32 }
 0x5d4   :  { %7611 = vmatpush1.bf16.msra.mxu0 %v10051_v43  ;;  %7643 = vmatpush1.bf16.msra.mxu1 %v10130_v60 }
 0x5d5   :  { %7613 = vmatprep.subr.bf16.mxu0 %v10055_v49  ;;  %7645 = vmatprep.subr.bf16.mxu1 %v10134_v10 }
 0x5d8   :  { %7615 = vmatpush1.bf16.msra.mxu0 %v10057_v58  ;;  %7647 = vmatpush1.bf16.msra.mxu1 %v10136_v33 }
 0x5d9   :  { %7617 = vmatprep.subr.bf16.mxu0 %v10061_v63  ;;  %7649 = vmatprep.subr.bf16.mxu1 %v10140_v42 }
 0x5dc   :  { %7619 = vmatpush1.bf16.msra.mxu0 %v10063_v22  ;;  %7651 = vmatpush1.bf16.msra.mxu1 %v10142_v50 }
 0x5dd   :  { %7621 = vmatprep.subr.bf16.mxu0 %v10067_v39  ;;  %7653 = vmatprep.subr.bf16.mxu1 %v10146_v62 }
 0x5e0   :  { %7623 = vmatpush1.bf16.msra.mxu0 %v10069_v57  ;;  %7655 = vmatpush1.bf16.msra.mxu1 %v10148_v24 }
 0x5e1   :  { %7625 = vmatprep.subr.bf16.mxu0 %v10072_v20  ;;  %7657 = vmatprep.subr.bf16.mxu1 %v10151_v29 }
 0x5e4   :  { %7627 = vmatpush1.bf16.msra.mxu0 %v10075_v45  ;;  %7659 = vmatpush1.bf16.msra.mxu1 %v10154_v23 }
 0x5e5   :  { %7629 = vmatprep.subr.bf16.mxu0 %v10078_v7  ;;  %7661 = vmatprep.subr.bf16.mxu1 %v10157_v28 }
 0x5e8   :  { %7631 = vmatpush1.bf16.msra.mxu0 %v10081_v19  ;;  %7663 = vmatpush1.bf16.msra.mxu1 %v10160_v3 }
 0x5e9   :  { %7697 = vmatprep.subr.bf16.mxu1 %v10116_v52 }
 0x69e   :  { %v1662_v9 = vpop.f32.mrb[10].mxu0  ;;  %v1733_v17 = vpop.f32.mrb[14].mxu1 }
 0x69f   :  { %v1738_v27 = vadd.f32 %v1662_v9, %v9952_v48  ;;  %v1664_v40 = vpop.f32.mrb[11].mxu0  ;;  %v1735_v43 = vpop.f32.mrb[15].mxu1  ;;  %v1740_v22 = vadd.f32 %v1733_v17, %v9962_v30  ;;  %v2037_v9 = vld [vmem:[#allocation9 + $0x108] sm:$0xff] }
 0x6a0   :  { %v1739_v49 = vadd.f32 %v1664_v40, %v9950_v2  ;;  %v1741_v39 = vadd.f32 %v1735_v43, %v9964_v31  ;;  %v2041_v17 = vld [vmem:[#allocation9 + $0x128] sm:$0xff]  ;;  %v2036_v40 = vld [vmem:[#allocation9 + $0x100] sm:$0xff] }
 0x6a1   :  { %v7026_v58 = vmul.f32 -1.442695, %v1738_v27  ;;  %v7028_v57 = vmul.f32 -1.442695, %v1740_v22  ;;  %v7680_v27 = vpack.c.bf16 %v2041_v17, %v2037_v9  ;;  %v2040_v43 = vld [vmem:[#allocation9 + $0x120] sm:$0xff] }
 0x6a2   :  { %v7027_v63 = vmul.f32 -1.442695, %v1739_v49  ;;  %v7682_v49 = vpack.c.bf16 %v2040_v43, %v2036_v40 }
 0x6a3   :  { %9136 = vpow2.f32 %v7026_v58  ;;  %v2045_v58 = vld [vmem:[#allocation9 + $0x148] sm:$0xff] }
 0x6a4   :  { %9138 = vpow2.f32 %v7027_v63  ;;  %v2049_v63 = vld [vmem:[#allocation9 + $0x168] sm:$0xff] }
 0x6a5   :  { %9140 = vtanh.f32 %v1741_v39  ;;  %v7684_v22 = vpack.c.bf16 %v2049_v63, %v2045_v58  ;;  %v2044_v39 = vld [vmem:[#allocation9 + $0x140] sm:$0xff]  ;;  %v2250_v63 = vld [vmem:[#allocation11 + $0x10] sm:$0xff] }
 0x6a6   :  { %9142 = vpow2.f32 %v7028_v57  ;;  %v2048_v57 = vld [vmem:[#allocation9 + $0x160] sm:$0xff] }
 0x6a7   :  { %v2252_v58 = vld [vmem:[#allocation11 + $0x20] sm:$0xff] }
 0x6ad   :  { %v9137_v20 = vpop.eup %9136 }
 0x6ae   :  { %v1751_v45 = vadd.f32 1.0, %v9137_v20  ;;  %v9139_v7 = vpop.eup %9138  ;;  %v7686_v20 = vpack.c.bf16 %v2048_v57, %v2044_v39  ;;  %v2257_v39 = vld [vmem:[#allocation11 + $0x48] sm:$0xff] }
 0x6af   :  { %v1752_v19 = vadd.f32 1.0, %v9139_v7  ;;  %v9141_v52 = vpop.eup %9140  ;;  %v2057_v7 = vld [vmem:[#allocation9 + $0x1a8] sm:$0xff] }
 0x6b0   :  { %9144 = vrcp.f32 %v1751_v45  ;;  %v9143_v18 = vpop.eup %9142  ;;  %v2053_v45 = vld [vmem:[#allocation9 + $0x188] sm:$0xff] }
 0x6b1   :  { %9146 = vrcp.f32 %v1752_v19  ;;  %v1753_v16 = vadd.f32 1.0, %v9143_v18  ;;  %v2052_v19 = vld [vmem:[#allocation9 + $0x180] sm:$0xff]  ;;  %v2261_v57 = vld [vmem:[#allocation11 + $0x68] sm:$0xff] }
 0x6b2   :  { %v2056_v18 = vld [vmem:[#allocation9 + $0x1a0] sm:$0xff] }
 0x6b3   :  { %9148 = vrcp.f32 %v1753_v16 }
 0x6ba   :  { %v9145_v6 = vpop.eup %9144 }
 0x6bb   :  { %v1762_v34 = vmul.f32 %v9145_v6, %v9141_v52  ;;  %v9147_v11 = vpop.eup %9146  ;;  %v7688_v52 = vpack.c.bf16 %v2057_v7, %v2053_v45  ;;  %v2061_v6 = vld [vmem:[#allocation9 + $0x1c8] sm:$0xff]  ;;  %v2263_v45 = vld [vmem:[#allocation11 + $0x78] sm:$0xff] }
 0x6bc   :  { %v1761_v59 = vmul.f32 %v9147_v11, %v10216_v55  ;;  %v2028_v55 = vld [vmem:[#allocation9 + $0xc0] sm:$0xff]  ;;  %v7690_v11 = vpack.c.bf16 %v2056_v18, %v2052_v19 }
 0x6bd   :  { %v9149_v53 = vpop.eup %9148  ;;  %v7678_v44 = vpack.c.bf16 %v2032_v26, %v2028_v55 }
 0x6be   :  { %v10261_v51 = vadd.f32 %v1762_v34, %v1761_v59  ;;  %v2065_v34 = vld [vmem:[#allocation9 + $0x1e8] sm:$0xff]  ;;  %v2060_v59 = vld [vmem:[#allocation9 + $0x1c0] sm:$0xff] }
 0x6bf   :  { %v7692_v16 = vpack.c.bf16 %v2065_v34, %v2061_v6  ;;  %v2256_v6 = vld [vmem:[#allocation11 + $0x40] sm:$0xff] }
 0x6c0   :  { %9150 = vtanh.f32 %v10261_v51  ;;  %v2260_v34 = vld [vmem:[#allocation11 + $0x60] sm:$0xff] }
 0x6ca   :  { %v9151_v8 = vpop.eup %9150 }
 0x6cb   :  { %v10264_v25 = vmul.f32 %v9151_v8, %v9149_v53  ;;  %v2064_v53 = vld [vmem:[#allocation9 + $0x1e0] sm:$0xff]  ;;  %v2249_v8 = vld [vmem:[#allocation11 + $0x8] sm:$0xff] }
 0x6cd   :  { %1897 = vmatmul.mubr.f32.vlgmr.msra.gmra.mrb[12].mxu0 %v10264_v25  ;;  %1968 = vmatmul.mubr.f32.vlgmr.msra.gmra.mrb[16].mxu1 %v10264_v25 }
 0x6ce   :  { %7699 = vmatpush1.bf16.msra.mxu1 %v10118_v15  ;;  %2132 = vmatprep.mubr.f32.mxu0 %v9612_v0  ;;  %v2005_v15 = vld [vmem:[#allocation9 + $0x8] sm:$0xff] }
 0x6cf   :  { %7701 = vmatprep.subr.bf16.mxu1 %v10122_v41  ;;  %2203 = vmatprep.mubr.f32.mxu1 %v9612_v0  ;;  %v2009_v41 = vld [vmem:[#allocation9 + $0x28] sm:$0xff] }
 0x6d2   :  { %7703 = vmatpush1.bf16.msra.mxu1 %v10124_v21  ;;  %v7664_v21 = vpack.c.bf16 %v2009_v41, %v2005_v15  ;;  %v2253_v15 = vld [vmem:[#allocation11 + $0x28] sm:$0xff]  ;;  %v2251_v41 = vld [vmem:[#allocation11 + $0x18] sm:$0xff] }
 0x6d3   :  { %7705 = vmatprep.subr.bf16.mxu1 %v10128_v32  ;;  %v2004_v32 = vld [vmem:[#allocation9] sm:$0xff] }
 0x6d4   :  { %7665 = vmatprep.subr.bf16.mxu0 %v7664_v21  ;;  %v2255_v21 = vld [vmem:[#allocation11 + $0x38] sm:$0xff] }
 0x6d6   :  { %7707 = vmatpush1.bf16.msra.mxu1 %v10130_v60  ;;  %v2008_v60 = vld [vmem:[#allocation9 + $0x20] sm:$0xff] }
 0x6d7   :  { %7709 = vmatprep.subr.bf16.mxu1 %v10134_v10  ;;  %v7666_v10 = vpack.c.bf16 %v2008_v60, %v2004_v32  ;;  %v7760_v32 = vpack.c.bf16 %v2255_v21, %v2251_v41  ;;  %v7694_v60 = vpack.c.bf16 %v2064_v53, %v2060_v59  ;;  %v2258_v59 = vld [vmem:[#allocation11 + $0x50] sm:$0xff]  ;;  %v2267_v41 = vld [vmem:[#allocation11 + $0x98] sm:$0xff] }
 0x6d8   :  { %v2262_v53 = vld [vmem:[#allocation11 + $0x70] sm:$0xff]  ;;  %v2271_v21 = vld [vmem:[#allocation11 + $0xb8] sm:$0xff] }
 0x6d9   :  { %7667 = vmatpush1.bf16.msra.mxu0 %v7666_v10  ;;  %v7728_v10 = vpack.c.bf16 %v2253_v15, %v2249_v8  ;;  %v2265_v8 = vld [vmem:[#allocation11 + $0x88] sm:$0xff] }
 0x6da   :  { %7711 = vmatpush1.bf16.msra.mxu1 %v10136_v33  ;;  %v2013_v33 = vld [vmem:[#allocation9 + $0x48] sm:$0xff] }
 0x6db   :  { %7713 = vmatprep.subr.bf16.mxu1 %v10140_v42  ;;  %v2017_v42 = vld [vmem:[#allocation9 + $0x68] sm:$0xff] }
 0x6dc   :  { %v2269_v15 = vld [vmem:[#allocation11 + $0xa8] sm:$0xff] }
 0x6de   :  { %7715 = vmatpush1.bf16.msra.mxu1 %v10142_v50  ;;  %v7668_v50 = vpack.c.bf16 %v2017_v42, %v2013_v33 }
 0x6df   :  { %7717 = vmatprep.subr.bf16.mxu1 %v10146_v62  ;;  %v2012_v62 = vld [vmem:[#allocation9 + $0x40] sm:$0xff] }
 0x6e0   :  { %7669 = vmatprep.subr.bf16.mxu0 %v7668_v50 }
 0x6e2   :  { %7719 = vmatpush1.bf16.msra.mxu1 %v10148_v24  ;;  %v2016_v24 = vld [vmem:[#allocation9 + $0x60] sm:$0xff] }
 0x6e3   :  { %7721 = vmatprep.subr.bf16.mxu1 %v10151_v29  ;;  %v7670_v29 = vpack.c.bf16 %v2016_v24, %v2012_v62 }
 0x6e5   :  { %7671 = vmatpush1.bf16.msra.mxu0 %v7670_v29 }
 0x6e6   :  { %7723 = vmatpush1.bf16.msra.mxu1 %v10154_v23  ;;  %v2021_v23 = vld [vmem:[#allocation9 + $0x88] sm:$0xff] }
 0x6e7   :  { %7725 = vmatprep.subr.bf16.mxu1 %v10157_v28  ;;  %v2025_v28 = vld [vmem:[#allocation9 + $0xa8] sm:$0xff] }
 0x6e8   :  { %v7672_v36 = vpack.c.bf16 %v2025_v28, %v2021_v23 }
 0x6ea   :  { %7727 = vmatpush1.bf16.msra.mxu1 %v10160_v3  ;;  %v2020_v3 = vld [vmem:[#allocation9 + $0x80] sm:$0xff]  ;;  %7673 = vmatprep.subr.bf16.mxu0 %v7672_v36 }
 0x6eb   :  { %v7674_v46 = vpack.c.bf16 %v2024_v38, %v2020_v3  ;;  %7761 = vmatprep.subr.bf16.mxu1 %v7760_v32  ;;  %v7734_v32 = vpack.c.bf16 %v2260_v34, %v2256_v6  ;;  %v2288_v34 = vld [vmem:[#allocation11 + $0x140] sm:$0xff] }
 0x6ed   :  { %7675 = vmatpush1.bf16.msra.mxu0 %v7674_v46 }
 0x6ee   :  { %7677 = vmatprep.subr.bf16.mxu0 %v7676_v13 }
 0x6f1   :  { %7679 = vmatpush1.bf16.msra.mxu0 %v7678_v44 }
 0x6f2   :  { %7681 = vmatprep.subr.bf16.mxu0 %v7680_v27 }
 0x6f5   :  { %7683 = vmatpush1.bf16.msra.mxu0 %v7682_v49  ;;  %v2248_v49 = vld [vmem:[#allocation11] sm:$0xff] }
 0x6f6   :  { %7685 = vmatprep.subr.bf16.mxu0 %v7684_v22  ;;  %v2254_v22 = vld [vmem:[#allocation11 + $0x30] sm:$0xff] }
 0x6f7   :  { %v7762_v18 = vpack.c.bf16 %v2254_v22, %v2250_v63  ;;  %v2284_v63 = vld [vmem:[#allocation11 + $0x120] sm:$0xff] }
 0x6f9   :  { %7687 = vmatpush1.bf16.msra.mxu0 %v7686_v20  ;;  %v2259_v20 = vld [vmem:[#allocation11 + $0x58] sm:$0xff] }
 0x6fa   :  { %7689 = vmatprep.subr.bf16.mxu0 %v7688_v52  ;;  %v7730_v52 = vpack.c.bf16 %v2252_v58, %v2248_v49  ;;  %v2280_v58 = vld [vmem:[#allocation11 + $0x100] sm:$0xff] }
 0x6fd   :  { %7691 = vmatpush1.bf16.msra.mxu0 %v7690_v11  ;;  %v7732_v11 = vpack.c.bf16 %v2261_v57, %v2257_v39  ;;  %v2282_v57 = vld [vmem:[#allocation11 + $0x110] sm:$0xff] }
 0x6fe   :  { %7693 = vmatprep.subr.bf16.mxu0 %v7692_v16  ;;  %v7764_v16 = vpack.c.bf16 %v2263_v45, %v2259_v20  ;;  %v2286_v20 = vld [vmem:[#allocation11 + $0x130] sm:$0xff]  ;;  %v2289_v45 = vld [vmem:[#allocation11 + $0x148] sm:$0xff] }
 0x6ff   :  { %v7778_v6 = vpack.c.bf16 %v2286_v20, %v2282_v57  ;;  %v2610_v57 = vld [vmem:[#allocation12 + $0x58] sm:$0xff] }
 0x701   :  { %7695 = vmatpush1.bf16.msra.mxu0 %v7694_v60  ;;  %v7766_v60 = vpack.c.bf16 %v2262_v53, %v2258_v59  ;;  %v2290_v53 = vld [vmem:[#allocation11 + $0x150] sm:$0xff] }
 0x702   :  { %7729 = vmatprep.subr.bf16.mxu0 %v7728_v10  ;;  %v2264_v10 = vld [vmem:[#allocation11 + $0x80] sm:$0xff] }
 0x7a0   :  { %v1898_v33 = vpop.f32.mrb[12].mxu0  ;;  %v1969_v42 = vpop.f32.mrb[16].mxu1 }
 0x7a1   :  { %v1974_v50 = vadd.f32 %v1898_v33, %v9952_v48  ;;  %v1900_v62 = vpop.f32.mrb[13].mxu0  ;;  %v1971_v24 = vpop.f32.mrb[17].mxu1  ;;  %v1976_v36 = vadd.f32 %v1969_v42, %v9962_v30  ;;  %v2268_v33 = vld [vmem:[#allocation11 + $0xa0] sm:$0xff]  ;;  %v7736_v42 = vpack.c.bf16 %v2269_v15, %v2265_v8  ;;  %v2294_v8 = vld [vmem:[#allocation11 + $0x170] sm:$0xff]  ;;  %v2297_v15 = vld [vmem:[#allocation11 + $0x188] sm:$0xff] }
 0x7a2   :  { %v1975_v29 = vadd.f32 %v1900_v62, %v9950_v2  ;;  %v1977_v3 = vadd.f32 %v1971_v24, %v9964_v31  ;;  %v2266_v62 = vld [vmem:[#allocation11 + $0x90] sm:$0xff] }
 0x7a3   :  { %v7029_v23 = vmul.f32 -1.442695, %v1974_v50  ;;  %v7031_v38 = vmul.f32 -1.442695, %v1976_v36  ;;  %v7768_v50 = vpack.c.bf16 %v2271_v21, %v2267_v41  ;;  %v2270_v24 = vld [vmem:[#allocation11 + $0xb0] sm:$0xff]  ;;  %v2279_v36 = vld [vmem:[#allocation11 + $0xf8] sm:$0xff] }
 0x7a4   :  { %v7030_v28 = vmul.f32 -1.442695, %v1975_v29  ;;  %v2273_v29 = vld [vmem:[#allocation11 + $0xc8] sm:$0xff]  ;;  %v2299_v21 = vld [vmem:[#allocation11 + $0x198] sm:$0xff] }
 0x7a5   :  { %9152 = vpow2.f32 %v7029_v23  ;;  %v2277_v23 = vld [vmem:[#allocation11 + $0xe8] sm:$0xff] }
 0x7a6   :  { %9154 = vpow2.f32 %v7030_v28  ;;  %v2275_v28 = vld [vmem:[#allocation11 + $0xd8] sm:$0xff]  ;;  %v2301_v41 = vld [vmem:[#allocation11 + $0x1a8] sm:$0xff] }
 0x7a7   :  { %9156 = vtanh.f32 %v1977_v3  ;;  %v7738_v3 = vpack.c.bf16 %v2268_v33, %v2264_v10  ;;  %v7782_v10 = vpack.c.bf16 %v2294_v8, %v2290_v53  ;;  %v2296_v33 = vld [vmem:[#allocation11 + $0x180] sm:$0xff]  ;;  %v2618_v53 = vld [vmem:[#allocation12 + $0x98] sm:$0xff] }
 0x7a8   :  { %9158 = vpow2.f32 %v7031_v38  ;;  %v7770_v38 = vpack.c.bf16 %v2270_v24, %v2266_v62  ;;  %v2298_v24 = vld [vmem:[#allocation11 + $0x190] sm:$0xff] }
 0x7af   :  { %v9153_v46 = vpop.eup %9152 }
 0x7b0   :  { %v1987_v4 = vadd.f32 1.0, %v9153_v46  ;;  %v9155_v61 = vpop.eup %9154  ;;  %v2272_v46 = vld [vmem:[#allocation11 + $0xc0] sm:$0xff] }
 0x7b1   :  { %v1988_v13 = vadd.f32 1.0, %v9155_v61  ;;  %v9157_v55 = vpop.eup %9156  ;;  %v7740_v61 = vpack.c.bf16 %v2277_v23, %v2273_v29  ;;  %v2302_v29 = vld [vmem:[#allocation11 + $0x1b0] sm:$0xff]  ;;  %v2305_v23 = vld [vmem:[#allocation11 + $0x1c8] sm:$0xff] }
 0x7b2   :  { %9160 = vrcp.f32 %v1987_v4  ;;  %v9159_v26 = vpop.eup %9158  ;;  %v2276_v4 = vld [vmem:[#allocation11 + $0xe0] sm:$0xff] }
 0x7b3   :  { %9162 = vrcp.f32 %v1988_v13  ;;  %v1989_v27 = vadd.f32 1.0, %v9159_v26  ;;  %v7772_v13 = vpack.c.bf16 %v2279_v36, %v2275_v28  ;;  %v2278_v26 = vld [vmem:[#allocation11 + $0xf0] sm:$0xff]  ;;  %v2309_v28 = vld [vmem:[#allocation11 + $0x1e8] sm:$0xff]  ;;  %v2307_v36 = vld [vmem:[#allocation11 + $0x1d8] sm:$0xff] }
 0x7b5   :  { %9164 = vrcp.f32 %v1989_v27  ;;  %v2287_v27 = vld [vmem:[#allocation11 + $0x138] sm:$0xff] }
 0x7bc   :  { %v9161_v44 = vpop.eup %9160 }
 0x7bd   :  { %v1998_v9 = vmul.f32 %v9161_v44, %v9157_v55  ;;  %v9163_v17 = vpop.eup %9162  ;;  %v2274_v55 = vld [vmem:[#allocation11 + $0xd0] sm:$0xff]  ;;  %v2281_v44 = vld [vmem:[#allocation11 + $0x108] sm:$0xff] }
 0x7be   :  { %v1997_v40 = vmul.f32 %v9163_v17, %v10261_v51  ;;  %v2283_v17 = vld [vmem:[#allocation11 + $0x118] sm:$0xff]  ;;  %v7774_v49 = vpack.c.bf16 %v2278_v26, %v2274_v55  ;;  %v2308_v55 = vld [vmem:[#allocation11 + $0x1e0] sm:$0xff]  ;;  %v2306_v26 = vld [vmem:[#allocation11 + $0x1d0] sm:$0xff] }
 0x7bf   :  { %v9165_v7 = vpop.eup %9164  ;;  %v7776_v39 = vpack.c.bf16 %v2287_v27, %v2283_v17  ;;  %v2603_v27 = vld [vmem:[#allocation12 + $0x20] sm:$0xff] }
 0x7c0   :  { %v10290_v43 = vadd.f32 %v1998_v9, %v1997_v40  ;;  %v2285_v9 = vld [vmem:[#allocation11 + $0x128] sm:$0xff]  ;;  %v7742_v40 = vpack.c.bf16 %v2276_v4, %v2272_v46  ;;  %v7786_v46 = vpack.c.bf16 %v2302_v29, %v2298_v24  ;;  %v2304_v4 = vld [vmem:[#allocation11 + $0x1c0] sm:$0xff]  ;;  %v2626_v24 = vld [vmem:[#allocation12 + $0xd8] sm:$0xff] }
 0x7c1   :  { %v7744_v22 = vpack.c.bf16 %v2285_v9, %v2281_v44  ;;  %v2310_v44 = vld [vmem:[#allocation11 + $0x1f0] sm:$0xff]  ;;  %v7758_v9 = vpack.c.bf16 %v2308_v55, %v2304_v4  ;;  %v2636_v55 = vld [vmem:[#allocation12 + $0x128] sm:$0xff] }
 0x7c2   :  { %9166 = vtanh.f32 %v10290_v43  ;;  %v7790_v17 = vpack.c.bf16 %v2310_v44, %v2306_v26  ;;  %v2629_v4 = vld [vmem:[#allocation12 + $0xf0] sm:$0xff]  ;;  %v2634_v26 = vld [vmem:[#allocation12 + $0x118] sm:$0xff] }
 0x7cc   :  { %v9167_v19 = vpop.eup %9166 }
 0x7cd   :  { %v10293_v51 = vmul.f32 %v9167_v19, %v9165_v7  ;;  %v2293_v7 = vld [vmem:[#allocation11 + $0x168] sm:$0xff]  ;;  %v2291_v19 = vld [vmem:[#allocation11 + $0x158] sm:$0xff] }
 0x7cf   :  { %2133 = vmatmul.mubr.f32.vlgmr.msra.gmra.mrb[14].mxu0 %v10293_v51  ;;  %2204 = vmatmul.mubr.f32.vlgmr.msra.gmra.mrb[18].mxu1 %v10293_v51 }
 0x7d0   :  { %7731 = vmatpush1.bf16.msra.mxu0 %v7730_v52  ;;  %7763 = vmatpush1.bf16.msra.mxu1 %v7762_v18  ;;  %v2295_v52 = vld [vmem:[#allocation11 + $0x178] sm:$0xff]  ;;  %v7746_v18 = vpack.c.bf16 %v2284_v63, %v2280_v58  ;;  %v2601_v58 = vld [vmem:[#allocation12 + $0x10] sm:$0xff] }
 0x7d1   :  { %7733 = vmatprep.subr.bf16.mxu0 %v7732_v11  ;;  %7765 = vmatprep.subr.bf16.mxu1 %v7764_v16  ;;  %v2292_v11 = vld [vmem:[#allocation11 + $0x160] sm:$0xff]  ;;  %v7748_v16 = vpack.c.bf16 %v2293_v7, %v2289_v45  ;;  %v7780_v59 = vpack.c.bf16 %v2295_v52, %v2291_v19  ;;  %v2605_v63 = vld [vmem:[#allocation12 + $0x30] sm:$0xff]  ;;  %v2614_v19 = vld [vmem:[#allocation12 + $0x78] sm:$0xff] }
 0x7d2   :  { %2398 = vmatprep.mubr.f32.mxu0 %v9612_v0  ;;  %2511 = vmatprep.mubr.f32.mxu1 %v9612_v0  ;;  %v2607_v45 = vld [vmem:[#allocation12 + $0x40] sm:$0xff] }
 0x7d3   :  { %v2611_v7 = vld [vmem:[#allocation12 + $0x60] sm:$0xff] }
 0x7d4   :  { %7735 = vmatpush1.bf16.msra.mxu0 %v7734_v32  ;;  %7767 = vmatpush1.bf16.msra.mxu1 %v7766_v60  ;;  %v2303_v32 = vld [vmem:[#allocation11 + $0x1b8] sm:$0xff]  ;;  %v7750_v60 = vpack.c.bf16 %v2292_v11, %v2288_v34  ;;  %v10341_v52 = vpack.c.bf16 %v2611_v7, %v2607_v45  ;;  %v2613_v34 = vld [vmem:[#allocation12 + $0x70] sm:$0xff] }
 0x7d5   :  { %7737 = vmatprep.subr.bf16.mxu0 %v7736_v42  ;;  %7769 = vmatprep.subr.bf16.mxu1 %v7768_v50  ;;  %v2300_v42 = vld [vmem:[#allocation11 + $0x1a0] sm:$0xff]  ;;  %v7752_v50 = vpack.c.bf16 %v2301_v41, %v2297_v15  ;;  %v7784_v62 = vpack.c.bf16 %v2303_v32, %v2299_v21  ;;  %v2622_v21 = vld [vmem:[#allocation12 + $0xb8] sm:$0xff] }
 0x7d6   :  { %v2615_v15 = vld [vmem:[#allocation12 + $0x80] sm:$0xff]  ;;  %v2642_v7 = vld [vmem:[#allocation12 + $0x158] sm:$0xff] }
 0x7d7   :  { %v2619_v41 = vld [vmem:[#allocation12 + $0xa0] sm:$0xff] }
 0x7d8   :  { %7739 = vmatpush1.bf16.msra.mxu0 %v7738_v3  ;;  %7771 = vmatpush1.bf16.msra.mxu1 %v7770_v38  ;;  %v2311_v3 = vld [vmem:[#allocation11 + $0x1f8] sm:$0xff]  ;;  %v7754_v38 = vpack.c.bf16 %v2300_v42, %v2296_v33  ;;  %v10353_v32 = vpack.c.bf16 %v2619_v41, %v2615_v15  ;;  %v2621_v33 = vld [vmem:[#allocation12 + $0xb0] sm:$0xff] }
 0x7d9   :  { %7741 = vmatprep.subr.bf16.mxu0 %v7740_v61  ;;  %7773 = vmatprep.subr.bf16.mxu1 %v7772_v13  ;;  %v7756_v61 = vpack.c.bf16 %v2309_v28, %v2305_v23  ;;  %v7788_v13 = vpack.c.bf16 %v2311_v3, %v2307_v36  ;;  %v2623_v23 = vld [vmem:[#allocation12 + $0xc0] sm:$0xff]  ;;  %v2630_v36 = vld [vmem:[#allocation12 + $0xf8] sm:$0xff] }
 0x7da   :  { %v2627_v28 = vld [vmem:[#allocation12 + $0xe0] sm:$0xff] }
 0x7db   :  { %v10365_v3 = vpack.c.bf16 %v2627_v28, %v2623_v23 }
 0x7dc   :  { %7743 = vmatpush1.bf16.msra.mxu0 %v7742_v40  ;;  %7775 = vmatpush1.bf16.msra.mxu1 %v7774_v49 }
 0x7dd   :  { %7745 = vmatprep.subr.bf16.mxu0 %v7744_v22  ;;  %7777 = vmatprep.subr.bf16.mxu1 %v7776_v39  ;;  %v2608_v22 = vld [vmem:[#allocation12 + $0x48] sm:$0xff] }
 0x7de   :  { %v2612_v39 = vld [vmem:[#allocation12 + $0x68] sm:$0xff] }
 0x7df   :  { %v10339_v20 = vpack.c.bf16 %v2612_v39, %v2608_v22  ;;  %v2639_v22 = vld [vmem:[#allocation12 + $0x140] sm:$0xff] }
 0x7e0   :  { %7747 = vmatpush1.bf16.msra.mxu0 %v7746_v18  ;;  %7779 = vmatpush1.bf16.msra.mxu1 %v7778_v6  ;;  %v10343_v18 = vpack.c.bf16 %v2614_v19, %v2610_v57  ;;  %v2609_v6 = vld [vmem:[#allocation12 + $0x50] sm:$0xff]  ;;  %v2643_v39 = vld [vmem:[#allocation12 + $0x160] sm:$0xff]  ;;  %v2646_v19 = vld [vmem:[#allocation12 + $0x178] sm:$0xff] }
 0x7e1   :  { %7749 = vmatprep.subr.bf16.mxu0 %v7748_v16  ;;  %7781 = vmatprep.subr.bf16.mxu1 %v7780_v59  ;;  %v10346_v11 = vpack.c.bf16 %v2613_v34, %v2609_v6  ;;  %v2616_v16 = vld [vmem:[#allocation12 + $0x88] sm:$0xff]  ;;  %v10388_v45 = vpack.c.bf16 %v2643_v39, %v2639_v22  ;;  %v2641_v6 = vld [vmem:[#allocation12 + $0x150] sm:$0xff]  ;;  %v10391_v34 = vpack.c.bf16 %v2646_v19, %v2642_v7 }
 0x7e2   :  { %v2620_v59 = vld [vmem:[#allocation12 + $0xa8] sm:$0xff] }
 0x7e3   :  { %v10351_v8 = vpack.c.bf16 %v2620_v59, %v2616_v16  ;;  %v2645_v16 = vld [vmem:[#allocation12 + $0x170] sm:$0xff]  ;;  %v2648_v59 = vld [vmem:[#allocation12 + $0x188] sm:$0xff] }
 0x7e4   :  { %7751 = vmatpush1.bf16.msra.mxu0 %v7750_v60  ;;  %7783 = vmatpush1.bf16.msra.mxu1 %v7782_v10  ;;  %v10355_v60 = vpack.c.bf16 %v2622_v21, %v2618_v53  ;;  %v2617_v10 = vld [vmem:[#allocation12 + $0x90] sm:$0xff]  ;;  %v2652_v53 = vld [vmem:[#allocation12 + $0x1a8] sm:$0xff]  ;;  %v10394_v15 = vpack.c.bf16 %v2645_v16, %v2641_v6  ;;  %v2647_v21 = vld [vmem:[#allocation12 + $0x180] sm:$0xff] }
 0x7e5   :  { %7753 = vmatprep.subr.bf16.mxu0 %v7752_v50  ;;  %7785 = vmatprep.subr.bf16.mxu1 %v7784_v62  ;;  %v10358_v42 = vpack.c.bf16 %v2621_v33, %v2617_v10  ;;  %v2624_v50 = vld [vmem:[#allocation12 + $0xc8] sm:$0xff]  ;;  %v10396_v41 = vpack.c.bf16 %v2652_v53, %v2648_v59  ;;  %v2651_v10 = vld [vmem:[#allocation12 + $0x1a0] sm:$0xff]  ;;  %v2650_v33 = vld [vmem:[#allocation12 + $0x198] sm:$0xff] }
 0x7e6   :  { %v2628_v62 = vld [vmem:[#allocation12 + $0xe8] sm:$0xff]  ;;  %v10400_v23 = vpack.c.bf16 %v2651_v10, %v2647_v21 }
 0x7e7   :  { %v10363_v29 = vpack.c.bf16 %v2628_v62, %v2624_v50  ;;  %v2654_v50 = vld [vmem:[#allocation12 + $0x1b8] sm:$0xff]  ;;  %v2649_v62 = vld [vmem:[#allocation12 + $0x190] sm:$0xff] }
 0x7e8   :  { %7755 = vmatpush1.bf16.msra.mxu0 %v7754_v38  ;;  %7787 = vmatpush1.bf16.msra.mxu1 %v7786_v46  ;;  %v10367_v38 = vpack.c.bf16 %v2630_v36, %v2626_v24  ;;  %v2625_v46 = vld [vmem:[#allocation12 + $0xd0] sm:$0xff]  ;;  %v10402_v28 = vpack.c.bf16 %v2654_v50, %v2650_v33  ;;  %v2656_v36 = vld [vmem:[#allocation12 + $0x1c8] sm:$0xff] }
 0x7e9   :  { %7757 = vmatprep.subr.bf16.mxu0 %v7756_v61  ;;  %7789 = vmatprep.subr.bf16.mxu1 %v7788_v13  ;;  %v10370_v61 = vpack.c.bf16 %v2629_v4, %v2625_v46  ;;  %v2632_v13 = vld [vmem:[#allocation12 + $0x108] sm:$0xff]  ;;  %v2653_v24 = vld [vmem:[#allocation12 + $0x1b0] sm:$0xff] }
 0x7ea   :  { %v10375_v44 = vpack.c.bf16 %v2636_v55, %v2632_v13  ;;  %v2660_v46 = vld [vmem:[#allocation12 + $0x1e8] sm:$0xff]  ;;  %v10406_v4 = vpack.c.bf16 %v2653_v24, %v2649_v62  ;;  %v2658_v55 = vld [vmem:[#allocation12 + $0x1d8] sm:$0xff] }
 0x7eb   :  { %v10408_v13 = vpack.c.bf16 %v2660_v46, %v2656_v36 }
 0x7ec   :  { %7759 = vmatpush1.bf16.msra.mxu0 %v7758_v9  ;;  %7791 = vmatpush1.bf16.msra.mxu1 %v7790_v17  ;;  %v2631_v9 = vld [vmem:[#allocation12 + $0x100] sm:$0xff] }
 0x7ed   :  { %v2635_v17 = vld [vmem:[#allocation12 + $0x120] sm:$0xff] }
 0x7ef   :  { %2399 = vmatmul.mubr.f32.vlgmr.msra.gmra.mrb[16].mxu0 %v9971_v5  ;;  %2512 = vmatmul.mubr.f32.vlgmr.msra.gmra.mrb[20].mxu1 %v9971_v5  ;;  %v2600_v5 = vld [vmem:[#allocation12 + $0x8] sm:$0xff] }
 0x7f0   :  { %2404 = vmatprep.mubr.f32.mxu0 %v9612_v0  ;;  %2517 = vmatprep.mubr.f32.mxu1 %v9612_v0 }
 0x7f3   :  { %2405 = vmatmul.mubr.f32.gmra.mrb[18].mxu0 %v10016_v37  ;;  %2518 = vmatmul.mubr.f32.gmra.mrb[22].mxu1 %v10016_v37  ;;  %v2604_v37 = vld [vmem:[#allocation12 + $0x28] sm:$0xff] }
 0x7f4   :  { %2410 = vmatprep.mubr.f32.mxu0 %v9612_v0  ;;  %2523 = vmatprep.mubr.f32.mxu1 %v9612_v0 }
 0x7f7   :  { %2411 = vmatmul.mubr.f32.gmra.mrb[20].mxu0 %v10094_v35  ;;  %2524 = vmatmul.mubr.f32.gmra.mrb[24].mxu1 %v10094_v35  ;;  %v2602_v35 = vld [vmem:[#allocation12 + $0x18] sm:$0xff] }
 0x7f8   :  { %2416 = vmatprep.mubr.f32.mxu0 %v9612_v0  ;;  %2529 = vmatprep.mubr.f32.mxu1 %v9612_v0 }
 0x7fb   :  { %2417 = vmatmul.mubr.f32.gmra.mrb[22].mxu0 %v10173_v47  ;;  %2530 = vmatmul.mubr.f32.gmra.mrb[26].mxu1 %v10173_v47  ;;  %v10327_v47 = vpack.c.bf16 %v2604_v37, %v2600_v5  ;;  %v2638_v5 = vld [vmem:[#allocation12 + $0x138] sm:$0xff]  ;;  %v10377_v37 = vpack.c.bf16 %v2635_v17, %v2631_v9  ;;  %v2655_v9 = vld [vmem:[#allocation12 + $0x1c0] sm:$0xff] }
 0x7fc   :  { %2422 = vmatprep.mubr.f32.mxu0 %v9612_v0  ;;  %2535 = vmatprep.mubr.f32.mxu1 %v9612_v0  ;;  %v2659_v17 = vld [vmem:[#allocation12 + $0x1e0] sm:$0xff] }
 0x7fd   :  { %7793 = vmatprep.subr.bf16.mxu0 %v10327_v47 }
 0x7ff   :  { %2423 = vmatmul.mubr.f32.gmra.mrb[24].mxu0 %v10219_v1  ;;  %2536 = vmatmul.mubr.f32.gmra.mrb[28].mxu1 %v10219_v1  ;;  %v2599_v1 = vld [vmem:[#allocation12] sm:$0xff] }
 0x800   :  { %2428 = vmatprep.mubr.f32.mxu0 %v9612_v0  ;;  %2541 = vmatprep.mubr.f32.mxu1 %v9612_v0  ;;  %v10329_v40 = vpack.c.bf16 %v2603_v27, %v2599_v1  ;;  %v2633_v1 = vld [vmem:[#allocation12 + $0x110] sm:$0xff] }
 0x801   :  { %v2637_v27 = vld [vmem:[#allocation12 + $0x130] sm:$0xff] }
 0x802   :  { %7795 = vmatpush1.bf16.msra.mxu0 %v10329_v40 }
 0x803   :  { %2429 = vmatmul.mubr.f32.gmra.mrb[26].mxu0 %v10264_v25  ;;  %2542 = vmatmul.mubr.f32.gmra.mrb[30].mxu1 %v10264_v25  ;;  %v2606_v25 = vld [vmem:[#allocation12 + $0x38] sm:$0xff] }
 0x804   :  { %2434 = vmatprep.mubr.f32.mxu0 %v9612_v0  ;;  %2547 = vmatprep.mubr.f32.mxu1 %v9612_v0  ;;  %v10331_v49 = vpack.c.bf16 %v2606_v25, %v2602_v35  ;;  %v10379_v35 = vpack.c.bf16 %v2638_v5, %v2634_v26  ;;  %v2640_v25 = vld [vmem:[#allocation12 + $0x148] sm:$0xff]  ;;  %v2662_v26 = vld [vmem:[#allocation12 + $0x1f8] sm:$0xff] }
 0x805   :  { %7797 = vmatprep.subr.bf16.mxu0 %v10339_v20  ;;  %v10414_v5 = vpack.c.bf16 %v2662_v26, %v2658_v55 }
 0x806   :  { %7825 = vmatprep.subr.bf16.mxu1 %v10331_v49  ;;  %7799 = vmatpush1.bf16.msra.mxu0 %v10341_v52 }
 0x807   :  { %2435 = vmatmul.mubr.f32.gmra.mrb[28].mxu0 %v10293_v51  ;;  %2548 = vmatmul.mubr.f32.gmra.mrb[32].mxu1 %v10293_v51  ;;  %v10334_v51 = vpack.c.bf16 %v2605_v63, %v2601_v58  ;;  %v10382_v58 = vpack.c.bf16 %v2637_v27, %v2633_v1  ;;  %v2644_v63 = vld [vmem:[#allocation12 + $0x168] sm:$0xff]  ;;  %v2657_v1 = vld [vmem:[#allocation12 + $0x1d0] sm:$0xff]  ;;  %v10416_v27 = vpack.c.bf16 %v2659_v17, %v2655_v9 }
 0x808   :  { %2440 = vmatprep.mubr.f32.mxu0 %v9612_v0  ;;  %2553 = vmatprep.mubr.f32.mxu1 %v9612_v0  ;;  %v10386_v57 = vpack.c.bf16 %v2644_v63, %v2640_v25  ;;  %v2661_v25 = vld [vmem:[#allocation12 + $0x1f0] sm:$0xff] }
 0x809   :  { %7827 = vmatpush1.bf16.msra.mxu1 %v10334_v51  ;;  %7801 = vmatprep.subr.bf16.mxu0 %v10351_v8  ;;  %v10419_v63 = vpack.c.bf16 %v2661_v25, %v2657_v1 }
 0x80a   :  { %7829 = vmatprep.subr.bf16.mxu1 %v10343_v18  ;;  %7803 = vmatpush1.bf16.msra.mxu0 %v10353_v32 }
 0x80b   :  { %7805 = vmatprep.subr.bf16.mxu0 %v10363_v29 }
 0x80d   :  { %7831 = vmatpush1.bf16.msra.mxu1 %v10346_v11 }
 0x80e   :  { %7833 = vmatprep.subr.bf16.mxu1 %v10355_v60  ;;  %7807 = vmatpush1.bf16.msra.mxu0 %v10365_v3 }
 0x80f   :  { %7809 = vmatprep.subr.bf16.mxu0 %v10375_v44 }
 0x811   :  { %7835 = vmatpush1.bf16.msra.mxu1 %v10358_v42 }
 0x812   :  { %7837 = vmatprep.subr.bf16.mxu1 %v10367_v38  ;;  %7811 = vmatpush1.bf16.msra.mxu0 %v10377_v37 }
 0x813   :  { %7813 = vmatprep.subr.bf16.mxu0 %v10386_v57 }
 0x815   :  { %7839 = vmatpush1.bf16.msra.mxu1 %v10370_v61 }
 0x816   :  { %7841 = vmatprep.subr.bf16.mxu1 %v10379_v35  ;;  %7815 = vmatpush1.bf16.msra.mxu0 %v10388_v45 }
 0x817   :  { %7817 = vmatprep.subr.bf16.mxu0 %v10396_v41 }
 0x819   :  { %7843 = vmatpush1.bf16.msra.mxu1 %v10382_v58 }
 0x81a   :  { %7845 = vmatprep.subr.bf16.mxu1 %v10391_v34  ;;  %7819 = vmatpush1.bf16.msra.mxu0 %v10400_v23 }
 0x81b   :  { %7821 = vmatprep.subr.bf16.mxu0 %v10408_v13 }
 0x81d   :  { %7847 = vmatpush1.bf16.msra.mxu1 %v10394_v15 }
 0x81e   :  { %7849 = vmatprep.subr.bf16.mxu1 %v10402_v28  ;;  %7823 = vmatpush1.bf16.msra.mxu0 %v10416_v27 }
 0x81f   :  { %7857 = vmatprep.subr.bf16.mxu0 %v10327_v47 }
 0x821   :  { %7851 = vmatpush1.bf16.msra.mxu1 %v10406_v4 }
 0x822   :  { %7853 = vmatprep.subr.bf16.mxu1 %v10414_v5 }
 0x825   :  { %7855 = vmatpush1.bf16.msra.mxu1 %v10419_v63 }
 0x826   :  { %7889 = vmatprep.subr.bf16.mxu1 %v10331_v49 }
 0x8a2   :  { %v2134_v22 = vpop.f32.mrb[14].mxu0  ;;  %v2205_v39 = vpop.f32.mrb[18].mxu1 }
 0x8a3   :  { %v2210_v7 = vadd.f32 %v2134_v22, %v9952_v48  ;;  %v2136_v19 = vpop.f32.mrb[15].mxu0  ;;  %v2207_v6 = vpop.f32.mrb[19].mxu1  ;;  %v2212_v21 = vadd.f32 %v2205_v39, %v9962_v30 }
 0x8a4   :  { %v2211_v16 = vadd.f32 %v2136_v19, %v9950_v2  ;;  %v2213_v10 = vadd.f32 %v2207_v6, %v9964_v31 }
 0x8a5   :  { %v7032_v59 = vmul.f32 -1.442695, %v2210_v7  ;;  %v7034_v33 = vmul.f32 -1.442695, %v2212_v21 }
 0x8a6   :  { %v7033_v53 = vmul.f32 -1.442695, %v2211_v16 }
 0x8a7   :  { %9168 = vpow2.f32 %v7032_v59 }
 0x8a8   :  { %9170 = vpow2.f32 %v7033_v53 }
 0x8a9   :  { %9172 = vtanh.f32 %v2213_v10 }
 0x8aa   :  { %9174 = vpow2.f32 %v7034_v33 }
 0x8b1   :  { %v9169_v50 = vpop.eup %9168 }
 0x8b2   :  { %v2223_v62 = vadd.f32 1.0, %v9169_v50  ;;  %v9171_v24 = vpop.eup %9170 }
 0x8b3   :  { %v2224_v48 = vadd.f32 1.0, %v9171_v24  ;;  %v9173_v36 = vpop.eup %9172 }
 0x8b4   :  { %9176 = vrcp.f32 %v2223_v62  ;;  %v9175_v46 = vpop.eup %9174 }
 0x8b5   :  { %9178 = vrcp.f32 %v2224_v48  ;;  %v2225_v9 = vadd.f32 1.0, %v9175_v46 }
 0x8b7   :  { %9180 = vrcp.f32 %v2225_v9 }
 0x8be   :  { %v9177_v2 = vpop.eup %9176 }
 0x8bf   :  { %v2234_v55 = vmul.f32 %v9177_v2, %v9173_v36  ;;  %v9179_v26 = vpop.eup %9178 }
 0x8c0   :  { %v2233_v17 = vmul.f32 %v9179_v26, %v10290_v43  ;;  %v2312_v43 = vld [vmem:[%s11444_s6] sm:$0xf] }
 0x8c1   :  { %v9181_v31 = vpop.eup %9180  ;;  %v10472_v22 = vrot.slane %v2312_v43, %v9946_v56  ;;  %v10475_v39 = vrot.slane %v2312_v43, %v9941_v54  ;;  %v10480_v33 = vrot.slane %v2312_v43, %v9956_v12  ;;  %v10483_v50 = vrot.slane %v2312_v43, %v9958_v14 }
 0x8c2   :  { %v2235_v30 = vadd.f32 %v2234_v55, %v2233_v17 }
 0x8c4   :  { %9182 = vtanh.f32 %v2235_v30 }
 0x8ce   :  { %v9183_v1 = vpop.eup %9182 }
 0x8cf   :  { %v2237_v25 = vmul.f32 %v9183_v1, %v9181_v31 }
 0x8d1   :  { %2441 = vmatmul.mubr.f32.gmra.mrb[30].mxu0 %v2237_v25  ;;  %2554 = vmatmul.mubr.f32.gmra.mrb[34].mxu1 %v2237_v25 }
 0x8d2   :  { %2727 = vmatprep.mubr.f32.mxu0 %v9612_v0  ;;  %2798 = vmatprep.mubr.f32.mxu1 %v9612_v0 }
 0x8d5   :  { %2728 = vmatmul.mubr.f32.vlgmr.msra.gmra.mrb[16].mxu0 %v9612_v0  ;;  %2799 = vmatmul.mubr.f32.vlgmr.msra.gmra.mrb[20].mxu1 %v9612_v0 }
 0x8d6   :  { %7859 = vmatpush1.bf16.msra.mxu0 %v10329_v40  ;;  %7891 = vmatpush1.bf16.msra.mxu1 %v10334_v51 }
 0x8d7   :  { %7861 = vmatprep.subr.bf16.mxu0 %v10339_v20  ;;  %7893 = vmatprep.subr.bf16.mxu1 %v10343_v18 }
 0x8d8   :  { %2969 = vmatprep.mubr.f32.mxu0 %v9612_v0  ;;  %3040 = vmatprep.mubr.f32.mxu1 %v9612_v0 }
 0x8da   :  { %7863 = vmatpush1.bf16.msra.mxu0 %v10341_v52  ;;  %7895 = vmatpush1.bf16.msra.mxu1 %v10346_v11 }
 0x8db   :  { %7865 = vmatprep.subr.bf16.mxu0 %v10351_v8  ;;  %7897 = vmatprep.subr.bf16.mxu1 %v10355_v60 }
 0x8de   :  { %7867 = vmatpush1.bf16.msra.mxu0 %v10353_v32  ;;  %7899 = vmatpush1.bf16.msra.mxu1 %v10358_v42 }
 0x8df   :  { %7869 = vmatprep.subr.bf16.mxu0 %v10363_v29  ;;  %7901 = vmatprep.subr.bf16.mxu1 %v10367_v38 }
 0x8e2   :  { %7871 = vmatpush1.bf16.msra.mxu0 %v10365_v3  ;;  %7903 = vmatpush1.bf16.msra.mxu1 %v10370_v61 }
 0x8e3   :  { %7873 = vmatprep.subr.bf16.mxu0 %v10375_v44  ;;  %7905 = vmatprep.subr.bf16.mxu1 %v10379_v35 }
 0x8e6   :  { %7875 = vmatpush1.bf16.msra.mxu0 %v10377_v37  ;;  %7907 = vmatpush1.bf16.msra.mxu1 %v10382_v58 }
 0x8e7   :  { %7877 = vmatprep.subr.bf16.mxu0 %v10386_v57  ;;  %7909 = vmatprep.subr.bf16.mxu1 %v10391_v34 }
 0x8ea   :  { %7879 = vmatpush1.bf16.msra.mxu0 %v10388_v45  ;;  %7911 = vmatpush1.bf16.msra.mxu1 %v10394_v15 }
 0x8eb   :  { %7881 = vmatprep.subr.bf16.mxu0 %v10396_v41  ;;  %7913 = vmatprep.subr.bf16.mxu1 %v10402_v28 }
 0x8ee   :  { %7883 = vmatpush1.bf16.msra.mxu0 %v10400_v23  ;;  %7915 = vmatpush1.bf16.msra.mxu1 %v10406_v4 }
 0x8ef   :  { %7885 = vmatprep.subr.bf16.mxu0 %v10408_v13  ;;  %7917 = vmatprep.subr.bf16.mxu1 %v10414_v5 }
 0x8f2   :  { %7887 = vmatpush1.bf16.msra.mxu0 %v10416_v27  ;;  %7919 = vmatpush1.bf16.msra.mxu1 %v10419_v63 }
 0x8f3   :  { %7921 = vmatprep.subr.bf16.mxu0 %v10327_v47  ;;  %7953 = vmatprep.subr.bf16.mxu1 %v10331_v49 }
 0x9a8   :  { %v2729_v7 = vpop.f32.mrb[16].mxu0  ;;  %v2800_v19 = vpop.f32.mrb[20].mxu1 }
 0x9a9   :  { %v8912_v6 = vadd.f32 %v2729_v7, %v10472_v22  ;;  %v2731_v16 = vpop.f32.mrb[17].mxu0  ;;  %v2802_v59 = vpop.f32.mrb[21].mxu1  ;;  %v8928_v62 = vadd.f32 %v2800_v19, %v10480_v33 }
 0x9aa   :  { %v8913_v53 = vadd.f32 %v2731_v16, %v10475_v39  ;;  %v8929_v24 = vadd.f32 %v2802_v59, %v10483_v50 }
 0x9ab   :  { %v7035_v21 = vmul.f32 -1.442695, %v8912_v6  ;;  %v7037_v48 = vmul.f32 -1.442695, %v8928_v62 }
 0x9ac   :  { %v7036_v10 = vmul.f32 -1.442695, %v8913_v53 }
 0x9ad   :  { %9184 = vpow2.f32 %v7035_v21 }
 0x9ae   :  { %9186 = vpow2.f32 %v7036_v10 }
 0x9af   :  { %9188 = vtanh.f32 %v8929_v24 }
 0x9b0   :  { %9190 = vpow2.f32 %v7037_v48 }
 0x9b7   :  { %v9185_v36 = vpop.eup %9184 }
 0x9b8   :  { %v2818_v46 = vadd.f32 1.0, %v9185_v36  ;;  %v9187_v2 = vpop.eup %9186 }
 0x9b9   :  { %v2819_v55 = vadd.f32 1.0, %v9187_v2  ;;  %v9189_v26 = vpop.eup %9188 }
 0x9ba   :  { %9192 = vrcp.f32 %v2818_v46  ;;  %v9191_v9 = vpop.eup %9190 }
 0x9bb   :  { %9194 = vrcp.f32 %v2819_v55  ;;  %v2820_v1 = vadd.f32 1.0, %v9191_v9 }
 0x9bd   :  { %9196 = vrcp.f32 %v2820_v1 }
 0x9c4   :  { %v9193_v17 = vpop.eup %9192 }
 0x9c5   :  { %v2829_v30 = vmul.f32 %v9193_v17, %v9189_v26  ;;  %v9195_v31 = vpop.eup %9194 }
 0x9c6   :  { %v2828_v25 = vmul.f32 0.0, %v9195_v31 }
 0x9c7   :  { %v9197_v7 = vpop.eup %9196 }
 0x9c8   :  { %v10487_v43 = vadd.f32 %v2829_v30, %v2828_v25 }
 0x9ca   :  { %9198 = vtanh.f32 %v10487_v43 }
 0x9d4   :  { %v9199_v19 = vpop.eup %9198 }
 0x9d5   :  { %v10490_v6 = vmul.f32 %v9199_v19, %v9197_v7 }
 0x9d7   :  { %2970 = vmatmul.mubr.f32.vlgmr.msra.gmra.mrb[18].mxu0 %v10490_v6  ;;  %3041 = vmatmul.mubr.f32.vlgmr.msra.gmra.mrb[22].mxu1 %v10490_v6 }
 0x9d8   :  { %7923 = vmatpush1.bf16.msra.mxu0 %v10329_v40  ;;  %7955 = vmatpush1.bf16.msra.mxu1 %v10334_v51 }
 0x9d9   :  { %7925 = vmatprep.subr.bf16.mxu0 %v10339_v20  ;;  %7957 = vmatprep.subr.bf16.mxu1 %v10343_v18 }
 0x9da   :  { %3212 = vmatprep.mubr.f32.mxu0 %v9612_v0  ;;  %3283 = vmatprep.mubr.f32.mxu1 %v9612_v0 }
 0x9dc   :  { %7927 = vmatpush1.bf16.msra.mxu0 %v10341_v52  ;;  %7959 = vmatpush1.bf16.msra.mxu1 %v10346_v11 }
 0x9dd   :  { %7929 = vmatprep.subr.bf16.mxu0 %v10351_v8  ;;  %7961 = vmatprep.subr.bf16.mxu1 %v10355_v60 }
 0x9e0   :  { %7931 = vmatpush1.bf16.msra.mxu0 %v10353_v32  ;;  %7963 = vmatpush1.bf16.msra.mxu1 %v10358_v42 }
 0x9e1   :  { %7933 = vmatprep.subr.bf16.mxu0 %v10363_v29  ;;  %7965 = vmatprep.subr.bf16.mxu1 %v10367_v38 }
 0x9e4   :  { %7935 = vmatpush1.bf16.msra.mxu0 %v10365_v3  ;;  %7967 = vmatpush1.bf16.msra.mxu1 %v10370_v61 }
 0x9e5   :  { %7937 = vmatprep.subr.bf16.mxu0 %v10375_v44  ;;  %7969 = vmatprep.subr.bf16.mxu1 %v10379_v35 }
 0x9e8   :  { %7939 = vmatpush1.bf16.msra.mxu0 %v10377_v37  ;;  %7971 = vmatpush1.bf16.msra.mxu1 %v10382_v58 }
 0x9e9   :  { %7941 = vmatprep.subr.bf16.mxu0 %v10386_v57  ;;  %7973 = vmatprep.subr.bf16.mxu1 %v10391_v34 }
 0x9ec   :  { %7943 = vmatpush1.bf16.msra.mxu0 %v10388_v45  ;;  %7975 = vmatpush1.bf16.msra.mxu1 %v10394_v15 }
 0x9ed   :  { %7945 = vmatprep.subr.bf16.mxu0 %v10396_v41  ;;  %7977 = vmatprep.subr.bf16.mxu1 %v10402_v28 }
 0x9f0   :  { %7947 = vmatpush1.bf16.msra.mxu0 %v10400_v23  ;;  %7979 = vmatpush1.bf16.msra.mxu1 %v10406_v4 }
 0x9f1   :  { %7949 = vmatprep.subr.bf16.mxu0 %v10408_v13  ;;  %7981 = vmatprep.subr.bf16.mxu1 %v10414_v5 }
 0x9f4   :  { %7951 = vmatpush1.bf16.msra.mxu0 %v10416_v27  ;;  %7983 = vmatpush1.bf16.msra.mxu1 %v10419_v63 }
 0x9f5   :  { %7985 = vmatprep.subr.bf16.mxu0 %v10327_v47  ;;  %8017 = vmatprep.subr.bf16.mxu1 %v10331_v49 }
 0xaaa   :  { %v2971_v16 = vpop.f32.mrb[18].mxu0  ;;  %v3042_v59 = vpop.f32.mrb[22].mxu1 }
 0xaab   :  { %v8914_v53 = vadd.f32 %v2971_v16, %v10472_v22  ;;  %v2973_v21 = vpop.f32.mrb[19].mxu0  ;;  %v3044_v10 = vpop.f32.mrb[23].mxu1  ;;  %v8930_v36 = vadd.f32 %v3042_v59, %v10480_v33 }
 0xaac   :  { %v8915_v62 = vadd.f32 %v2973_v21, %v10475_v39  ;;  %v8931_v46 = vadd.f32 %v3044_v10, %v10483_v50  ;;  %v3570_v21 = vld [vmem:[#allocation12] sm:$0xff] }
 0xaad   :  { %v7038_v24 = vmul.f32 -1.442695, %v8914_v53  ;;  %v7040_v2 = vmul.f32 -1.442695, %v8930_v36  ;;  %v3574_v10 = vld [vmem:[#allocation12 + $0x20] sm:$0xff]  ;;  %v3576_v36 = vld [vmem:[#allocation12 + $0x30] sm:$0xff] }
 0xaae   :  { %v7039_v48 = vmul.f32 -1.442695, %v8915_v62 }
 0xaaf   :  { %9200 = vpow2.f32 %v7038_v24  ;;  %v10590_v24 = vpack.c.bf16 %v3574_v10, %v3570_v21 }
 0xab0   :  { %9202 = vpow2.f32 %v7039_v48  ;;  %v3572_v48 = vld [vmem:[#allocation12 + $0x10] sm:$0xff] }
 0xab1   :  { %9204 = vtanh.f32 %v8931_v46  ;;  %v10593_v46 = vpack.c.bf16 %v3576_v36, %v3572_v48  ;;  %v3604_v48 = vld [vmem:[#allocation12 + $0x110] sm:$0xff] }
 0xab2   :  { %9206 = vpow2.f32 %v7040_v2  ;;  %v3579_v2 = vld [vmem:[#allocation12 + $0x48] sm:$0xff]  ;;  %v3608_v36 = vld [vmem:[#allocation12 + $0x130] sm:$0xff] }
 0xab9   :  { %v9201_v47 = vpop.eup %9200 }
 0xaba   :  { %v3060_v55 = vadd.f32 1.0, %v9201_v47  ;;  %v9203_v49 = vpop.eup %9202  ;;  %v3583_v47 = vld [vmem:[#allocation12 + $0x68] sm:$0xff] }
 0xabb   :  { %v3061_v26 = vadd.f32 1.0, %v9203_v49  ;;  %v9205_v9 = vpop.eup %9204  ;;  %v10598_v49 = vpack.c.bf16 %v3583_v47, %v3579_v2  ;;  %v10641_v2 = vpack.c.bf16 %v3608_v36, %v3604_v48  ;;  %v3611_v47 = vld [vmem:[#allocation12 + $0x148] sm:$0xff]  ;;  %v3626_v48 = vld [vmem:[#allocation12 + $0x1c0] sm:$0xff] }
 0xabc   :  { %9208 = vrcp.f32 %v3060_v55  ;;  %v9207_v17 = vpop.eup %9206  ;;  %v3581_v55 = vld [vmem:[#allocation12 + $0x58] sm:$0xff] }
 0xabd   :  { %9210 = vrcp.f32 %v3061_v26  ;;  %v3062_v25 = vadd.f32 1.0, %v9207_v17  ;;  %v3585_v26 = vld [vmem:[#allocation12 + $0x78] sm:$0xff]  ;;  %v3582_v17 = vld [vmem:[#allocation12 + $0x60] sm:$0xff] }
 0xabf   :  { %9212 = vrcp.f32 %v3062_v25  ;;  %v3584_v25 = vld [vmem:[#allocation12 + $0x70] sm:$0xff] }
 0xac6   :  { %v9209_v30 = vpop.eup %9208 }
 0xac7   :  { %v3071_v31 = vmul.f32 %v9209_v30, %v9205_v9  ;;  %v9211_v1 = vpop.eup %9210  ;;  %v3578_v9 = vld [vmem:[#allocation12 + $0x40] sm:$0xff]  ;;  %v10600_v30 = vpack.c.bf16 %v3585_v26, %v3581_v55  ;;  %v3615_v55 = vld [vmem:[#allocation12 + $0x168] sm:$0xff]  ;;  %v3613_v26 = vld [vmem:[#allocation12 + $0x158] sm:$0xff] }
 0xac8   :  { %v3070_v7 = vmul.f32 %v9211_v1, %v10487_v43  ;;  %v3577_v43 = vld [vmem:[#allocation12 + $0x38] sm:$0xff]  ;;  %v3580_v1 = vld [vmem:[#allocation12 + $0x50] sm:$0xff] }
 0xac9   :  { %v9213_v16 = vpop.eup %9212 }
 0xaca   :  { %v10533_v19 = vadd.f32 %v3071_v31, %v3070_v7  ;;  %v10602_v31 = vpack.c.bf16 %v3582_v17, %v3578_v9  ;;  %v10605_v7 = vpack.c.bf16 %v3584_v25, %v3580_v1  ;;  %v10646_v9 = vpack.c.bf16 %v3615_v55, %v3611_v47  ;;  %v3617_v17 = vld [vmem:[#allocation12 + $0x178] sm:$0xff]  ;;  %v3610_v1 = vld [vmem:[#allocation12 + $0x140] sm:$0xff]  ;;  %v3628_v55 = vld [vmem:[#allocation12 + $0x1d0] sm:$0xff] }
 0xacb   :  { %v3614_v25 = vld [vmem:[#allocation12 + $0x160] sm:$0xff] }
 0xacc   :  { %9214 = vtanh.f32 %v10533_v19  ;;  %v3630_v47 = vld [vmem:[#allocation12 + $0x1e0] sm:$0xff] }
 0xad6   :  { %v9215_v59 = vpop.eup %9214 }
 0xad7   :  { %v10536_v53 = vmul.f32 %v9215_v59, %v9213_v16  ;;  %v3591_v16 = vld [vmem:[#allocation12 + $0xa8] sm:$0xff]  ;;  %v3589_v59 = vld [vmem:[#allocation12 + $0x98] sm:$0xff] }
 0xad9   :  { %3213 = vmatmul.mubr.f32.vlgmr.msra.gmra.mrb[20].mxu0 %v10536_v53  ;;  %3284 = vmatmul.mubr.f32.vlgmr.msra.gmra.mrb[24].mxu1 %v10536_v53 }
 0xada   :  { %7987 = vmatpush1.bf16.msra.mxu0 %v10329_v40  ;;  %8019 = vmatpush1.bf16.msra.mxu1 %v10334_v51 }
 0xadb   :  { %7989 = vmatprep.subr.bf16.mxu0 %v10339_v20  ;;  %8021 = vmatprep.subr.bf16.mxu1 %v10343_v18 }
 0xadc   :  { %3455 = vmatprep.mubr.f32.mxu0 %v9612_v0  ;;  %3526 = vmatprep.mubr.f32.mxu1 %v9612_v0 }
 0xade   :  { %7991 = vmatpush1.bf16.msra.mxu0 %v10341_v52  ;;  %8023 = vmatpush1.bf16.msra.mxu1 %v10346_v11 }
 0xadf   :  { %7993 = vmatprep.subr.bf16.mxu0 %v10351_v8  ;;  %8025 = vmatprep.subr.bf16.mxu1 %v10355_v60 }
 0xae2   :  { %7995 = vmatpush1.bf16.msra.mxu0 %v10353_v32  ;;  %8027 = vmatpush1.bf16.msra.mxu1 %v10358_v42 }
 0xae3   :  { %7997 = vmatprep.subr.bf16.mxu0 %v10363_v29  ;;  %8029 = vmatprep.subr.bf16.mxu1 %v10367_v38 }
 0xae6   :  { %7999 = vmatpush1.bf16.msra.mxu0 %v10365_v3  ;;  %8031 = vmatpush1.bf16.msra.mxu1 %v10370_v61 }
 0xae7   :  { %8001 = vmatprep.subr.bf16.mxu0 %v10375_v44  ;;  %8033 = vmatprep.subr.bf16.mxu1 %v10379_v35 }
 0xaea   :  { %8003 = vmatpush1.bf16.msra.mxu0 %v10377_v37  ;;  %8035 = vmatpush1.bf16.msra.mxu1 %v10382_v58 }
 0xaeb   :  { %8005 = vmatprep.subr.bf16.mxu0 %v10386_v57  ;;  %8037 = vmatprep.subr.bf16.mxu1 %v10391_v34 }
 0xaee   :  { %8007 = vmatpush1.bf16.msra.mxu0 %v10388_v45  ;;  %8039 = vmatpush1.bf16.msra.mxu1 %v10394_v15 }
 0xaef   :  { %8009 = vmatprep.subr.bf16.mxu0 %v10396_v41  ;;  %8041 = vmatprep.subr.bf16.mxu1 %v10402_v28 }
 0xaf2   :  { %8011 = vmatpush1.bf16.msra.mxu0 %v10400_v23  ;;  %8043 = vmatpush1.bf16.msra.mxu1 %v10406_v4 }
 0xaf3   :  { %8013 = vmatprep.subr.bf16.mxu0 %v10408_v13  ;;  %8045 = vmatprep.subr.bf16.mxu1 %v10414_v5  ;;  %v3571_v13 = vld [vmem:[#allocation12 + $0x8] sm:$0xff] }
 0xaf4   :  { %v3575_v5 = vld [vmem:[#allocation12 + $0x28] sm:$0xff] }
 0xaf6   :  { %8015 = vmatpush1.bf16.msra.mxu0 %v10416_v27  ;;  %8047 = vmatpush1.bf16.msra.mxu1 %v10419_v63  ;;  %v3573_v27 = vld [vmem:[#allocation12 + $0x18] sm:$0xff]  ;;  %v10586_v63 = vpack.c.bf16 %v3575_v5, %v3571_v13 }
 0xaf7   :  { %v10588_v62 = vpack.c.bf16 %v3577_v43, %v3573_v27  ;;  %v3609_v5 = vld [vmem:[#allocation12 + $0x138] sm:$0xff]  ;;  %v3602_v27 = vld [vmem:[#allocation12 + $0x100] sm:$0xff] }
 0xaf8   :  { %8049 = vmatprep.subr.bf16.mxu0 %v10586_v63  ;;  %v3606_v43 = vld [vmem:[#allocation12 + $0x120] sm:$0xff] }
 0xaf9   :  { %8081 = vmatprep.subr.bf16.mxu1 %v10588_v62  ;;  %v10638_v10 = vpack.c.bf16 %v3606_v43, %v3602_v27  ;;  %v3629_v27 = vld [vmem:[#allocation12 + $0x1d8] sm:$0xff] }
 0xafa   :  { %v3633_v43 = vld [vmem:[#allocation12 + $0x1f8] sm:$0xff] }
 0xafb   :  { %v10670_v36 = vpack.c.bf16 %v3633_v43, %v3629_v27 }
 0xbac   :  { %v3214_v40 = vpop.f32.mrb[20].mxu0  ;;  %v3285_v51 = vpop.f32.mrb[24].mxu1 }
 0xbad   :  { %v8916_v20 = vadd.f32 %v3214_v40, %v10472_v22  ;;  %v3216_v52 = vpop.f32.mrb[21].mxu0  ;;  %v3287_v18 = vpop.f32.mrb[25].mxu1  ;;  %v8932_v60 = vadd.f32 %v3285_v51, %v10480_v33  ;;  %v3593_v51 = vld [vmem:[#allocation12 + $0xb8] sm:$0xff] }
 0xbae   :  { %v8917_v11 = vadd.f32 %v3216_v52, %v10475_v39  ;;  %v8933_v42 = vadd.f32 %v3287_v18, %v10483_v50  ;;  %v3590_v52 = vld [vmem:[#allocation12 + $0xa0] sm:$0xff]  ;;  %v10612_v18 = vpack.c.bf16 %v3593_v51, %v3589_v59  ;;  %v3612_v59 = vld [vmem:[#allocation12 + $0x150] sm:$0xff] }
 0xbaf   :  { %v7041_v8 = vmul.f32 -1.442695, %v8916_v20  ;;  %v7043_v29 = vmul.f32 -1.442695, %v8932_v60  ;;  %v3586_v20 = vld [vmem:[#allocation12 + $0x80] sm:$0xff]  ;;  %v3616_v51 = vld [vmem:[#allocation12 + $0x170] sm:$0xff] }
 0xbb0   :  { %v7042_v32 = vmul.f32 -1.442695, %v8917_v11  ;;  %v10614_v11 = vpack.c.bf16 %v3590_v52, %v3586_v20  ;;  %v3619_v20 = vld [vmem:[#allocation12 + $0x188] sm:$0xff]  ;;  %v10653_v52 = vpack.c.bf16 %v3616_v51, %v3612_v59 }
 0xbb1   :  { %9216 = vpow2.f32 %v7041_v8  ;;  %v3588_v8 = vld [vmem:[#allocation12 + $0x90] sm:$0xff] }
 0xbb2   :  { %9218 = vpow2.f32 %v7042_v32  ;;  %v3592_v32 = vld [vmem:[#allocation12 + $0xb0] sm:$0xff] }
 0xbb3   :  { %9220 = vtanh.f32 %v8933_v42  ;;  %v10617_v60 = vpack.c.bf16 %v3592_v32, %v3588_v8  ;;  %v3595_v42 = vld [vmem:[#allocation12 + $0xc8] sm:$0xff]  ;;  %v3621_v32 = vld [vmem:[#allocation12 + $0x198] sm:$0xff] }
 0xbb4   :  { %9222 = vpow2.f32 %v7043_v29  ;;  %v3599_v29 = vld [vmem:[#allocation12 + $0xe8] sm:$0xff] }
 0xbb5   :  { %v3623_v8 = vld [vmem:[#allocation12 + $0x1a8] sm:$0xff] }
 0xbbb   :  { %v9217_v3 = vpop.eup %9216 }
 0xbbc   :  { %v3303_v38 = vadd.f32 1.0, %v9217_v3  ;;  %v9219_v61 = vpop.eup %9218  ;;  %v3597_v3 = vld [vmem:[#allocation12 + $0xd8] sm:$0xff] }
 0xbbd   :  { %v3304_v44 = vadd.f32 1.0, %v9219_v61  ;;  %v9221_v37 = vpop.eup %9220  ;;  %v3601_v61 = vld [vmem:[#allocation12 + $0xf8] sm:$0xff] }
 0xbbe   :  { %9224 = vrcp.f32 %v3303_v38  ;;  %v9223_v35 = vpop.eup %9222  ;;  %v10622_v38 = vpack.c.bf16 %v3599_v29, %v3595_v42  ;;  %v3625_v42 = vld [vmem:[#allocation12 + $0x1b8] sm:$0xff]  ;;  %v10657_v29 = vpack.c.bf16 %v3623_v8, %v3619_v20 }
 0xbbf   :  { %9226 = vrcp.f32 %v3304_v44  ;;  %v3305_v34 = vadd.f32 1.0, %v9223_v35  ;;  %v3594_v44 = vld [vmem:[#allocation12 + $0xc0] sm:$0xff]  ;;  %v10624_v35 = vpack.c.bf16 %v3601_v61, %v3597_v3  ;;  %v10659_v3 = vpack.c.bf16 %v3625_v42, %v3621_v32 }
 0xbc0   :  { %v3618_v61 = vld [vmem:[#allocation12 + $0x180] sm:$0xff] }
 0xbc1   :  { %9228 = vrcp.f32 %v3305_v34 }
 0xbc8   :  { %v9225_v58 = vpop.eup %9224 }
 0xbc9   :  { %v3314_v57 = vmul.f32 %v9225_v58, %v9221_v37  ;;  %v9227_v45 = vpop.eup %9226  ;;  %v3598_v37 = vld [vmem:[#allocation12 + $0xe0] sm:$0xff] }
 0xbca   :  { %v3313_v15 = vmul.f32 %v9227_v45, %v10533_v19  ;;  %v3587_v19 = vld [vmem:[#allocation12 + $0x88] sm:$0xff]  ;;  %v10626_v58 = vpack.c.bf16 %v3598_v37, %v3594_v44  ;;  %v3600_v45 = vld [vmem:[#allocation12 + $0xf0] sm:$0xff]  ;;  %v3622_v44 = vld [vmem:[#allocation12 + $0x1a0] sm:$0xff] }
 0xbcb   :  { %v9229_v23 = vpop.eup %9228  ;;  %v10610_v40 = vpack.c.bf16 %v3591_v16, %v3587_v19  ;;  %v10648_v19 = vpack.c.bf16 %v3617_v17, %v3613_v26  ;;  %v10650_v16 = vpack.c.bf16 %v3614_v25, %v3610_v1  ;;  %v3620_v37 = vld [vmem:[#allocation12 + $0x190] sm:$0xff]  ;;  %v10673_v17 = vpack.c.bf16 %v3630_v47, %v3626_v48 }
 0xbcc   :  { %v10577_v41 = vadd.f32 %v3314_v57, %v3313_v15  ;;  %v3596_v57 = vld [vmem:[#allocation12 + $0xd0] sm:$0xff]  ;;  %v3603_v15 = vld [vmem:[#allocation12 + $0x108] sm:$0xff] }
 0xbcd   :  { %v10629_v34 = vpack.c.bf16 %v3600_v45, %v3596_v57  ;;  %v10662_v57 = vpack.c.bf16 %v3622_v44, %v3618_v61  ;;  %v3624_v45 = vld [vmem:[#allocation12 + $0x1b0] sm:$0xff] }
 0xbce   :  { %9230 = vtanh.f32 %v10577_v41  ;;  %v3632_v26 = vld [vmem:[#allocation12 + $0x1f0] sm:$0xff] }
 0xbcf   :  { %v10677_v1 = vpack.c.bf16 %v3632_v26, %v3628_v55 }
 0xbd8   :  { %v9231_v28 = vpop.eup %9230 }
 0xbd9   :  { %v10580_v4 = vmul.f32 %v9231_v28, %v9229_v23  ;;  %v3607_v23 = vld [vmem:[#allocation12 + $0x128] sm:$0xff]  ;;  %v3605_v28 = vld [vmem:[#allocation12 + $0x118] sm:$0xff] }
 0xbda   :  { %v10634_v13 = vpack.c.bf16 %v3607_v23, %v3603_v15  ;;  %v10636_v21 = vpack.c.bf16 %v3609_v5, %v3605_v28  ;;  %v3627_v15 = vld [vmem:[#allocation12 + $0x1c8] sm:$0xff]  ;;  %v10666_v28 = vpack.c.bf16 %v3624_v45, %v3620_v37 }
 0xbdb   :  { %3456 = vmatmul.mubr.f32.vlgmr.msra.gmra.mrb[22].mxu0 %v10580_v4  ;;  %3527 = vmatmul.mubr.f32.vlgmr.msra.gmra.mrb[26].mxu1 %v10580_v4  ;;  %v3631_v23 = vld [vmem:[#allocation12 + $0x1e8] sm:$0xff] }
 0xbdc   :  { %3698 = vmatprep.mubr.f32.mxu0 %v9612_v0  ;;  %3769 = vmatprep.mubr.f32.mxu1 %v9612_v0  ;;  %v10668_v5 = vpack.c.bf16 %v3631_v23, %v3627_v15 }
 0xbdd   :  { %8051 = vmatpush1.bf16.msra.mxu0 %v10590_v24  ;;  %8083 = vmatpush1.bf16.msra.mxu1 %v10593_v46 }
 0xbde   :  { %8053 = vmatprep.subr.bf16.mxu0 %v10598_v49  ;;  %8085 = vmatprep.subr.bf16.mxu1 %v10600_v30 }
 0xbe1   :  { %8055 = vmatpush1.bf16.msra.mxu0 %v10602_v31  ;;  %8087 = vmatpush1.bf16.msra.mxu1 %v10605_v7 }
 0xbe2   :  { %8057 = vmatprep.subr.bf16.mxu0 %v10610_v40  ;;  %8089 = vmatprep.subr.bf16.mxu1 %v10612_v18 }
 0xbe5   :  { %8059 = vmatpush1.bf16.msra.mxu0 %v10614_v11  ;;  %8091 = vmatpush1.bf16.msra.mxu1 %v10617_v60 }
 0xbe6   :  { %8061 = vmatprep.subr.bf16.mxu0 %v10622_v38  ;;  %8093 = vmatprep.subr.bf16.mxu1 %v10624_v35 }
 0xbe9   :  { %8063 = vmatpush1.bf16.msra.mxu0 %v10626_v58  ;;  %8095 = vmatpush1.bf16.msra.mxu1 %v10629_v34 }
 0xbea   :  { %8065 = vmatprep.subr.bf16.mxu0 %v10634_v13  ;;  %8097 = vmatprep.subr.bf16.mxu1 %v10636_v21 }
 0xbed   :  { %8067 = vmatpush1.bf16.msra.mxu0 %v10638_v10  ;;  %8099 = vmatpush1.bf16.msra.mxu1 %v10641_v2 }
 0xbee   :  { %8069 = vmatprep.subr.bf16.mxu0 %v10646_v9  ;;  %8101 = vmatprep.subr.bf16.mxu1 %v10648_v19 }
 0xbf1   :  { %8071 = vmatpush1.bf16.msra.mxu0 %v10650_v16  ;;  %8103 = vmatpush1.bf16.msra.mxu1 %v10653_v52 }
 0xbf2   :  { %8073 = vmatprep.subr.bf16.mxu0 %v10657_v29  ;;  %8105 = vmatprep.subr.bf16.mxu1 %v10659_v3 }
 0xbf5   :  { %8075 = vmatpush1.bf16.msra.mxu0 %v10662_v57  ;;  %8107 = vmatpush1.bf16.msra.mxu1 %v10666_v28 }
 0xbf6   :  { %8077 = vmatprep.subr.bf16.mxu0 %v10668_v5  ;;  %8109 = vmatprep.subr.bf16.mxu1 %v10670_v36 }
 0xbf9   :  { %8079 = vmatpush1.bf16.msra.mxu0 %v10673_v17  ;;  %8111 = vmatpush1.bf16.msra.mxu1 %v10677_v1 }
 0xbfa   :  { %8113 = vmatprep.subr.bf16.mxu0 %v10586_v63  ;;  %8145 = vmatprep.subr.bf16.mxu1 %v10588_v62 }
 0xcae   :  { %v3457_v25 = vpop.f32.mrb[22].mxu0  ;;  %v3528_v59 = vpop.f32.mrb[26].mxu1 }
 0xcaf   :  { %v8918_v51 = vadd.f32 %v3457_v25, %v10472_v22  ;;  %v3459_v20 = vpop.f32.mrb[23].mxu0  ;;  %v3530_v8 = vpop.f32.mrb[27].mxu1  ;;  %v8934_v44 = vadd.f32 %v3528_v59, %v10480_v33 }
 0xcb0   :  { %v8919_v32 = vadd.f32 %v3459_v20, %v10475_v39  ;;  %v8935_v37 = vadd.f32 %v3530_v8, %v10483_v50 }
 0xcb1   :  { %v7044_v42 = vmul.f32 -1.442695, %v8918_v51  ;;  %v7046_v45 = vmul.f32 -1.442695, %v8934_v44 }
 0xcb2   :  { %v7045_v61 = vmul.f32 -1.442695, %v8919_v32 }
 0xcb3   :  { %9232 = vpow2.f32 %v7044_v42 }
 0xcb4   :  { %9234 = vpow2.f32 %v7045_v61 }
 0xcb5   :  { %9236 = vtanh.f32 %v8935_v37 }
 0xcb6   :  { %9238 = vpow2.f32 %v7046_v45 }
 0xcbd   :  { %v9233_v15 = vpop.eup %9232 }
 0xcbe   :  { %v3546_v23 = vadd.f32 1.0, %v9233_v15  ;;  %v9235_v27 = vpop.eup %9234 }
 0xcbf   :  { %v3547_v43 = vadd.f32 1.0, %v9235_v27  ;;  %v9237_v48 = vpop.eup %9236 }
 0xcc0   :  { %9240 = vrcp.f32 %v3546_v23  ;;  %v9239_v47 = vpop.eup %9238 }
 0xcc1   :  { %9242 = vrcp.f32 %v3547_v43  ;;  %v3548_v51 = vadd.f32 1.0, %v9239_v47 }
 0xcc3   :  { %9244 = vrcp.f32 %v3548_v51 }
 0xcca   :  { %v9241_v55 = vpop.eup %9240 }
 0xccb   :  { %v3557_v26 = vmul.f32 %v9241_v55, %v9237_v48  ;;  %v9243_v25 = vpop.eup %9242 }
 0xccc   :  { %v3556_v20 = vmul.f32 %v9243_v25, %v10577_v41 }
 0xccd   :  { %v9245_v8 = vpop.eup %9244 }
 0xcce   :  { %v10689_v59 = vadd.f32 %v3557_v26, %v3556_v20 }
 0xcd0   :  { %9246 = vtanh.f32 %v10689_v59 }
 0xcda   :  { %v9247_v32 = vpop.eup %9246 }
 0xcdb   :  { %v10692_v42 = vmul.f32 %v9247_v32, %v9245_v8 }
 0xcdd   :  { %3699 = vmatmul.mubr.f32.vlgmr.msra.gmra.mrb[24].mxu0 %v10692_v42  ;;  %3770 = vmatmul.mubr.f32.vlgmr.msra.gmra.mrb[28].mxu1 %v10692_v42 }
 0xcde   :  { %8115 = vmatpush1.bf16.msra.mxu0 %v10590_v24  ;;  %8147 = vmatpush1.bf16.msra.mxu1 %v10593_v46 }
 0xcdf   :  { %8117 = vmatprep.subr.bf16.mxu0 %v10598_v49  ;;  %8149 = vmatprep.subr.bf16.mxu1 %v10600_v30 }
 0xce0   :  { %3941 = vmatprep.mubr.f32.mxu0 %v9612_v0  ;;  %4012 = vmatprep.mubr.f32.mxu1 %v9612_v0 }
 0xce2   :  { %8119 = vmatpush1.bf16.msra.mxu0 %v10602_v31  ;;  %8151 = vmatpush1.bf16.msra.mxu1 %v10605_v7 }
 0xce3   :  { %8121 = vmatprep.subr.bf16.mxu0 %v10610_v40  ;;  %8153 = vmatprep.subr.bf16.mxu1 %v10612_v18 }
 0xce6   :  { %8123 = vmatpush1.bf16.msra.mxu0 %v10614_v11  ;;  %8155 = vmatpush1.bf16.msra.mxu1 %v10617_v60 }
 0xce7   :  { %8125 = vmatprep.subr.bf16.mxu0 %v10622_v38  ;;  %8157 = vmatprep.subr.bf16.mxu1 %v10624_v35 }
 0xcea   :  { %8127 = vmatpush1.bf16.msra.mxu0 %v10626_v58  ;;  %8159 = vmatpush1.bf16.msra.mxu1 %v10629_v34 }
 0xceb   :  { %8129 = vmatprep.subr.bf16.mxu0 %v10634_v13  ;;  %8161 = vmatprep.subr.bf16.mxu1 %v10636_v21 }
 0xcee   :  { %8131 = vmatpush1.bf16.msra.mxu0 %v10638_v10  ;;  %8163 = vmatpush1.bf16.msra.mxu1 %v10641_v2 }
 0xcef   :  { %8133 = vmatprep.subr.bf16.mxu0 %v10646_v9  ;;  %8165 = vmatprep.subr.bf16.mxu1 %v10648_v19 }
 0xcf2   :  { %8135 = vmatpush1.bf16.msra.mxu0 %v10650_v16  ;;  %8167 = vmatpush1.bf16.msra.mxu1 %v10653_v52 }
 0xcf3   :  { %8137 = vmatprep.subr.bf16.mxu0 %v10657_v29  ;;  %8169 = vmatprep.subr.bf16.mxu1 %v10659_v3 }
 0xcf6   :  { %8139 = vmatpush1.bf16.msra.mxu0 %v10662_v57  ;;  %8171 = vmatpush1.bf16.msra.mxu1 %v10666_v28 }
 0xcf7   :  { %8141 = vmatprep.subr.bf16.mxu0 %v10668_v5  ;;  %8173 = vmatprep.subr.bf16.mxu1 %v10670_v36 }
 0xcfa   :  { %8143 = vmatpush1.bf16.msra.mxu0 %v10673_v17  ;;  %8175 = vmatpush1.bf16.msra.mxu1 %v10677_v1 }
 0xcfb   :  { %8177 = vmatprep.subr.bf16.mxu0 %v10586_v63  ;;  %8209 = vmatprep.subr.bf16.mxu1 %v10588_v62 }
 0xdb0   :  { %v3700_v41 = vpop.f32.mrb[24].mxu0  ;;  %v3771_v61 = vpop.f32.mrb[28].mxu1 }
 0xdb1   :  { %v8920_v44 = vadd.f32 %v3700_v41, %v10472_v22  ;;  %v3702_v37 = vpop.f32.mrb[25].mxu0  ;;  %v3773_v45 = vpop.f32.mrb[29].mxu1  ;;  %v8936_v43 = vadd.f32 %v3771_v61, %v10480_v33 }
 0xdb2   :  { %v8921_v15 = vadd.f32 %v3702_v37, %v10475_v39  ;;  %v8937_v48 = vadd.f32 %v3773_v45, %v10483_v50 }
 0xdb3   :  { %v7047_v23 = vmul.f32 -1.442695, %v8920_v44  ;;  %v7049_v47 = vmul.f32 -1.442695, %v8936_v43 }
 0xdb4   :  { %v7048_v27 = vmul.f32 -1.442695, %v8921_v15 }
 0xdb5   :  { %9248 = vpow2.f32 %v7047_v23 }
 0xdb6   :  { %9250 = vpow2.f32 %v7048_v27 }
 0xdb7   :  { %9252 = vtanh.f32 %v8937_v48 }
 0xdb8   :  { %9254 = vpow2.f32 %v7049_v47 }
 0xdbf   :  { %v9249_v55 = vpop.eup %9248 }
 0xdc0   :  { %v3789_v26 = vadd.f32 1.0, %v9249_v55  ;;  %v9251_v25 = vpop.eup %9250 }
 0xdc1   :  { %v3790_v51 = vadd.f32 1.0, %v9251_v25  ;;  %v9253_v20 = vpop.eup %9252 }
 0xdc2   :  { %9256 = vrcp.f32 %v3789_v26  ;;  %v9255_v8 = vpop.eup %9254 }
 0xdc3   :  { %9258 = vrcp.f32 %v3790_v51  ;;  %v3791_v37 = vadd.f32 1.0, %v9255_v8 }
 0xdc5   :  { %9260 = vrcp.f32 %v3791_v37 }
 0xdcc   :  { %v9257_v32 = vpop.eup %9256 }
 0xdcd   :  { %v3800_v41 = vmul.f32 %v9257_v32, %v9253_v20  ;;  %v9259_v44 = vpop.eup %9258 }
 0xdce   :  { %v3799_v15 = vmul.f32 %v9259_v44, %v10689_v59 }
 0xdcf   :  { %v9261_v45 = vpop.eup %9260 }
 0xdd0   :  { %v10735_v61 = vadd.f32 %v3800_v41, %v3799_v15 }
 0xdd2   :  { %9262 = vtanh.f32 %v10735_v61 }
 0xddc   :  { %v9263_v23 = vpop.eup %9262 }
 0xddd   :  { %v10738_v27 = vmul.f32 %v9263_v23, %v9261_v45 }
 0xddf   :  { %3942 = vmatmul.mubr.f32.vlgmr.msra.gmra.mrb[26].mxu0 %v10738_v27  ;;  %4013 = vmatmul.mubr.f32.vlgmr.msra.gmra.mrb[30].mxu1 %v10738_v27 }
 0xde0   :  { %8179 = vmatpush1.bf16.msra.mxu0 %v10590_v24  ;;  %8211 = vmatpush1.bf16.msra.mxu1 %v10593_v46 }
 0xde1   :  { %8181 = vmatprep.subr.bf16.mxu0 %v10598_v49  ;;  %8213 = vmatprep.subr.bf16.mxu1 %v10600_v30 }
 0xde2   :  { %4184 = vmatprep.mubr.f32.mxu0 %v9612_v0  ;;  %4255 = vmatprep.mubr.f32.mxu1 %v9612_v0 }
 0xde4   :  { %8183 = vmatpush1.bf16.msra.mxu0 %v10602_v31  ;;  %8215 = vmatpush1.bf16.msra.mxu1 %v10605_v7 }
 0xde5   :  { %8185 = vmatprep.subr.bf16.mxu0 %v10610_v40  ;;  %8217 = vmatprep.subr.bf16.mxu1 %v10612_v18 }
 0xde8   :  { %8187 = vmatpush1.bf16.msra.mxu0 %v10614_v11  ;;  %8219 = vmatpush1.bf16.msra.mxu1 %v10617_v60 }
 0xde9   :  { %8189 = vmatprep.subr.bf16.mxu0 %v10622_v38  ;;  %8221 = vmatprep.subr.bf16.mxu1 %v10624_v35 }
 0xdec   :  { %8191 = vmatpush1.bf16.msra.mxu0 %v10626_v58  ;;  %8223 = vmatpush1.bf16.msra.mxu1 %v10629_v34 }
 0xded   :  { %8193 = vmatprep.subr.bf16.mxu0 %v10634_v13  ;;  %8225 = vmatprep.subr.bf16.mxu1 %v10636_v21 }
 0xdf0   :  { %8195 = vmatpush1.bf16.msra.mxu0 %v10638_v10  ;;  %8227 = vmatpush1.bf16.msra.mxu1 %v10641_v2 }
 0xdf1   :  { %8197 = vmatprep.subr.bf16.mxu0 %v10646_v9  ;;  %8229 = vmatprep.subr.bf16.mxu1 %v10648_v19 }
 0xdf4   :  { %8199 = vmatpush1.bf16.msra.mxu0 %v10650_v16  ;;  %8231 = vmatpush1.bf16.msra.mxu1 %v10653_v52 }
 0xdf5   :  { %8201 = vmatprep.subr.bf16.mxu0 %v10657_v29  ;;  %8233 = vmatprep.subr.bf16.mxu1 %v10659_v3 }
 0xdf8   :  { %8203 = vmatpush1.bf16.msra.mxu0 %v10662_v57  ;;  %8235 = vmatpush1.bf16.msra.mxu1 %v10666_v28 }
 0xdf9   :  { %8205 = vmatprep.subr.bf16.mxu0 %v10668_v5  ;;  %8237 = vmatprep.subr.bf16.mxu1 %v10670_v36 }
 0xdfc   :  { %8207 = vmatpush1.bf16.msra.mxu0 %v10673_v17  ;;  %8239 = vmatpush1.bf16.msra.mxu1 %v10677_v1 }
 0xdfd   :  { %8241 = vmatprep.subr.bf16.mxu0 %v10586_v63  ;;  %8273 = vmatprep.subr.bf16.mxu1 %v10588_v62 }
 0xeb2   :  { %v3943_v59 = vpop.f32.mrb[26].mxu0  ;;  %v4014_v43 = vpop.f32.mrb[30].mxu1 }
 0xeb3   :  { %v8922_v48 = vadd.f32 %v3943_v59, %v10472_v22  ;;  %v3945_v47 = vpop.f32.mrb[27].mxu0  ;;  %v4016_v55 = vpop.f32.mrb[31].mxu1  ;;  %v8938_v20 = vadd.f32 %v4014_v43, %v10480_v33 }
 0xeb4   :  { %v8923_v26 = vadd.f32 %v3945_v47, %v10475_v39  ;;  %v8939_v8 = vadd.f32 %v4016_v55, %v10483_v50 }
 0xeb5   :  { %v7050_v25 = vmul.f32 -1.442695, %v8922_v48  ;;  %v7052_v32 = vmul.f32 -1.442695, %v8938_v20  ;;  %v4549_v20 = vld [vmem:[#allocation14 + $0x30] sm:$0xff] }
 0xeb6   :  { %v7051_v51 = vmul.f32 -1.442695, %v8923_v26 }
 0xeb7   :  { %9264 = vpow2.f32 %v7050_v25 }
 0xeb8   :  { %9266 = vpow2.f32 %v7051_v51  ;;  %v4545_v51 = vld [vmem:[#allocation14 + $0x10] sm:$0xff] }
 0xeb9   :  { %9268 = vtanh.f32 %v8939_v8  ;;  %v4552_v8 = vld [vmem:[#allocation14 + $0x48] sm:$0xff] }
 0xeba   :  { %9270 = vpow2.f32 %v7052_v32  ;;  %v4556_v32 = vld [vmem:[#allocation14 + $0x68] sm:$0xff] }
 0xec1   :  { %v9265_v63 = vpop.eup %9264 }
 0xec2   :  { %v4032_v41 = vadd.f32 1.0, %v9265_v63  ;;  %v9267_v62 = vpop.eup %9266  ;;  %v4554_v63 = vld [vmem:[#allocation14 + $0x58] sm:$0xff] }
 0xec3   :  { %v4033_v44 = vadd.f32 1.0, %v9267_v62  ;;  %v9269_v37 = vpop.eup %9268 }
 0xec4   :  { %9272 = vrcp.f32 %v4032_v41  ;;  %v9271_v15 = vpop.eup %9270  ;;  %v4558_v41 = vld [vmem:[#allocation14 + $0x78] sm:$0xff] }
 0xec5   :  { %9274 = vrcp.f32 %v4033_v44  ;;  %v4034_v48 = vadd.f32 1.0, %v9271_v15  ;;  %v8338_v15 = vpack.c.bf16 %v4549_v20, %v4545_v51  ;;  %v4579_v51 = vld [vmem:[#allocation14 + $0x120] sm:$0xff] }
 0xec7   :  { %9276 = vrcp.f32 %v4034_v48  ;;  %v8308_v48 = vpack.c.bf16 %v4556_v32, %v4552_v8  ;;  %v4577_v32 = vld [vmem:[#allocation14 + $0x110] sm:$0xff] }
 0xece   :  { %v9273_v45 = vpop.eup %9272 }
 0xecf   :  { %v4043_v23 = vmul.f32 %v9273_v45, %v9269_v37  ;;  %v9275_v59 = vpop.eup %9274  ;;  %v4551_v45 = vld [vmem:[#allocation14 + $0x40] sm:$0xff] }
 0xed0   :  { %v4042_v47 = vmul.f32 %v9275_v59, %v10735_v61  ;;  %v4547_v61 = vld [vmem:[#allocation14 + $0x20] sm:$0xff] }
 0xed1   :  { %v9277_v55 = vpop.eup %9276 }
 0xed2   :  { %v10781_v43 = vadd.f32 %v4043_v23, %v4042_v47  ;;  %v4555_v23 = vld [vmem:[#allocation14 + $0x60] sm:$0xff]  ;;  %v8340_v47 = vpack.c.bf16 %v4558_v41, %v4554_v63  ;;  %v4581_v63 = vld [vmem:[#allocation14 + $0x130] sm:$0xff]  ;;  %v4584_v41 = vld [vmem:[#allocation14 + $0x148] sm:$0xff] }
 0xed4   :  { %9278 = vtanh.f32 %v10781_v43 }
 0xede   :  { %v9279_v26 = vpop.eup %9278 }
 0xedf   :  { %v10784_v25 = vmul.f32 %v9279_v26, %v9277_v55  ;;  %v4557_v55 = vld [vmem:[#allocation14 + $0x70] sm:$0xff]  ;;  %v4560_v26 = vld [vmem:[#allocation14 + $0x88] sm:$0xff] }
 0xee1   :  { %4185 = vmatmul.mubr.f32.vlgmr.msra.gmra.mrb[28].mxu0 %v10784_v25  ;;  %4256 = vmatmul.mubr.f32.vlgmr.msra.gmra.mrb[32].mxu1 %v10784_v25 }
 0xee2   :  { %8243 = vmatpush1.bf16.msra.mxu0 %v10590_v24  ;;  %8275 = vmatpush1.bf16.msra.mxu1 %v10593_v46  ;;  %v4544_v24 = vld [vmem:[#allocation14 + $0x8] sm:$0xff] }
 0xee3   :  { %8245 = vmatprep.subr.bf16.mxu0 %v10598_v49  ;;  %8277 = vmatprep.subr.bf16.mxu1 %v10600_v30  ;;  %v4548_v46 = vld [vmem:[#allocation14 + $0x28] sm:$0xff]  ;;  %v4546_v49 = vld [vmem:[#allocation14 + $0x18] sm:$0xff] }
 0xee4   :  { %4427 = vmatprep.mubr.f32.mxu0 %v9612_v0  ;;  %4498 = vmatprep.mubr.f32.mxu1 %v9612_v0  ;;  %v8304_v30 = vpack.c.bf16 %v4548_v46, %v4544_v24  ;;  %v4564_v24 = vld [vmem:[#allocation14 + $0xa8] sm:$0xff]  ;;  %v4562_v46 = vld [vmem:[#allocation14 + $0x98] sm:$0xff] }
 0xee6   :  { %8247 = vmatpush1.bf16.msra.mxu0 %v10602_v31  ;;  %8279 = vmatpush1.bf16.msra.mxu1 %v10605_v7  ;;  %v4550_v31 = vld [vmem:[#allocation14 + $0x38] sm:$0xff] }
 0xee7   :  { %8249 = vmatprep.subr.bf16.mxu0 %v10610_v40  ;;  %8281 = vmatprep.subr.bf16.mxu1 %v10612_v18  ;;  %v8336_v7 = vpack.c.bf16 %v4550_v31, %v4546_v49  ;;  %v4566_v49 = vld [vmem:[#allocation14 + $0xb8] sm:$0xff] }
 0xeea   :  { %8251 = vmatpush1.bf16.msra.mxu0 %v10614_v11  ;;  %8283 = vmatpush1.bf16.msra.mxu1 %v10617_v60 }
 0xeeb   :  { %8253 = vmatprep.subr.bf16.mxu0 %v10622_v38  ;;  %8285 = vmatprep.subr.bf16.mxu1 %v10624_v35 }
 0xeee   :  { %8255 = vmatpush1.bf16.msra.mxu0 %v10626_v58  ;;  %8287 = vmatpush1.bf16.msra.mxu1 %v10629_v34 }
 0xeef   :  { %8257 = vmatprep.subr.bf16.mxu0 %v10634_v13  ;;  %8289 = vmatprep.subr.bf16.mxu1 %v10636_v21 }
 0xef2   :  { %8259 = vmatpush1.bf16.msra.mxu0 %v10638_v10  ;;  %8291 = vmatpush1.bf16.msra.mxu1 %v10641_v2 }
 0xef3   :  { %8261 = vmatprep.subr.bf16.mxu0 %v10646_v9  ;;  %8293 = vmatprep.subr.bf16.mxu1 %v10648_v19 }
 0xef6   :  { %8263 = vmatpush1.bf16.msra.mxu0 %v10650_v16  ;;  %8295 = vmatpush1.bf16.msra.mxu1 %v10653_v52 }
 0xef7   :  { %8265 = vmatprep.subr.bf16.mxu0 %v10657_v29  ;;  %8297 = vmatprep.subr.bf16.mxu1 %v10659_v3 }
 0xefa   :  { %8267 = vmatpush1.bf16.msra.mxu0 %v10662_v57  ;;  %8299 = vmatpush1.bf16.msra.mxu1 %v10666_v28 }
 0xefb   :  { %8269 = vmatprep.subr.bf16.mxu0 %v10668_v5  ;;  %8301 = vmatprep.subr.bf16.mxu1 %v10670_v36 }
 0xefe   :  { %8271 = vmatpush1.bf16.msra.mxu0 %v10673_v17  ;;  %8303 = vmatpush1.bf16.msra.mxu1 %v10677_v1  ;;  %v4543_v1 = vld [vmem:[#allocation14] sm:$0xff] }
 0xeff   :  { %8305 = vmatprep.subr.bf16.mxu0 %v8304_v30  ;;  %8337 = vmatprep.subr.bf16.mxu1 %v8336_v7  ;;  %v8306_v37 = vpack.c.bf16 %v4547_v61, %v4543_v1  ;;  %v8310_v30 = vpack.c.bf16 %v4555_v23, %v4551_v45  ;;  %v4559_v7 = vld [vmem:[#allocation14 + $0x80] sm:$0xff]  ;;  %v8354_v45 = vpack.c.bf16 %v4581_v63, %v4577_v32  ;;  %v4902_v32 = vld [vmem:[#allocation15 + $0x58] sm:$0xff] }
 0xf00   :  { %v4575_v61 = vld [vmem:[#allocation14 + $0x100] sm:$0xff] }
 0xf01   :  { %v4583_v23 = vld [vmem:[#allocation14 + $0x140] sm:$0xff] }
 0xfb4   :  { %v4186_v40 = vpop.f32.mrb[28].mxu0  ;;  %v4257_v18 = vpop.f32.mrb[32].mxu1 }
 0xfb5   :  { %v8924_v11 = vadd.f32 %v4186_v40, %v10472_v22  ;;  %v4188_v60 = vpop.f32.mrb[29].mxu0  ;;  %v4259_v38 = vpop.f32.mrb[33].mxu1  ;;  %v8940_v13 = vadd.f32 %v4257_v18, %v10480_v33  ;;  %v4563_v40 = vld [vmem:[#allocation14 + $0xa0] sm:$0xff]  ;;  %v8312_v18 = vpack.c.bf16 %v4564_v24, %v4560_v26  ;;  %v4589_v26 = vld [vmem:[#allocation14 + $0x170] sm:$0xff]  ;;  %v4592_v24 = vld [vmem:[#allocation14 + $0x188] sm:$0xff] }
 0xfb6   :  { %v8925_v35 = vadd.f32 %v4188_v60, %v10475_v39  ;;  %v8941_v21 = vadd.f32 %v4259_v38, %v10483_v50  ;;  %v4561_v60 = vld [vmem:[#allocation14 + $0x90] sm:$0xff] }
 0xfb7   :  { %v7053_v58 = vmul.f32 -1.442695, %v8924_v11  ;;  %v7055_v10 = vmul.f32 -1.442695, %v8940_v13  ;;  %v8344_v11 = vpack.c.bf16 %v4566_v49, %v4562_v46  ;;  %v4565_v38 = vld [vmem:[#allocation14 + $0xb0] sm:$0xff]  ;;  %v4574_v13 = vld [vmem:[#allocation14 + $0xf8] sm:$0xff] }
 0xfb8   :  { %v7054_v34 = vmul.f32 -1.442695, %v8925_v35  ;;  %v4568_v35 = vld [vmem:[#allocation14 + $0xc8] sm:$0xff]  ;;  %v4594_v49 = vld [vmem:[#allocation14 + $0x198] sm:$0xff] }
 0xfb9   :  { %9280 = vpow2.f32 %v7053_v58  ;;  %v4572_v58 = vld [vmem:[#allocation14 + $0xe8] sm:$0xff] }
 0xfba   :  { %9282 = vpow2.f32 %v7054_v34  ;;  %v4570_v34 = vld [vmem:[#allocation14 + $0xd8] sm:$0xff]  ;;  %v4596_v46 = vld [vmem:[#allocation14 + $0x1a8] sm:$0xff] }
 0xfbb   :  { %9284 = vtanh.f32 %v8941_v21  ;;  %v8314_v21 = vpack.c.bf16 %v4563_v40, %v4559_v7  ;;  %v4591_v40 = vld [vmem:[#allocation14 + $0x180] sm:$0xff] }
 0xfbc   :  { %9286 = vpow2.f32 %v7055_v10  ;;  %v8346_v10 = vpack.c.bf16 %v4565_v38, %v4561_v60  ;;  %v4593_v38 = vld [vmem:[#allocation14 + $0x190] sm:$0xff] }
 0xfc3   :  { %v9281_v2 = vpop.eup %9280 }
 0xfc4   :  { %v4275_v9 = vadd.f32 1.0, %v9281_v2  ;;  %v9283_v19 = vpop.eup %9282  ;;  %v4567_v2 = vld [vmem:[#allocation14 + $0xc0] sm:$0xff] }
 0xfc5   :  { %v4276_v16 = vadd.f32 1.0, %v9283_v19  ;;  %v9285_v52 = vpop.eup %9284  ;;  %v8316_v19 = vpack.c.bf16 %v4572_v58, %v4568_v35  ;;  %v4597_v35 = vld [vmem:[#allocation14 + $0x1b0] sm:$0xff]  ;;  %v4600_v58 = vld [vmem:[#allocation14 + $0x1c8] sm:$0xff] }
 0xfc6   :  { %9288 = vrcp.f32 %v4275_v9  ;;  %v9287_v29 = vpop.eup %9286  ;;  %v4571_v9 = vld [vmem:[#allocation14 + $0xe0] sm:$0xff] }
 0xfc7   :  { %9290 = vrcp.f32 %v4276_v16  ;;  %v4277_v5 = vadd.f32 1.0, %v9287_v29  ;;  %v8348_v16 = vpack.c.bf16 %v4574_v13, %v4570_v34  ;;  %v4573_v29 = vld [vmem:[#allocation14 + $0xf0] sm:$0xff]  ;;  %v4604_v34 = vld [vmem:[#allocation14 + $0x1e8] sm:$0xff]  ;;  %v4602_v13 = vld [vmem:[#allocation14 + $0x1d8] sm:$0xff] }
 0xfc9   :  { %9292 = vrcp.f32 %v4277_v5  ;;  %v4582_v5 = vld [vmem:[#allocation14 + $0x138] sm:$0xff] }
 0xfd0   :  { %v9289_v3 = vpop.eup %9288 }
 0xfd1   :  { %v4286_v57 = vmul.f32 %v9289_v3, %v9285_v52  ;;  %v9291_v28 = vpop.eup %9290  ;;  %v4569_v52 = vld [vmem:[#allocation14 + $0xd0] sm:$0xff]  ;;  %v4576_v3 = vld [vmem:[#allocation14 + $0x108] sm:$0xff] }
 0xfd2   :  { %v4285_v36 = vmul.f32 %v9291_v28, %v10781_v43  ;;  %v4553_v43 = vld [vmem:[#allocation14 + $0x50] sm:$0xff]  ;;  %v4578_v28 = vld [vmem:[#allocation14 + $0x118] sm:$0xff]  ;;  %v8350_v1 = vpack.c.bf16 %v4573_v29, %v4569_v52  ;;  %v4603_v52 = vld [vmem:[#allocation14 + $0x1e0] sm:$0xff] }
 0xfd3   :  { %v9293_v62 = vpop.eup %9292  ;;  %v8342_v31 = vpack.c.bf16 %v4557_v55, %v4553_v43  ;;  %v8352_v8 = vpack.c.bf16 %v4582_v5, %v4578_v28  ;;  %v4585_v55 = vld [vmem:[#allocation14 + $0x150] sm:$0xff]  ;;  %v4895_v5 = vld [vmem:[#allocation15 + $0x20] sm:$0xff] }
 0xfd4   :  { %v10825_v17 = vadd.f32 %v4286_v57, %v4285_v36  ;;  %v4580_v57 = vld [vmem:[#allocation14 + $0x128] sm:$0xff]  ;;  %v8318_v36 = vpack.c.bf16 %v4571_v9, %v4567_v2  ;;  %v8358_v7 = vpack.c.bf16 %v4589_v26, %v4585_v55  ;;  %v8362_v2 = vpack.c.bf16 %v4597_v35, %v4593_v38  ;;  %v4599_v9 = vld [vmem:[#allocation14 + $0x1c0] sm:$0xff]  ;;  %v4601_v29 = vld [vmem:[#allocation14 + $0x1d0] sm:$0xff] }
 0xfd5   :  { %v8320_v20 = vpack.c.bf16 %v4580_v57, %v4576_v3  ;;  %v4605_v3 = vld [vmem:[#allocation14 + $0x1f0] sm:$0xff]  ;;  %v8334_v57 = vpack.c.bf16 %v4603_v52, %v4599_v9  ;;  %v4910_v55 = vld [vmem:[#allocation15 + $0x98] sm:$0xff]  ;;  %v4928_v52 = vld [vmem:[#allocation15 + $0x128] sm:$0xff] }
 0xfd6   :  { %9294 = vtanh.f32 %v10825_v17  ;;  %v8366_v28 = vpack.c.bf16 %v4605_v3, %v4601_v29  ;;  %v4918_v38 = vld [vmem:[#allocation15 + $0xd8] sm:$0xff]  ;;  %v4921_v9 = vld [vmem:[#allocation15 + $0xf0] sm:$0xff] }
 0xfd7   :  { %v4926_v29 = vld [vmem:[#allocation15 + $0x118] sm:$0xff] }
 0xfe0   :  { %v9295_v44 = vpop.eup %9294 }
 0xfe1   :  { %v10828_v59 = vmul.f32 %v9295_v44, %v9293_v62  ;;  %v4588_v62 = vld [vmem:[#allocation14 + $0x168] sm:$0xff]  ;;  %v4586_v44 = vld [vmem:[#allocation14 + $0x158] sm:$0xff] }
 0xfe3   :  { %4428 = vmatmul.mubr.f32.vlgmr.msra.gmra.mrb[30].mxu0 %v10828_v59  ;;  %4499 = vmatmul.mubr.f32.vlgmr.msra.gmra.mrb[34].mxu1 %v10828_v59 }
 0xfe4   :  { %8307 = vmatpush1.bf16.msra.mxu0 %v8306_v37  ;;  %8339 = vmatpush1.bf16.msra.mxu1 %v8338_v15  ;;  %v4590_v37 = vld [vmem:[#allocation14 + $0x178] sm:$0xff]  ;;  %v8322_v15 = vpack.c.bf16 %v4579_v51, %v4575_v61  ;;  %v4893_v61 = vld [vmem:[#allocation15 + $0x10] sm:$0xff] }
 0xfe5   :  { %8309 = vmatprep.subr.bf16.mxu0 %v8308_v48  ;;  %8341 = vmatprep.subr.bf16.mxu1 %v8340_v47  ;;  %v4587_v48 = vld [vmem:[#allocation14 + $0x160] sm:$0xff]  ;;  %v8324_v47 = vpack.c.bf16 %v4588_v62, %v4584_v41  ;;  %v8356_v43 = vpack.c.bf16 %v4590_v37, %v4586_v44  ;;  %v4897_v51 = vld [vmem:[#allocation15 + $0x30] sm:$0xff]  ;;  %v4906_v44 = vld [vmem:[#allocation15 + $0x78] sm:$0xff] }
 0xfe6   :  { %4693 = vmatprep.mubr.f32.mxu0 %v9612_v0  ;;  %4806 = vmatprep.mubr.f32.mxu1 %v9612_v0  ;;  %v4899_v41 = vld [vmem:[#allocation15 + $0x40] sm:$0xff] }
 0xfe7   :  { %v4903_v62 = vld [vmem:[#allocation15 + $0x60] sm:$0xff] }
 0xfe8   :  { %8311 = vmatpush1.bf16.msra.mxu0 %v8310_v30  ;;  %8343 = vmatpush1.bf16.msra.mxu1 %v8342_v31  ;;  %v4598_v30 = vld [vmem:[#allocation14 + $0x1b8] sm:$0xff]  ;;  %v8326_v31 = vpack.c.bf16 %v4587_v48, %v4583_v23  ;;  %v10876_v37 = vpack.c.bf16 %v4903_v62, %v4899_v41  ;;  %v4905_v23 = vld [vmem:[#allocation15 + $0x70] sm:$0xff] }
 0xfe9   :  { %8313 = vmatprep.subr.bf16.mxu0 %v8312_v18  ;;  %8345 = vmatprep.subr.bf16.mxu1 %v8344_v11  ;;  %v4595_v18 = vld [vmem:[#allocation14 + $0x1a0] sm:$0xff]  ;;  %v8328_v11 = vpack.c.bf16 %v4596_v46, %v4592_v24  ;;  %v8360_v60 = vpack.c.bf16 %v4598_v30, %v4594_v49  ;;  %v4914_v49 = vld [vmem:[#allocation15 + $0xb8] sm:$0xff] }
 0xfea   :  { %v4907_v24 = vld [vmem:[#allocation15 + $0x80] sm:$0xff]  ;;  %v4934_v62 = vld [vmem:[#allocation15 + $0x158] sm:$0xff] }
 0xfeb   :  { %v4911_v46 = vld [vmem:[#allocation15 + $0xa0] sm:$0xff] }
 0xfec   :  { %8315 = vmatpush1.bf16.msra.mxu0 %v8314_v21  ;;  %8347 = vmatpush1.bf16.msra.mxu1 %v8346_v10  ;;  %v4606_v21 = vld [vmem:[#allocation14 + $0x1f8] sm:$0xff]  ;;  %v8330_v10 = vpack.c.bf16 %v4595_v18, %v4591_v40  ;;  %v10888_v30 = vpack.c.bf16 %v4911_v46, %v4907_v24  ;;  %v4913_v40 = vld [vmem:[#allocation15 + $0xb0] sm:$0xff] }
 0xfed   :  { %8317 = vmatprep.subr.bf16.mxu0 %v8316_v19  ;;  %8349 = vmatprep.subr.bf16.mxu1 %v8348_v16  ;;  %v8332_v19 = vpack.c.bf16 %v4604_v34, %v4600_v58  ;;  %v8364_v16 = vpack.c.bf16 %v4606_v21, %v4602_v13  ;;  %v4915_v58 = vld [vmem:[#allocation15 + $0xc0] sm:$0xff]  ;;  %v4922_v13 = vld [vmem:[#allocation15 + $0xf8] sm:$0xff] }
 0xfee   :  { %v4919_v34 = vld [vmem:[#allocation15 + $0xe0] sm:$0xff] }
 0xfef   :  { %v10900_v21 = vpack.c.bf16 %v4919_v34, %v4915_v58 }
 0xff0   :  { %8319 = vmatpush1.bf16.msra.mxu0 %v8318_v36  ;;  %8351 = vmatpush1.bf16.msra.mxu1 %v8350_v1 }
 0xff1   :  { %8321 = vmatprep.subr.bf16.mxu0 %v8320_v20  ;;  %8353 = vmatprep.subr.bf16.mxu1 %v8352_v8  ;;  %v4900_v20 = vld [vmem:[#allocation15 + $0x48] sm:$0xff] }
 0xff2   :  { %v4904_v8 = vld [vmem:[#allocation15 + $0x68] sm:$0xff] }
 0xff3   :  { %v10874_v63 = vpack.c.bf16 %v4904_v8, %v4900_v20  ;;  %v4931_v20 = vld [vmem:[#allocation15 + $0x140] sm:$0xff] }
 0xff4   :  { %8323 = vmatpush1.bf16.msra.mxu0 %v8322_v15  ;;  %8355 = vmatpush1.bf16.msra.mxu1 %v8354_v45  ;;  %v10878_v15 = vpack.c.bf16 %v4906_v44, %v4902_v32  ;;  %v4901_v45 = vld [vmem:[#allocation15 + $0x50] sm:$0xff]  ;;  %v4935_v8 = vld [vmem:[#allocation15 + $0x160] sm:$0xff]  ;;  %v4938_v44 = vld [vmem:[#allocation15 + $0x178] sm:$0xff] }
 0xff5   :  { %8325 = vmatprep.subr.bf16.mxu0 %v8324_v47  ;;  %8357 = vmatprep.subr.bf16.mxu1 %v8356_v43  ;;  %v10881_v48 = vpack.c.bf16 %v4905_v23, %v4901_v45  ;;  %v4908_v47 = vld [vmem:[#allocation15 + $0x88] sm:$0xff]  ;;  %v10923_v41 = vpack.c.bf16 %v4935_v8, %v4931_v20  ;;  %v4933_v45 = vld [vmem:[#allocation15 + $0x150] sm:$0xff]  ;;  %v10926_v23 = vpack.c.bf16 %v4938_v44, %v4934_v62 }
 0xff6   :  { %v4912_v43 = vld [vmem:[#allocation15 + $0xa8] sm:$0xff] }
 0xff7   :  { %v10886_v26 = vpack.c.bf16 %v4912_v43, %v4908_v47  ;;  %v4937_v47 = vld [vmem:[#allocation15 + $0x170] sm:$0xff]  ;;  %v4940_v43 = vld [vmem:[#allocation15 + $0x188] sm:$0xff] }
 0xff8   :  { %8327 = vmatpush1.bf16.msra.mxu0 %v8326_v31  ;;  %8359 = vmatpush1.bf16.msra.mxu1 %v8358_v7  ;;  %v10890_v31 = vpack.c.bf16 %v4914_v49, %v4910_v55  ;;  %v4909_v7 = vld [vmem:[#allocation15 + $0x90] sm:$0xff]  ;;  %v4944_v55 = vld [vmem:[#allocation15 + $0x1a8] sm:$0xff]  ;;  %v10929_v24 = vpack.c.bf16 %v4937_v47, %v4933_v45  ;;  %v4939_v49 = vld [vmem:[#allocation15 + $0x180] sm:$0xff] }
 0xff9   :  { %8329 = vmatprep.subr.bf16.mxu0 %v8328_v11  ;;  %8361 = vmatprep.subr.bf16.mxu1 %v8360_v60  ;;  %v10893_v18 = vpack.c.bf16 %v4913_v40, %v4909_v7  ;;  %v4916_v11 = vld [vmem:[#allocation15 + $0xc8] sm:$0xff]  ;;  %v10931_v46 = vpack.c.bf16 %v4944_v55, %v4940_v43  ;;  %v4943_v7 = vld [vmem:[#allocation15 + $0x1a0] sm:$0xff]  ;;  %v4942_v40 = vld [vmem:[#allocation15 + $0x198] sm:$0xff] }
 0xffa   :  { %v4920_v60 = vld [vmem:[#allocation15 + $0xe8] sm:$0xff]  ;;  %v10935_v58 = vpack.c.bf16 %v4943_v7, %v4939_v49 }
 0xffb   :  { %v10898_v35 = vpack.c.bf16 %v4920_v60, %v4916_v11  ;;  %v4946_v11 = vld [vmem:[#allocation15 + $0x1b8] sm:$0xff]  ;;  %v4941_v60 = vld [vmem:[#allocation15 + $0x190] sm:$0xff] }
 0xffc   :  { %8331 = vmatpush1.bf16.msra.mxu0 %v8330_v10  ;;  %8363 = vmatpush1.bf16.msra.mxu1 %v8362_v2  ;;  %v10902_v10 = vpack.c.bf16 %v4922_v13, %v4918_v38  ;;  %v4917_v2 = vld [vmem:[#allocation15 + $0xd0] sm:$0xff]  ;;  %v10937_v34 = vpack.c.bf16 %v4946_v11, %v4942_v40  ;;  %v4948_v13 = vld [vmem:[#allocation15 + $0x1c8] sm:$0xff] }
 0xffd   :  { %8333 = vmatprep.subr.bf16.mxu0 %v8332_v19  ;;  %8365 = vmatprep.subr.bf16.mxu1 %v8364_v16  ;;  %v10905_v19 = vpack.c.bf16 %v4921_v9, %v4917_v2  ;;  %v4924_v16 = vld [vmem:[#allocation15 + $0x108] sm:$0xff]  ;;  %v4945_v38 = vld [vmem:[#allocation15 + $0x1b0] sm:$0xff] }
 0xffe   :  { %v10910_v3 = vpack.c.bf16 %v4928_v52, %v4924_v16  ;;  %v4952_v2 = vld [vmem:[#allocation15 + $0x1e8] sm:$0xff]  ;;  %v10941_v9 = vpack.c.bf16 %v4945_v38, %v4941_v60  ;;  %v4950_v52 = vld [vmem:[#allocation15 + $0x1d8] sm:$0xff] }
 0xfff   :  { %v10943_v16 = vpack.c.bf16 %v4952_v2, %v4948_v13 }
0x1000   :  { %8335 = vmatpush1.bf16.msra.mxu0 %v8334_v57  ;;  %8367 = vmatpush1.bf16.msra.mxu1 %v8366_v28  ;;  %v4923_v57 = vld [vmem:[#allocation15 + $0x100] sm:$0xff] }
0x1001   :  { %v4927_v28 = vld [vmem:[#allocation15 + $0x120] sm:$0xff] }
0x1003   :  { %4694 = vmatmul.mubr.f32.vlgmr.msra.gmra.mrb[32].mxu0 %v10490_v6  ;;  %4807 = vmatmul.mubr.f32.vlgmr.msra.gmra.mrb[36].mxu1 %v10490_v6  ;;  %v4892_v6 = vld [vmem:[#allocation15 + $0x8] sm:$0xff] }
0x1004   :  { %4699 = vmatprep.mubr.f32.mxu0 %v9612_v0  ;;  %4812 = vmatprep.mubr.f32.mxu1 %v9612_v0 }
0x1007   :  { %4700 = vmatmul.mubr.f32.gmra.mrb[34].mxu0 %v10536_v53  ;;  %4813 = vmatmul.mubr.f32.gmra.mrb[38].mxu1 %v10536_v53  ;;  %v4896_v53 = vld [vmem:[#allocation15 + $0x28] sm:$0xff] }
0x1008   :  { %4705 = vmatprep.mubr.f32.mxu0 %v9612_v0  ;;  %4818 = vmatprep.mubr.f32.mxu1 %v9612_v0 }
0x100b   :  { %4706 = vmatmul.mubr.f32.gmra.mrb[36].mxu0 %v10580_v4  ;;  %4819 = vmatmul.mubr.f32.gmra.mrb[40].mxu1 %v10580_v4  ;;  %v4894_v4 = vld [vmem:[#allocation15 + $0x18] sm:$0xff] }
0x100c   :  { %4711 = vmatprep.mubr.f32.mxu0 %v9612_v0  ;;  %4824 = vmatprep.mubr.f32.mxu1 %v9612_v0 }
0x100f   :  { %4712 = vmatmul.mubr.f32.gmra.mrb[38].mxu0 %v10692_v42  ;;  %4825 = vmatmul.mubr.f32.gmra.mrb[42].mxu1 %v10692_v42  ;;  %v10862_v42 = vpack.c.bf16 %v4896_v53, %v4892_v6  ;;  %v4930_v6 = vld [vmem:[#allocation15 + $0x138] sm:$0xff]  ;;  %v10912_v53 = vpack.c.bf16 %v4927_v28, %v4923_v57  ;;  %v4947_v57 = vld [vmem:[#allocation15 + $0x1c0] sm:$0xff] }
0x1010   :  { %4717 = vmatprep.mubr.f32.mxu0 %v9612_v0  ;;  %4830 = vmatprep.mubr.f32.mxu1 %v9612_v0  ;;  %v4951_v28 = vld [vmem:[#allocation15 + $0x1e0] sm:$0xff] }
0x1011   :  { %8369 = vmatprep.subr.bf16.mxu0 %v10862_v42 }
0x1013   :  { %4718 = vmatmul.mubr.f32.gmra.mrb[40].mxu0 %v10738_v27  ;;  %4831 = vmatmul.mubr.f32.gmra.mrb[44].mxu1 %v10738_v27  ;;  %v4891_v27 = vld [vmem:[#allocation15] sm:$0xff] }
0x1014   :  { %4723 = vmatprep.mubr.f32.mxu0 %v9612_v0  ;;  %4836 = vmatprep.mubr.f32.mxu1 %v9612_v0  ;;  %v10864_v36 = vpack.c.bf16 %v4895_v5, %v4891_v27  ;;  %v4925_v27 = vld [vmem:[#allocation15 + $0x110] sm:$0xff] }
0x1015   :  { %v4929_v5 = vld [vmem:[#allocation15 + $0x130] sm:$0xff] }
0x1016   :  { %8371 = vmatpush1.bf16.msra.mxu0 %v10864_v36 }
0x1017   :  { %4724 = vmatmul.mubr.f32.gmra.mrb[42].mxu0 %v10784_v25  ;;  %4837 = vmatmul.mubr.f32.gmra.mrb[46].mxu1 %v10784_v25  ;;  %v4898_v25 = vld [vmem:[#allocation15 + $0x38] sm:$0xff] }
0x1018   :  { %4729 = vmatprep.mubr.f32.mxu0 %v9612_v0  ;;  %4842 = vmatprep.mubr.f32.mxu1 %v9612_v0  ;;  %v10866_v1 = vpack.c.bf16 %v4898_v25, %v4894_v4  ;;  %v10914_v4 = vpack.c.bf16 %v4930_v6, %v4926_v29  ;;  %v4932_v25 = vld [vmem:[#allocation15 + $0x148] sm:$0xff]  ;;  %v4954_v29 = vld [vmem:[#allocation15 + $0x1f8] sm:$0xff] }
0x1019   :  { %8373 = vmatprep.subr.bf16.mxu0 %v10874_v63  ;;  %v10949_v6 = vpack.c.bf16 %v4954_v29, %v4950_v52 }
0x101a   :  { %8401 = vmatprep.subr.bf16.mxu1 %v10866_v1  ;;  %8375 = vmatpush1.bf16.msra.mxu0 %v10876_v37 }
0x101b   :  { %4730 = vmatmul.mubr.f32.gmra.mrb[44].mxu0 %v10828_v59  ;;  %4843 = vmatmul.mubr.f32.gmra.mrb[48].mxu1 %v10828_v59  ;;  %v10869_v59 = vpack.c.bf16 %v4897_v51, %v4893_v61  ;;  %v10917_v61 = vpack.c.bf16 %v4929_v5, %v4925_v27  ;;  %v4936_v51 = vld [vmem:[#allocation15 + $0x168] sm:$0xff]  ;;  %v4949_v27 = vld [vmem:[#allocation15 + $0x1d0] sm:$0xff]  ;;  %v10951_v5 = vpack.c.bf16 %v4951_v28, %v4947_v57 }
0x101c   :  { %4735 = vmatprep.mubr.f32.mxu0 %v9612_v0  ;;  %4848 = vmatprep.mubr.f32.mxu1 %v9612_v0  ;;  %v10921_v32 = vpack.c.bf16 %v4936_v51, %v4932_v25  ;;  %v4953_v25 = vld [vmem:[#allocation15 + $0x1f0] sm:$0xff] }
0x101d   :  { %8403 = vmatpush1.bf16.msra.mxu1 %v10869_v59  ;;  %8377 = vmatprep.subr.bf16.mxu0 %v10886_v26  ;;  %v10954_v51 = vpack.c.bf16 %v4953_v25, %v4949_v27 }
0x101e   :  { %8405 = vmatprep.subr.bf16.mxu1 %v10878_v15  ;;  %8379 = vmatpush1.bf16.msra.mxu0 %v10888_v30 }
0x101f   :  { %8381 = vmatprep.subr.bf16.mxu0 %v10898_v35 }
0x1021   :  { %8407 = vmatpush1.bf16.msra.mxu1 %v10881_v48 }
0x1022   :  { %8409 = vmatprep.subr.bf16.mxu1 %v10890_v31  ;;  %8383 = vmatpush1.bf16.msra.mxu0 %v10900_v21 }
0x1023   :  { %8385 = vmatprep.subr.bf16.mxu0 %v10910_v3 }
0x1025   :  { %8411 = vmatpush1.bf16.msra.mxu1 %v10893_v18 }
0x1026   :  { %8413 = vmatprep.subr.bf16.mxu1 %v10902_v10  ;;  %8387 = vmatpush1.bf16.msra.mxu0 %v10912_v53 }
0x1027   :  { %8389 = vmatprep.subr.bf16.mxu0 %v10921_v32 }
0x1029   :  { %8415 = vmatpush1.bf16.msra.mxu1 %v10905_v19 }
0x102a   :  { %8417 = vmatprep.subr.bf16.mxu1 %v10914_v4  ;;  %8391 = vmatpush1.bf16.msra.mxu0 %v10923_v41 }
0x102b   :  { %8393 = vmatprep.subr.bf16.mxu0 %v10931_v46 }
0x102d   :  { %8419 = vmatpush1.bf16.msra.mxu1 %v10917_v61 }
0x102e   :  { %8421 = vmatprep.subr.bf16.mxu1 %v10926_v23  ;;  %8395 = vmatpush1.bf16.msra.mxu0 %v10935_v58 }
0x102f   :  { %8397 = vmatprep.subr.bf16.mxu0 %v10943_v16 }
0x1031   :  { %8423 = vmatpush1.bf16.msra.mxu1 %v10929_v24 }
0x1032   :  { %8425 = vmatprep.subr.bf16.mxu1 %v10937_v34  ;;  %8399 = vmatpush1.bf16.msra.mxu0 %v10951_v5 }
0x1033   :  { %8433 = vmatprep.subr.bf16.mxu0 %v10862_v42 }
0x1035   :  { %8427 = vmatpush1.bf16.msra.mxu1 %v10941_v9 }
0x1036   :  { %8429 = vmatprep.subr.bf16.mxu1 %v10949_v6 }
0x1039   :  { %8431 = vmatpush1.bf16.msra.mxu1 %v10954_v51 }
0x103a   :  { %8465 = vmatprep.subr.bf16.mxu1 %v10866_v1 }
0x10b6   :  { %v4429_v20 = vpop.f32.mrb[30].mxu0  ;;  %v4500_v8 = vpop.f32.mrb[34].mxu1 }
0x10b7   :  { %v8926_v62 = vadd.f32 %v4429_v20, %v10472_v22  ;;  %v4431_v44 = vpop.f32.mrb[31].mxu0  ;;  %v4502_v45 = vpop.f32.mrb[35].mxu1  ;;  %v8942_v49 = vadd.f32 %v4500_v8, %v10480_v33 }
0x10b8   :  { %v8927_v47 = vadd.f32 %v4431_v44, %v10475_v39  ;;  %v8943_v7 = vadd.f32 %v4502_v45, %v10483_v50 }
0x10b9   :  { %v7056_v43 = vmul.f32 -1.442695, %v8926_v62  ;;  %v7058_v40 = vmul.f32 -1.442695, %v8942_v49 }
0x10ba   :  { %v7057_v55 = vmul.f32 -1.442695, %v8927_v47 }
0x10bb   :  { %9296 = vpow2.f32 %v7056_v43 }
0x10bc   :  { %9298 = vpow2.f32 %v7057_v55 }
0x10bd   :  { %9300 = vtanh.f32 %v8943_v7 }
0x10be   :  { %9302 = vpow2.f32 %v7058_v40 }
0x10c5   :  { %v9297_v11 = vpop.eup %9296 }
0x10c6   :  { %v4518_v60 = vadd.f32 1.0, %v9297_v11  ;;  %v9299_v38 = vpop.eup %9298 }
0x10c7   :  { %v4519_v22 = vadd.f32 1.0, %v9299_v38  ;;  %v9301_v13 = vpop.eup %9300 }
0x10c8   :  { %9304 = vrcp.f32 %v4518_v60  ;;  %v9303_v2 = vpop.eup %9302 }
0x10c9   :  { %9306 = vrcp.f32 %v4519_v22  ;;  %v4520_v57 = vadd.f32 1.0, %v9303_v2 }
0x10cb   :  { %9308 = vrcp.f32 %v4520_v57 }
0x10d2   :  { %v9305_v39 = vpop.eup %9304 }
0x10d3   :  { %v4529_v52 = vmul.f32 %v9305_v39, %v9301_v13  ;;  %v9307_v29 = vpop.eup %9306 }
0x10d4   :  { %v4528_v28 = vmul.f32 %v9307_v29, %v10825_v17  ;;  %v4607_v17 = vld [vmem:[%s11447_s9] sm:$0xf] }
0x10d5   :  { %v9309_v50 = vpop.eup %9308  ;;  %v11007_v20 = vrot.slane %v4607_v17, %v9946_v56  ;;  %v11010_v8 = vrot.slane %v4607_v17, %v9941_v54  ;;  %v11015_v40 = vrot.slane %v4607_v17, %v9956_v12  ;;  %v11018_v56 = vrot.slane %v4607_v17, %v9958_v14 }
0x10d6   :  { %v4530_v33 = vadd.f32 %v4529_v52, %v4528_v28 }
0x10d8   :  { %9310 = vtanh.f32 %v4530_v33 }
0x10e2   :  { %v9311_v27 = vpop.eup %9310 }
0x10e3   :  { %v4532_v25 = vmul.f32 %v9311_v27, %v9309_v50 }
0x10e5   :  { %4736 = vmatmul.mubr.f32.gmra.mrb[46].mxu0 %v4532_v25  ;;  %4849 = vmatmul.mubr.f32.gmra.mrb[50].mxu1 %v4532_v25 }
0x10e6   :  { %5019 = vmatprep.mubr.f32.mxu0 %v9612_v0  ;;  %5090 = vmatprep.mubr.f32.mxu1 %v9612_v0 }
0x10e9   :  { %5020 = vmatmul.mubr.f32.vlgmr.msra.gmra.mrb[32].mxu0 %v9612_v0  ;;  %5091 = vmatmul.mubr.f32.vlgmr.msra.gmra.mrb[36].mxu1 %v9612_v0 }
0x10ea   :  { %8435 = vmatpush1.bf16.msra.mxu0 %v10864_v36  ;;  %8467 = vmatpush1.bf16.msra.mxu1 %v10869_v59 }
0x10eb   :  { %8437 = vmatprep.subr.bf16.mxu0 %v10874_v63  ;;  %8469 = vmatprep.subr.bf16.mxu1 %v10878_v15 }
0x10ec   :  { %5258 = vmatprep.mubr.f32.mxu0 %v9612_v0  ;;  %5329 = vmatprep.mubr.f32.mxu1 %v9612_v0 }
0x10ee   :  { %8439 = vmatpush1.bf16.msra.mxu0 %v10876_v37  ;;  %8471 = vmatpush1.bf16.msra.mxu1 %v10881_v48 }
0x10ef   :  { %8441 = vmatprep.subr.bf16.mxu0 %v10886_v26  ;;  %8473 = vmatprep.subr.bf16.mxu1 %v10890_v31 }
0x10f2   :  { %8443 = vmatpush1.bf16.msra.mxu0 %v10888_v30  ;;  %8475 = vmatpush1.bf16.msra.mxu1 %v10893_v18 }
0x10f3   :  { %8445 = vmatprep.subr.bf16.mxu0 %v10898_v35  ;;  %8477 = vmatprep.subr.bf16.mxu1 %v10902_v10 }
0x10f6   :  { %8447 = vmatpush1.bf16.msra.mxu0 %v10900_v21  ;;  %8479 = vmatpush1.bf16.msra.mxu1 %v10905_v19 }
0x10f7   :  { %8449 = vmatprep.subr.bf16.mxu0 %v10910_v3  ;;  %8481 = vmatprep.subr.bf16.mxu1 %v10914_v4 }
0x10fa   :  { %8451 = vmatpush1.bf16.msra.mxu0 %v10912_v53  ;;  %8483 = vmatpush1.bf16.msra.mxu1 %v10917_v61 }
0x10fb   :  { %8453 = vmatprep.subr.bf16.mxu0 %v10921_v32  ;;  %8485 = vmatprep.subr.bf16.mxu1 %v10926_v23 }
0x10fe   :  { %8455 = vmatpush1.bf16.msra.mxu0 %v10923_v41  ;;  %8487 = vmatpush1.bf16.msra.mxu1 %v10929_v24 }
0x10ff   :  { %8457 = vmatprep.subr.bf16.mxu0 %v10931_v46  ;;  %8489 = vmatprep.subr.bf16.mxu1 %v10937_v34 }
0x1102   :  { %8459 = vmatpush1.bf16.msra.mxu0 %v10935_v58  ;;  %8491 = vmatpush1.bf16.msra.mxu1 %v10941_v9 }
0x1103   :  { %8461 = vmatprep.subr.bf16.mxu0 %v10943_v16  ;;  %8493 = vmatprep.subr.bf16.mxu1 %v10949_v6 }
0x1106   :  { %8463 = vmatpush1.bf16.msra.mxu0 %v10951_v5  ;;  %8495 = vmatpush1.bf16.msra.mxu1 %v10954_v51 }
0x1107   :  { %8497 = vmatprep.subr.bf16.mxu0 %v10862_v42  ;;  %8529 = vmatprep.subr.bf16.mxu1 %v10866_v1 }
0x11bc   :  { %v5021_v62 = vpop.f32.mrb[32].mxu0  ;;  %v5092_v44 = vpop.f32.mrb[36].mxu1 }
0x11bd   :  { %v8944_v45 = vadd.f32 %v5021_v62, %v11007_v20  ;;  %v5023_v47 = vpop.f32.mrb[33].mxu0  ;;  %v5094_v43 = vpop.f32.mrb[37].mxu1  ;;  %v8960_v54 = vadd.f32 %v5092_v44, %v11015_v40 }
0x11be   :  { %v8945_v55 = vadd.f32 %v5023_v47, %v11010_v8  ;;  %v8961_v11 = vadd.f32 %v5094_v43, %v11018_v56 }
0x11bf   :  { %v7059_v49 = vmul.f32 -1.442695, %v8944_v45  ;;  %v7061_v60 = vmul.f32 -1.442695, %v8960_v54 }
0x11c0   :  { %v7060_v7 = vmul.f32 -1.442695, %v8945_v55 }
0x11c1   :  { %9312 = vpow2.f32 %v7059_v49 }
0x11c2   :  { %9314 = vpow2.f32 %v7060_v7 }
0x11c3   :  { %9316 = vtanh.f32 %v8961_v11 }
0x11c4   :  { %9318 = vpow2.f32 %v7061_v60 }
0x11cb   :  { %v9313_v38 = vpop.eup %9312 }
0x11cc   :  { %v5110_v22 = vadd.f32 1.0, %v9313_v38  ;;  %v9315_v13 = vpop.eup %9314 }
0x11cd   :  { %v5111_v2 = vadd.f32 1.0, %v9315_v13  ;;  %v9317_v12 = vpop.eup %9316 }
0x11ce   :  { %9320 = vrcp.f32 %v5110_v22  ;;  %v9319_v39 = vpop.eup %9318 }
0x11cf   :  { %9322 = vrcp.f32 %v5111_v2  ;;  %v5112_v14 = vadd.f32 1.0, %v9319_v39 }
0x11d1   :  { %9324 = vrcp.f32 %v5112_v14 }
0x11d8   :  { %v9321_v52 = vpop.eup %9320 }
0x11d9   :  { %v5121_v29 = vmul.f32 %v9321_v52, %v9317_v12  ;;  %v9323_v57 = vpop.eup %9322 }
0x11da   :  { %v5120_v28 = vmul.f32 0.0, %v9323_v57 }
0x11db   :  { %v9325_v50 = vpop.eup %9324 }
0x11dc   :  { %v11022_v33 = vadd.f32 %v5121_v29, %v5120_v28 }
0x11de   :  { %9326 = vtanh.f32 %v11022_v33 }
0x11e8   :  { %v9327_v27 = vpop.eup %9326 }
0x11e9   :  { %v11025_v25 = vmul.f32 %v9327_v27, %v9325_v50  ;;  %v5850_v27 = vld [vmem:[#allocation15] sm:$0xff] }
0x11eb   :  { %5259 = vmatmul.mubr.f32.vlgmr.msra.gmra.mrb[34].mxu0 %v11025_v25  ;;  %5330 = vmatmul.mubr.f32.vlgmr.msra.gmra.mrb[38].mxu1 %v11025_v25 }
0x11ec   :  { %8499 = vmatpush1.bf16.msra.mxu0 %v10864_v36  ;;  %8531 = vmatpush1.bf16.msra.mxu1 %v10869_v59 }
0x11ed   :  { %8501 = vmatprep.subr.bf16.mxu0 %v10874_v63  ;;  %8533 = vmatprep.subr.bf16.mxu1 %v10878_v15 }
0x11ee   :  { %5498 = vmatprep.mubr.f32.mxu0 %v9612_v0  ;;  %5569 = vmatprep.mubr.f32.mxu1 %v9612_v0 }
0x11f0   :  { %8503 = vmatpush1.bf16.msra.mxu0 %v10876_v37  ;;  %8535 = vmatpush1.bf16.msra.mxu1 %v10881_v48 }
0x11f1   :  { %8505 = vmatprep.subr.bf16.mxu0 %v10886_v26  ;;  %8537 = vmatprep.subr.bf16.mxu1 %v10890_v31 }
0x11f4   :  { %8507 = vmatpush1.bf16.msra.mxu0 %v10888_v30  ;;  %8539 = vmatpush1.bf16.msra.mxu1 %v10893_v18 }
0x11f5   :  { %8509 = vmatprep.subr.bf16.mxu0 %v10898_v35  ;;  %8541 = vmatprep.subr.bf16.mxu1 %v10902_v10 }
0x11f8   :  { %8511 = vmatpush1.bf16.msra.mxu0 %v10900_v21  ;;  %8543 = vmatpush1.bf16.msra.mxu1 %v10905_v19 }
0x11f9   :  { %8513 = vmatprep.subr.bf16.mxu0 %v10910_v3  ;;  %8545 = vmatprep.subr.bf16.mxu1 %v10914_v4 }
0x11fc   :  { %8515 = vmatpush1.bf16.msra.mxu0 %v10912_v53  ;;  %8547 = vmatpush1.bf16.msra.mxu1 %v10917_v61 }
0x11fd   :  { %8517 = vmatprep.subr.bf16.mxu0 %v10921_v32  ;;  %8549 = vmatprep.subr.bf16.mxu1 %v10926_v23 }
0x1200   :  { %8519 = vmatpush1.bf16.msra.mxu0 %v10923_v41  ;;  %8551 = vmatpush1.bf16.msra.mxu1 %v10929_v24 }
0x1201   :  { %8521 = vmatprep.subr.bf16.mxu0 %v10931_v46  ;;  %8553 = vmatprep.subr.bf16.mxu1 %v10937_v34 }
0x1204   :  { %8523 = vmatpush1.bf16.msra.mxu0 %v10935_v58  ;;  %8555 = vmatpush1.bf16.msra.mxu1 %v10941_v9 }
0x1205   :  { %8525 = vmatprep.subr.bf16.mxu0 %v10943_v16  ;;  %8557 = vmatprep.subr.bf16.mxu1 %v10949_v6 }
0x1208   :  { %8527 = vmatpush1.bf16.msra.mxu0 %v10951_v5  ;;  %8559 = vmatpush1.bf16.msra.mxu1 %v10954_v51 }
0x1209   :  { %8561 = vmatprep.subr.bf16.mxu0 %v10862_v42  ;;  %8593 = vmatprep.subr.bf16.mxu1 %v10866_v1 }
0x12be   :  { %v5260_v17 = vpop.f32.mrb[34].mxu0  ;;  %v5331_v62 = vpop.f32.mrb[38].mxu1 }
0x12bf   :  { %v8946_v44 = vadd.f32 %v5260_v17, %v11007_v20  ;;  %v5262_v45 = vpop.f32.mrb[35].mxu0  ;;  %v5333_v47 = vpop.f32.mrb[39].mxu1  ;;  %v8962_v7 = vadd.f32 %v5331_v62, %v11015_v40  ;;  %v5854_v17 = vld [vmem:[#allocation15 + $0x20] sm:$0xff] }
0x12c0   :  { %v8947_v43 = vadd.f32 %v5262_v45, %v11010_v8  ;;  %v8963_v54 = vadd.f32 %v5333_v47, %v11018_v56  ;;  %v5852_v45 = vld [vmem:[#allocation15 + $0x10] sm:$0xff] }
0x12c1   :  { %v7062_v55 = vmul.f32 -1.442695, %v8946_v44  ;;  %v7064_v11 = vmul.f32 -1.442695, %v8962_v7  ;;  %v11125_v44 = vpack.c.bf16 %v5854_v17, %v5850_v27  ;;  %v5856_v47 = vld [vmem:[#allocation15 + $0x30] sm:$0xff]  ;;  %v5861_v7 = vld [vmem:[#allocation15 + $0x58] sm:$0xff] }
0x12c2   :  { %v7063_v49 = vmul.f32 -1.442695, %v8947_v43  ;;  %v11128_v43 = vpack.c.bf16 %v5856_v47, %v5852_v45  ;;  %v5891_v17 = vld [vmem:[#allocation15 + $0x148] sm:$0xff]  ;;  %v5893_v47 = vld [vmem:[#allocation15 + $0x158] sm:$0xff] }
0x12c3   :  { %9328 = vpow2.f32 %v7062_v55  ;;  %v5859_v55 = vld [vmem:[#allocation15 + $0x48] sm:$0xff] }
0x12c4   :  { %9330 = vpow2.f32 %v7063_v49  ;;  %v5863_v49 = vld [vmem:[#allocation15 + $0x68] sm:$0xff] }
0x12c5   :  { %9332 = vtanh.f32 %v8963_v54  ;;  %v11133_v54 = vpack.c.bf16 %v5863_v49, %v5859_v55  ;;  %v5895_v45 = vld [vmem:[#allocation15 + $0x168] sm:$0xff]  ;;  %v5897_v49 = vld [vmem:[#allocation15 + $0x178] sm:$0xff] }
0x12c6   :  { %9334 = vpow2.f32 %v7064_v11  ;;  %v5865_v11 = vld [vmem:[#allocation15 + $0x78] sm:$0xff]  ;;  %v11181_v55 = vpack.c.bf16 %v5895_v45, %v5891_v17 }
0x12cd   :  { %v9329_v42 = vpop.eup %9328 }
0x12ce   :  { %v5349_v60 = vadd.f32 1.0, %v9329_v42  ;;  %v9331_v1 = vpop.eup %9330  ;;  %v5858_v42 = vld [vmem:[#allocation15 + $0x40] sm:$0xff] }
0x12cf   :  { %v5350_v38 = vadd.f32 1.0, %v9331_v1  ;;  %v9333_v22 = vpop.eup %9332  ;;  %v11135_v1 = vpack.c.bf16 %v5865_v11, %v5861_v7  ;;  %v5890_v7 = vld [vmem:[#allocation15 + $0x140] sm:$0xff] }
0x12d0   :  { %9336 = vrcp.f32 %v5349_v60  ;;  %v9335_v13 = vpop.eup %9334  ;;  %v5862_v60 = vld [vmem:[#allocation15 + $0x60] sm:$0xff] }
0x12d1   :  { %9338 = vrcp.f32 %v5350_v38  ;;  %v5351_v52 = vadd.f32 1.0, %v9335_v13  ;;  %v11137_v38 = vpack.c.bf16 %v5862_v60, %v5858_v42  ;;  %v5864_v13 = vld [vmem:[#allocation15 + $0x70] sm:$0xff]  ;;  %v5894_v11 = vld [vmem:[#allocation15 + $0x160] sm:$0xff]  ;;  %v11183_v42 = vpack.c.bf16 %v5897_v49, %v5893_v47 }
0x12d2   :  { %v11185_v60 = vpack.c.bf16 %v5894_v11, %v5890_v7 }
0x12d3   :  { %9340 = vrcp.f32 %v5351_v52  ;;  %v5869_v52 = vld [vmem:[#allocation15 + $0x98] sm:$0xff] }
0x12da   :  { %v9337_v2 = vpop.eup %9336 }
0x12db   :  { %v5360_v12 = vmul.f32 %v9337_v2, %v9333_v22  ;;  %v9339_v39 = vpop.eup %9338  ;;  %v5860_v22 = vld [vmem:[#allocation15 + $0x50] sm:$0xff] }
0x12dc   :  { %v5359_v29 = vmul.f32 %v9339_v39, %v11022_v33  ;;  %v5857_v33 = vld [vmem:[#allocation15 + $0x38] sm:$0xff]  ;;  %v11140_v2 = vpack.c.bf16 %v5864_v13, %v5860_v22  ;;  %v5871_v39 = vld [vmem:[#allocation15 + $0xa8] sm:$0xff]  ;;  %v5892_v22 = vld [vmem:[#allocation15 + $0x150] sm:$0xff] }
0x12dd   :  { %v9341_v14 = vpop.eup %9340  ;;  %v5896_v13 = vld [vmem:[#allocation15 + $0x170] sm:$0xff] }
0x12de   :  { %v11068_v57 = vadd.f32 %v5360_v12, %v5359_v29  ;;  %v5867_v12 = vld [vmem:[#allocation15 + $0x88] sm:$0xff] }
0x12df   :  { %v11145_v29 = vpack.c.bf16 %v5871_v39, %v5867_v12  ;;  %v5899_v12 = vld [vmem:[#allocation15 + $0x188] sm:$0xff]  ;;  %v11188_v39 = vpack.c.bf16 %v5896_v13, %v5892_v22 }
0x12e0   :  { %9342 = vtanh.f32 %v11068_v57 }
0x12ea   :  { %v9343_v28 = vpop.eup %9342 }
0x12eb   :  { %v11071_v50 = vmul.f32 %v9343_v28, %v9341_v14  ;;  %v5866_v14 = vld [vmem:[#allocation15 + $0x80] sm:$0xff] }
0x12ec   :  { %v5870_v28 = vld [vmem:[#allocation15 + $0xa0] sm:$0xff] }
0x12ed   :  { %5499 = vmatmul.mubr.f32.vlgmr.msra.gmra.mrb[36].mxu0 %v11071_v50  ;;  %5570 = vmatmul.mubr.f32.vlgmr.msra.gmra.mrb[40].mxu1 %v11071_v50 }
0x12ee   :  { %8563 = vmatpush1.bf16.msra.mxu0 %v10864_v36  ;;  %8595 = vmatpush1.bf16.msra.mxu1 %v10869_v59 }
0x12ef   :  { %8565 = vmatprep.subr.bf16.mxu0 %v10874_v63  ;;  %8597 = vmatprep.subr.bf16.mxu1 %v10878_v15 }
0x12f0   :  { %5738 = vmatprep.mubr.f32.mxu0 %v9612_v0  ;;  %5809 = vmatprep.mubr.f32.mxu1 %v9612_v0 }
0x12f2   :  { %8567 = vmatpush1.bf16.msra.mxu0 %v10876_v37  ;;  %8599 = vmatpush1.bf16.msra.mxu1 %v10881_v48 }
0x12f3   :  { %8569 = vmatprep.subr.bf16.mxu0 %v10886_v26  ;;  %8601 = vmatprep.subr.bf16.mxu1 %v10890_v31 }
0x12f6   :  { %8571 = vmatpush1.bf16.msra.mxu0 %v10888_v30  ;;  %8603 = vmatpush1.bf16.msra.mxu1 %v10893_v18 }
0x12f7   :  { %8573 = vmatprep.subr.bf16.mxu0 %v10898_v35  ;;  %8605 = vmatprep.subr.bf16.mxu1 %v10902_v10 }
0x12fa   :  { %8575 = vmatpush1.bf16.msra.mxu0 %v10900_v21  ;;  %8607 = vmatpush1.bf16.msra.mxu1 %v10905_v19 }
0x12fb   :  { %8577 = vmatprep.subr.bf16.mxu0 %v10910_v3  ;;  %8609 = vmatprep.subr.bf16.mxu1 %v10914_v4 }
0x12fe   :  { %8579 = vmatpush1.bf16.msra.mxu0 %v10912_v53  ;;  %8611 = vmatpush1.bf16.msra.mxu1 %v10917_v61 }
0x12ff   :  { %8581 = vmatprep.subr.bf16.mxu0 %v10921_v32  ;;  %8613 = vmatprep.subr.bf16.mxu1 %v10926_v23 }
0x1302   :  { %8583 = vmatpush1.bf16.msra.mxu0 %v10923_v41  ;;  %8615 = vmatpush1.bf16.msra.mxu1 %v10929_v24 }
0x1303   :  { %8585 = vmatprep.subr.bf16.mxu0 %v10931_v46  ;;  %8617 = vmatprep.subr.bf16.mxu1 %v10937_v34 }
0x1306   :  { %8587 = vmatpush1.bf16.msra.mxu0 %v10935_v58  ;;  %8619 = vmatpush1.bf16.msra.mxu1 %v10941_v9 }
0x1307   :  { %8589 = vmatprep.subr.bf16.mxu0 %v10943_v16  ;;  %8621 = vmatprep.subr.bf16.mxu1 %v10949_v6  ;;  %v5851_v16 = vld [vmem:[#allocation15 + $0x8] sm:$0xff] }
0x1308   :  { %v5855_v6 = vld [vmem:[#allocation15 + $0x28] sm:$0xff] }
0x130a   :  { %8591 = vmatpush1.bf16.msra.mxu0 %v10951_v5  ;;  %8623 = vmatpush1.bf16.msra.mxu1 %v10954_v51  ;;  %v5853_v5 = vld [vmem:[#allocation15 + $0x18] sm:$0xff]  ;;  %v11121_v51 = vpack.c.bf16 %v5855_v6, %v5851_v16 }
0x130b   :  { %v11123_v62 = vpack.c.bf16 %v5857_v33, %v5853_v5  ;;  %v5884_v5 = vld [vmem:[#allocation15 + $0x110] sm:$0xff] }
0x130c   :  { %8625 = vmatprep.subr.bf16.mxu0 %v11121_v51  ;;  %v5888_v33 = vld [vmem:[#allocation15 + $0x130] sm:$0xff] }
0x130d   :  { %8657 = vmatprep.subr.bf16.mxu1 %v11123_v62  ;;  %v11176_v27 = vpack.c.bf16 %v5888_v33, %v5884_v5  ;;  %v5912_v5 = vld [vmem:[#allocation15 + $0x1f0] sm:$0xff] }
0x13c0   :  { %v5500_v36 = vpop.f32.mrb[36].mxu0  ;;  %v5571_v59 = vpop.f32.mrb[40].mxu1 }
0x13c1   :  { %v8948_v63 = vadd.f32 %v5500_v36, %v11007_v20  ;;  %v5502_v37 = vpop.f32.mrb[37].mxu0  ;;  %v5573_v15 = vpop.f32.mrb[41].mxu1  ;;  %v8964_v31 = vadd.f32 %v5571_v59, %v11015_v40  ;;  %v11149_v59 = vpack.c.bf16 %v5870_v28, %v5866_v14  ;;  %v5905_v14 = vld [vmem:[#allocation15 + $0x1b8] sm:$0xff] }
0x13c2   :  { %v8949_v48 = vadd.f32 %v5502_v37, %v11010_v8  ;;  %v8965_v18 = vadd.f32 %v5573_v15, %v11018_v56  ;;  %v5872_v37 = vld [vmem:[#allocation15 + $0xb0] sm:$0xff] }
0x13c3   :  { %v7065_v26 = vmul.f32 -1.442695, %v8948_v63  ;;  %v7067_v35 = vmul.f32 -1.442695, %v8964_v31  ;;  %v5868_v63 = vld [vmem:[#allocation15 + $0x90] sm:$0xff] }
0x13c4   :  { %v7066_v30 = vmul.f32 -1.442695, %v8949_v48  ;;  %v11152_v15 = vpack.c.bf16 %v5872_v37, %v5868_v63  ;;  %v5875_v48 = vld [vmem:[#allocation15 + $0xc8] sm:$0xff]  ;;  %v5898_v37 = vld [vmem:[#allocation15 + $0x180] sm:$0xff] }
0x13c5   :  { %9344 = vpow2.f32 %v7065_v26  ;;  %v5879_v26 = vld [vmem:[#allocation15 + $0xe8] sm:$0xff] }
0x13c6   :  { %9346 = vpow2.f32 %v7066_v30  ;;  %v5877_v30 = vld [vmem:[#allocation15 + $0xd8] sm:$0xff]  ;;  %v11157_v31 = vpack.c.bf16 %v5879_v26, %v5875_v48  ;;  %v5902_v48 = vld [vmem:[#allocation15 + $0x1a0] sm:$0xff]  ;;  %v5900_v26 = vld [vmem:[#allocation15 + $0x190] sm:$0xff] }
0x13c7   :  { %9348 = vtanh.f32 %v8965_v18  ;;  %v5881_v18 = vld [vmem:[#allocation15 + $0xf8] sm:$0xff] }
0x13c8   :  { %9350 = vpow2.f32 %v7067_v35  ;;  %v5874_v35 = vld [vmem:[#allocation15 + $0xc0] sm:$0xff] }
0x13cf   :  { %v9345_v21 = vpop.eup %9344 }
0x13d0   :  { %v5589_v10 = vadd.f32 1.0, %v9345_v21  ;;  %v9347_v19 = vpop.eup %9346  ;;  %v5878_v21 = vld [vmem:[#allocation15 + $0xe0] sm:$0xff] }
0x13d1   :  { %v5590_v3 = vadd.f32 1.0, %v9347_v19  ;;  %v9349_v53 = vpop.eup %9348  ;;  %v11161_v19 = vpack.c.bf16 %v5878_v21, %v5874_v35  ;;  %v5907_v35 = vld [vmem:[#allocation15 + $0x1c8] sm:$0xff] }
0x13d2   :  { %9352 = vrcp.f32 %v5589_v10  ;;  %v9351_v4 = vpop.eup %9350  ;;  %v11159_v10 = vpack.c.bf16 %v5881_v18, %v5877_v30  ;;  %v11197_v30 = vpack.c.bf16 %v5902_v48, %v5898_v37  ;;  %v5904_v18 = vld [vmem:[#allocation15 + $0x1b0] sm:$0xff]  ;;  %v5911_v21 = vld [vmem:[#allocation15 + $0x1e8] sm:$0xff] }
0x13d3   :  { %9354 = vrcp.f32 %v5590_v3  ;;  %v5591_v23 = vadd.f32 1.0, %v9351_v4  ;;  %v5876_v3 = vld [vmem:[#allocation15 + $0xd0] sm:$0xff] }
0x13d5   :  { %9356 = vrcp.f32 %v5591_v23 }
0x13dc   :  { %v9353_v61 = vpop.eup %9352 }
0x13dd   :  { %v5600_v32 = vmul.f32 %v9353_v61, %v9349_v53  ;;  %v9355_v41 = vpop.eup %9354  ;;  %v5880_v53 = vld [vmem:[#allocation15 + $0xf0] sm:$0xff]  ;;  %v5883_v61 = vld [vmem:[#allocation15 + $0x108] sm:$0xff] }
0x13de   :  { %v5599_v24 = vmul.f32 %v9355_v41, %v11068_v57  ;;  %v5873_v57 = vld [vmem:[#allocation15 + $0xb8] sm:$0xff]  ;;  %v11164_v4 = vpack.c.bf16 %v5880_v53, %v5876_v3  ;;  %v11201_v3 = vpack.c.bf16 %v5904_v18, %v5900_v26  ;;  %v11203_v53 = vpack.c.bf16 %v5911_v21, %v5907_v35 }
0x13df   :  { %v9357_v58 = vpop.eup %9356  ;;  %v11147_v36 = vpack.c.bf16 %v5873_v57, %v5869_v52  ;;  %v5885_v41 = vld [vmem:[#allocation15 + $0x118] sm:$0xff]  ;;  %v5903_v52 = vld [vmem:[#allocation15 + $0x1a8] sm:$0xff] }
0x13e0   :  { %v11112_v46 = vadd.f32 %v5600_v32, %v5599_v24  ;;  %v5887_v32 = vld [vmem:[#allocation15 + $0x128] sm:$0xff]  ;;  %v5889_v24 = vld [vmem:[#allocation15 + $0x138] sm:$0xff]  ;;  %v11192_v28 = vpack.c.bf16 %v5903_v52, %v5899_v12 }
0x13e1   :  { %v11169_v23 = vpack.c.bf16 %v5887_v32, %v5883_v61  ;;  %v11171_v16 = vpack.c.bf16 %v5889_v24, %v5885_v41  ;;  %v5901_v57 = vld [vmem:[#allocation15 + $0x198] sm:$0xff]  ;;  %v5906_v41 = vld [vmem:[#allocation15 + $0x1c0] sm:$0xff] }
0x13e2   :  { %9358 = vtanh.f32 %v11112_v46  ;;  %v11194_v63 = vpack.c.bf16 %v5905_v14, %v5901_v57  ;;  %v5909_v61 = vld [vmem:[#allocation15 + $0x1d8] sm:$0xff] }
0x13e3   :  { %v5913_v32 = vld [vmem:[#allocation15 + $0x1f8] sm:$0xff] }
0x13e4   :  { %v11205_v24 = vpack.c.bf16 %v5913_v32, %v5909_v61 }
0x13ec   :  { %v9359_v34 = vpop.eup %9358 }
0x13ed   :  { %v11115_v9 = vmul.f32 %v9359_v34, %v9357_v58  ;;  %v5882_v58 = vld [vmem:[#allocation15 + $0x100] sm:$0xff] }
0x13ee   :  { %v5886_v34 = vld [vmem:[#allocation15 + $0x120] sm:$0xff] }
0x13ef   :  { %5739 = vmatmul.mubr.f32.vlgmr.msra.gmra.mrb[38].mxu0 %v11115_v9  ;;  %5810 = vmatmul.mubr.f32.vlgmr.msra.gmra.mrb[42].mxu1 %v11115_v9  ;;  %v11173_v6 = vpack.c.bf16 %v5886_v34, %v5882_v58  ;;  %v5910_v58 = vld [vmem:[#allocation15 + $0x1e0] sm:$0xff]  ;;  %v5908_v34 = vld [vmem:[#allocation15 + $0x1d0] sm:$0xff] }
0x13f0   :  { %5978 = vmatprep.mubr.f32.mxu0 %v9612_v0  ;;  %6049 = vmatprep.mubr.f32.mxu1 %v9612_v0  ;;  %v11208_v33 = vpack.c.bf16 %v5910_v58, %v5906_v41  ;;  %v11212_v17 = vpack.c.bf16 %v5912_v5, %v5908_v34 }
0x13f1   :  { %8627 = vmatpush1.bf16.msra.mxu0 %v11125_v44  ;;  %8659 = vmatpush1.bf16.msra.mxu1 %v11128_v43 }
0x13f2   :  { %8629 = vmatprep.subr.bf16.mxu0 %v11133_v54  ;;  %8661 = vmatprep.subr.bf16.mxu1 %v11135_v1 }
0x13f5   :  { %8631 = vmatpush1.bf16.msra.mxu0 %v11137_v38  ;;  %8663 = vmatpush1.bf16.msra.mxu1 %v11140_v2 }
0x13f6   :  { %8633 = vmatprep.subr.bf16.mxu0 %v11145_v29  ;;  %8665 = vmatprep.subr.bf16.mxu1 %v11147_v36 }
0x13f9   :  { %8635 = vmatpush1.bf16.msra.mxu0 %v11149_v59  ;;  %8667 = vmatpush1.bf16.msra.mxu1 %v11152_v15 }
0x13fa   :  { %8637 = vmatprep.subr.bf16.mxu0 %v11157_v31  ;;  %8669 = vmatprep.subr.bf16.mxu1 %v11159_v10 }
0x13fd   :  { %8639 = vmatpush1.bf16.msra.mxu0 %v11161_v19  ;;  %8671 = vmatpush1.bf16.msra.mxu1 %v11164_v4 }
0x13fe   :  { %8641 = vmatprep.subr.bf16.mxu0 %v11169_v23  ;;  %8673 = vmatprep.subr.bf16.mxu1 %v11171_v16 }
0x1401   :  { %8643 = vmatpush1.bf16.msra.mxu0 %v11173_v6  ;;  %8675 = vmatpush1.bf16.msra.mxu1 %v11176_v27 }
0x1402   :  { %8645 = vmatprep.subr.bf16.mxu0 %v11181_v55  ;;  %8677 = vmatprep.subr.bf16.mxu1 %v11183_v42 }
0x1405   :  { %8647 = vmatpush1.bf16.msra.mxu0 %v11185_v60  ;;  %8679 = vmatpush1.bf16.msra.mxu1 %v11188_v39 }
0x1406   :  { %8649 = vmatprep.subr.bf16.mxu0 %v11192_v28  ;;  %8681 = vmatprep.subr.bf16.mxu1 %v11194_v63 }
0x1409   :  { %8651 = vmatpush1.bf16.msra.mxu0 %v11197_v30  ;;  %8683 = vmatpush1.bf16.msra.mxu1 %v11201_v3 }
0x140a   :  { %8653 = vmatprep.subr.bf16.mxu0 %v11203_v53  ;;  %8685 = vmatprep.subr.bf16.mxu1 %v11205_v24 }
0x140d   :  { %8655 = vmatpush1.bf16.msra.mxu0 %v11208_v33  ;;  %8687 = vmatpush1.bf16.msra.mxu1 %v11212_v17 }
0x140e   :  { %8689 = vmatprep.subr.bf16.mxu0 %v11121_v51  ;;  %8721 = vmatprep.subr.bf16.mxu1 %v11123_v62 }
0x14c2   :  { %v5740_v45 = vpop.f32.mrb[38].mxu0  ;;  %v5811_v47 = vpop.f32.mrb[42].mxu1 }
0x14c3   :  { %v8950_v49 = vadd.f32 %v5740_v45, %v11007_v20  ;;  %v5742_v7 = vpop.f32.mrb[39].mxu0  ;;  %v5813_v11 = vpop.f32.mrb[43].mxu1  ;;  %v8966_v52 = vadd.f32 %v5811_v47, %v11015_v40 }
0x14c4   :  { %v8951_v22 = vadd.f32 %v5742_v7, %v11010_v8  ;;  %v8967_v57 = vadd.f32 %v5813_v11, %v11018_v56 }
0x14c5   :  { %v7068_v13 = vmul.f32 -1.442695, %v8950_v49  ;;  %v7070_v14 = vmul.f32 -1.442695, %v8966_v52 }
0x14c6   :  { %v7069_v12 = vmul.f32 -1.442695, %v8951_v22 }
0x14c7   :  { %9360 = vpow2.f32 %v7068_v13 }
0x14c8   :  { %9362 = vpow2.f32 %v7069_v12 }
0x14c9   :  { %9364 = vtanh.f32 %v8967_v57 }
0x14ca   :  { %9366 = vpow2.f32 %v7070_v14 }
0x14d1   :  { %v9361_v37 = vpop.eup %9360 }
0x14d2   :  { %v5829_v48 = vadd.f32 1.0, %v9361_v37  ;;  %v9363_v26 = vpop.eup %9362 }
0x14d3   :  { %v5830_v18 = vadd.f32 1.0, %v9363_v26  ;;  %v9365_v35 = vpop.eup %9364 }
0x14d4   :  { %9368 = vrcp.f32 %v5829_v48  ;;  %v9367_v21 = vpop.eup %9366 }
0x14d5   :  { %9370 = vrcp.f32 %v5830_v18  ;;  %v5831_v58 = vadd.f32 1.0, %v9367_v21 }
0x14d7   :  { %9372 = vrcp.f32 %v5831_v58 }
0x14de   :  { %v9369_v61 = vpop.eup %9368 }
0x14df   :  { %v5840_v32 = vmul.f32 %v9369_v61, %v9365_v35  ;;  %v9371_v41 = vpop.eup %9370 }
0x14e0   :  { %v5839_v34 = vmul.f32 %v9371_v41, %v11112_v46 }
0x14e1   :  { %v9373_v45 = vpop.eup %9372 }
0x14e2   :  { %v11224_v5 = vadd.f32 %v5840_v32, %v5839_v34 }
0x14e4   :  { %9374 = vtanh.f32 %v11224_v5 }
0x14ee   :  { %v9375_v47 = vpop.eup %9374 }
0x14ef   :  { %v11227_v49 = vmul.f32 %v9375_v47, %v9373_v45 }
0x14f1   :  { %5979 = vmatmul.mubr.f32.vlgmr.msra.gmra.mrb[40].mxu0 %v11227_v49  ;;  %6050 = vmatmul.mubr.f32.vlgmr.msra.gmra.mrb[44].mxu1 %v11227_v49 }
0x14f2   :  { %8691 = vmatpush1.bf16.msra.mxu0 %v11125_v44  ;;  %8723 = vmatpush1.bf16.msra.mxu1 %v11128_v43 }
0x14f3   :  { %8693 = vmatprep.subr.bf16.mxu0 %v11133_v54  ;;  %8725 = vmatprep.subr.bf16.mxu1 %v11135_v1 }
0x14f4   :  { %6218 = vmatprep.mubr.f32.mxu0 %v9612_v0  ;;  %6289 = vmatprep.mubr.f32.mxu1 %v9612_v0 }
0x14f6   :  { %8695 = vmatpush1.bf16.msra.mxu0 %v11137_v38  ;;  %8727 = vmatpush1.bf16.msra.mxu1 %v11140_v2 }
0x14f7   :  { %8697 = vmatprep.subr.bf16.mxu0 %v11145_v29  ;;  %8729 = vmatprep.subr.bf16.mxu1 %v11147_v36 }
0x14fa   :  { %8699 = vmatpush1.bf16.msra.mxu0 %v11149_v59  ;;  %8731 = vmatpush1.bf16.msra.mxu1 %v11152_v15 }
0x14fb   :  { %8701 = vmatprep.subr.bf16.mxu0 %v11157_v31  ;;  %8733 = vmatprep.subr.bf16.mxu1 %v11159_v10 }
0x14fe   :  { %8703 = vmatpush1.bf16.msra.mxu0 %v11161_v19  ;;  %8735 = vmatpush1.bf16.msra.mxu1 %v11164_v4 }
0x14ff   :  { %8705 = vmatprep.subr.bf16.mxu0 %v11169_v23  ;;  %8737 = vmatprep.subr.bf16.mxu1 %v11171_v16 }
0x1502   :  { %8707 = vmatpush1.bf16.msra.mxu0 %v11173_v6  ;;  %8739 = vmatpush1.bf16.msra.mxu1 %v11176_v27 }
0x1503   :  { %8709 = vmatprep.subr.bf16.mxu0 %v11181_v55  ;;  %8741 = vmatprep.subr.bf16.mxu1 %v11183_v42 }
0x1506   :  { %8711 = vmatpush1.bf16.msra.mxu0 %v11185_v60  ;;  %8743 = vmatpush1.bf16.msra.mxu1 %v11188_v39 }
0x1507   :  { %8713 = vmatprep.subr.bf16.mxu0 %v11192_v28  ;;  %8745 = vmatprep.subr.bf16.mxu1 %v11194_v63 }
0x150a   :  { %8715 = vmatpush1.bf16.msra.mxu0 %v11197_v30  ;;  %8747 = vmatpush1.bf16.msra.mxu1 %v11201_v3 }
0x150b   :  { %8717 = vmatprep.subr.bf16.mxu0 %v11203_v53  ;;  %8749 = vmatprep.subr.bf16.mxu1 %v11205_v24 }
0x150e   :  { %8719 = vmatpush1.bf16.msra.mxu0 %v11208_v33  ;;  %8751 = vmatpush1.bf16.msra.mxu1 %v11212_v17 }
0x150f   :  { %8753 = vmatprep.subr.bf16.mxu0 %v11121_v51  ;;  %8785 = vmatprep.subr.bf16.mxu1 %v11123_v62 }
0x15c4   :  { %v5980_v46 = vpop.f32.mrb[40].mxu0  ;;  %v6051_v7 = vpop.f32.mrb[44].mxu1 }
0x15c5   :  { %v8952_v11 = vadd.f32 %v5980_v46, %v11007_v20  ;;  %v5982_v22 = vpop.f32.mrb[41].mxu0  ;;  %v6053_v13 = vpop.f32.mrb[45].mxu1  ;;  %v8968_v14 = vadd.f32 %v6051_v7, %v11015_v40 }
0x15c6   :  { %v8953_v12 = vadd.f32 %v5982_v22, %v11010_v8  ;;  %v8969_v37 = vadd.f32 %v6053_v13, %v11018_v56 }
0x15c7   :  { %v7071_v52 = vmul.f32 -1.442695, %v8952_v11  ;;  %v7073_v48 = vmul.f32 -1.442695, %v8968_v14 }
0x15c8   :  { %v7072_v57 = vmul.f32 -1.442695, %v8953_v12 }
0x15c9   :  { %9376 = vpow2.f32 %v7071_v52 }
0x15ca   :  { %9378 = vpow2.f32 %v7072_v57 }
0x15cb   :  { %9380 = vtanh.f32 %v8969_v37 }
0x15cc   :  { %9382 = vpow2.f32 %v7073_v48 }
0x15d3   :  { %v9377_v26 = vpop.eup %9376 }
0x15d4   :  { %v6069_v18 = vadd.f32 1.0, %v9377_v26  ;;  %v9379_v35 = vpop.eup %9378 }
0x15d5   :  { %v6070_v21 = vadd.f32 1.0, %v9379_v35  ;;  %v9381_v61 = vpop.eup %9380 }
0x15d6   :  { %9384 = vrcp.f32 %v6069_v18  ;;  %v9383_v32 = vpop.eup %9382 }
0x15d7   :  { %9386 = vrcp.f32 %v6070_v21  ;;  %v6071_v45 = vadd.f32 1.0, %v9383_v32 }
0x15d9   :  { %9388 = vrcp.f32 %v6071_v45 }
0x15e0   :  { %v9385_v41 = vpop.eup %9384 }
0x15e1   :  { %v6080_v58 = vmul.f32 %v9385_v41, %v9381_v61  ;;  %v9387_v34 = vpop.eup %9386 }
0x15e2   :  { %v6079_v47 = vmul.f32 %v9387_v34, %v11224_v5 }
0x15e3   :  { %v9389_v7 = vpop.eup %9388 }
0x15e4   :  { %v11270_v46 = vadd.f32 %v6080_v58, %v6079_v47 }
0x15e6   :  { %9390 = vtanh.f32 %v11270_v46 }
0x15f0   :  { %v9391_v11 = vpop.eup %9390 }
0x15f1   :  { %v11273_v22 = vmul.f32 %v9391_v11, %v9389_v7 }
0x15f3   :  { %6219 = vmatmul.mubr.f32.vlgmr.msra.gmra.mrb[42].mxu0 %v11273_v22  ;;  %6290 = vmatmul.mubr.f32.vlgmr.msra.gmra.mrb[46].mxu1 %v11273_v22 }
0x15f4   :  { %8755 = vmatpush1.bf16.msra.mxu0 %v11125_v44  ;;  %8787 = vmatpush1.bf16.msra.mxu1 %v11128_v43 }
0x15f5   :  { %8757 = vmatprep.subr.bf16.mxu0 %v11133_v54  ;;  %8789 = vmatprep.subr.bf16.mxu1 %v11135_v1 }
0x15f6   :  { %6458 = vmatprep.mubr.f32.mxu0 %v9612_v0  ;;  %6529 = vmatprep.mubr.f32.mxu1 %v9612_v0 }
0x15f8   :  { %8759 = vmatpush1.bf16.msra.mxu0 %v11137_v38  ;;  %8791 = vmatpush1.bf16.msra.mxu1 %v11140_v2 }
0x15f9   :  { %8761 = vmatprep.subr.bf16.mxu0 %v11145_v29  ;;  %8793 = vmatprep.subr.bf16.mxu1 %v11147_v36 }
0x15fc   :  { %8763 = vmatpush1.bf16.msra.mxu0 %v11149_v59  ;;  %8795 = vmatpush1.bf16.msra.mxu1 %v11152_v15 }
0x15fd   :  { %8765 = vmatprep.subr.bf16.mxu0 %v11157_v31  ;;  %8797 = vmatprep.subr.bf16.mxu1 %v11159_v10 }
0x1600   :  { %8767 = vmatpush1.bf16.msra.mxu0 %v11161_v19  ;;  %8799 = vmatpush1.bf16.msra.mxu1 %v11164_v4 }
0x1601   :  { %8769 = vmatprep.subr.bf16.mxu0 %v11169_v23  ;;  %8801 = vmatprep.subr.bf16.mxu1 %v11171_v16 }
0x1604   :  { %8771 = vmatpush1.bf16.msra.mxu0 %v11173_v6  ;;  %8803 = vmatpush1.bf16.msra.mxu1 %v11176_v27 }
0x1605   :  { %8773 = vmatprep.subr.bf16.mxu0 %v11181_v55  ;;  %8805 = vmatprep.subr.bf16.mxu1 %v11183_v42 }
0x1608   :  { %8775 = vmatpush1.bf16.msra.mxu0 %v11185_v60  ;;  %8807 = vmatpush1.bf16.msra.mxu1 %v11188_v39 }
0x1609   :  { %8777 = vmatprep.subr.bf16.mxu0 %v11192_v28  ;;  %8809 = vmatprep.subr.bf16.mxu1 %v11194_v63 }
0x160c   :  { %8779 = vmatpush1.bf16.msra.mxu0 %v11197_v30  ;;  %8811 = vmatpush1.bf16.msra.mxu1 %v11201_v3 }
0x160d   :  { %8781 = vmatprep.subr.bf16.mxu0 %v11203_v53  ;;  %8813 = vmatprep.subr.bf16.mxu1 %v11205_v24 }
0x1610   :  { %8783 = vmatpush1.bf16.msra.mxu0 %v11208_v33  ;;  %8815 = vmatpush1.bf16.msra.mxu1 %v11212_v17 }
0x1611   :  { %8817 = vmatprep.subr.bf16.mxu0 %v11121_v51  ;;  %8849 = vmatprep.subr.bf16.mxu1 %v11123_v62 }
0x16c6   :  { %v6220_v5 = vpop.f32.mrb[42].mxu0  ;;  %v6291_v13 = vpop.f32.mrb[46].mxu1 }
0x16c7   :  { %v8954_v12 = vadd.f32 %v6220_v5, %v11007_v20  ;;  %v6222_v52 = vpop.f32.mrb[43].mxu0  ;;  %v6293_v57 = vpop.f32.mrb[47].mxu1  ;;  %v8970_v26 = vadd.f32 %v6291_v13, %v11015_v40 }
0x16c8   :  { %v8955_v14 = vadd.f32 %v6222_v52, %v11010_v8  ;;  %v8971_v18 = vadd.f32 %v6293_v57, %v11018_v56  ;;  %v6818_v52 = vld [vmem:[%s11448_s10 + $0x20] sm:$0xff]  ;;  %v6819_v57 = vld [vmem:[%s11448_s10 + $0x28] sm:$0xff] }
0x16c9   :  { %v7074_v37 = vmul.f32 -1.442695, %v8954_v12  ;;  %v7076_v35 = vmul.f32 -1.442695, %v8970_v26 }
0x16ca   :  { %v7075_v48 = vmul.f32 -1.442695, %v8955_v14  ;;  %v8888_v14 = vpack.c.bf16 %v6819_v57, %v6818_v52 }
0x16cb   :  { %9392 = vpow2.f32 %v7074_v37  ;;  %v6820_v37 = vld [vmem:[%s11448_s10 + $0x30] sm:$0xff] }
0x16cc   :  { %9394 = vpow2.f32 %v7075_v48  ;;  %v6821_v48 = vld [vmem:[%s11448_s10 + $0x38] sm:$0xff] }
0x16cd   :  { %9396 = vtanh.f32 %v8971_v18  ;;  %v8892_v26 = vpack.c.bf16 %v6821_v48, %v6820_v37  ;;  %v6822_v18 = vld [vmem:[%s11448_s10 + $0x40] sm:$0xff] }
0x16ce   :  { %9398 = vpow2.f32 %v7076_v35 }
0x16d5   :  { %v9393_v51 = vpop.eup %9392 }
0x16d6   :  { %v6309_v21 = vadd.f32 1.0, %v9393_v51  ;;  %v9395_v62 = vpop.eup %9394  ;;  %v6824_v51 = vld [vmem:[%s11448_s10 + $0x50] sm:$0xff] }
0x16d7   :  { %v6310_v61 = vadd.f32 1.0, %v9395_v62  ;;  %v9397_v32 = vpop.eup %9396 }
0x16d8   :  { %9400 = vrcp.f32 %v6309_v21  ;;  %v9399_v41 = vpop.eup %9398  ;;  %v6825_v21 = vld [vmem:[%s11448_s10 + $0x58] sm:$0xff] }
0x16d9   :  { %9402 = vrcp.f32 %v6310_v61  ;;  %v6311_v47 = vadd.f32 1.0, %v9399_v41  ;;  %v8900_v62 = vpack.c.bf16 %v6825_v21, %v6824_v51  ;;  %v6826_v61 = vld [vmem:[%s11448_s10 + $0x60] sm:$0xff] }
0x16db   :  { %9404 = vrcp.f32 %v6311_v47 }
0x16e2   :  { %v9401_v58 = vpop.eup %9400 }
0x16e3   :  { %v6320_v34 = vmul.f32 %v9401_v58, %v9397_v32  ;;  %v9403_v45 = vpop.eup %9402  ;;  %v6827_v32 = vld [vmem:[%s11448_s10 + $0x68] sm:$0xff]  ;;  %v6828_v58 = vld [vmem:[%s11448_s10 + $0x70] sm:$0xff] }
0x16e4   :  { %v6319_v7 = vmul.f32 %v9403_v45, %v11270_v46  ;;  %v8904_v41 = vpack.c.bf16 %v6827_v32, %v6826_v61 }
0x16e5   :  { %v9405_v5 = vpop.eup %9404 }
0x16e6   :  { %v11316_v11 = vadd.f32 %v6320_v34, %v6319_v7  ;;  %v6829_v34 = vld [vmem:[%s11448_s10 + $0x78] sm:$0xff] }
0x16e7   :  { %v8908_v45 = vpack.c.bf16 %v6829_v34, %v6828_v58 }
0x16e8   :  { %9406 = vtanh.f32 %v11316_v11 }
0x16f2   :  { %v9407_v13 = vpop.eup %9406 }
0x16f3   :  { %v11319_v12 = vmul.f32 %v9407_v13, %v9405_v5 }
0x16f5   :  { %6459 = vmatmul.mubr.f32.vlgmr.msra.gmra.mrb[44].mxu0 %v11319_v12  ;;  %6530 = vmatmul.mubr.f32.vlgmr.msra.gmra.mrb[48].mxu1 %v11319_v12 }
0x16f6   :  { %8819 = vmatpush1.bf16.msra.mxu0 %v11125_v44  ;;  %8851 = vmatpush1.bf16.msra.mxu1 %v11128_v43  ;;  %v6815_v44 = vld [vmem:[%s11448_s10 + $0x8] sm:$0xff] }
0x16f7   :  { %8821 = vmatprep.subr.bf16.mxu0 %v11133_v54  ;;  %8853 = vmatprep.subr.bf16.mxu1 %v11135_v1 }
0x16f8   :  { %6698 = vmatprep.mubr.f32.mxu0 %v9612_v0  ;;  %6769 = vmatprep.mubr.f32.mxu1 %v9612_v0  ;;  %v6814_v0 = vld [vmem:[%s11448_s10] sm:$0xff] }
0x16f9   :  { %v8880_v43 = vpack.c.bf16 %v6815_v44, %v6814_v0 }
0x16fa   :  { %8823 = vmatpush1.bf16.msra.mxu0 %v11137_v38  ;;  %8855 = vmatpush1.bf16.msra.mxu1 %v11140_v2 }
0x16fb   :  { %8825 = vmatprep.subr.bf16.mxu0 %v11145_v29  ;;  %8857 = vmatprep.subr.bf16.mxu1 %v11147_v36 }
0x16fe   :  { %8827 = vmatpush1.bf16.msra.mxu0 %v11149_v59  ;;  %8859 = vmatpush1.bf16.msra.mxu1 %v11152_v15 }
0x16ff   :  { %8829 = vmatprep.subr.bf16.mxu0 %v11157_v31  ;;  %8861 = vmatprep.subr.bf16.mxu1 %v11159_v10 }
0x1702   :  { %8831 = vmatpush1.bf16.msra.mxu0 %v11161_v19  ;;  %8863 = vmatpush1.bf16.msra.mxu1 %v11164_v4 }
0x1703   :  { %8833 = vmatprep.subr.bf16.mxu0 %v11169_v23  ;;  %8865 = vmatprep.subr.bf16.mxu1 %v11171_v16 }
0x1706   :  { %8835 = vmatpush1.bf16.msra.mxu0 %v11173_v6  ;;  %8867 = vmatpush1.bf16.msra.mxu1 %v11176_v27 }
0x1707   :  { %8837 = vmatprep.subr.bf16.mxu0 %v11181_v55  ;;  %8869 = vmatprep.subr.bf16.mxu1 %v11183_v42 }
0x170a   :  { %8839 = vmatpush1.bf16.msra.mxu0 %v11185_v60  ;;  %8871 = vmatpush1.bf16.msra.mxu1 %v11188_v39 }
0x170b   :  { %8841 = vmatprep.subr.bf16.mxu0 %v11192_v28  ;;  %8873 = vmatprep.subr.bf16.mxu1 %v11194_v63 }
0x170e   :  { %8843 = vmatpush1.bf16.msra.mxu0 %v11197_v30  ;;  %8875 = vmatpush1.bf16.msra.mxu1 %v11201_v3  ;;  %v6816_v3 = vld [vmem:[%s11448_s10 + $0x10] sm:$0xff] }
0x170f   :  { %8845 = vmatprep.subr.bf16.mxu0 %v11203_v53  ;;  %8877 = vmatprep.subr.bf16.mxu1 %v11205_v24  ;;  %v6817_v53 = vld [vmem:[%s11448_s10 + $0x18] sm:$0xff] }
0x1710   :  { %v8884_v46 = vpack.c.bf16 %v6817_v53, %v6816_v3 }
0x1712   :  { %8847 = vmatpush1.bf16.msra.mxu0 %v11208_v33  ;;  %8879 = vmatpush1.bf16.msra.mxu1 %v11212_v17 }
0x1713   :  { %8881 = vmatprep.subr.bf16.mxu0 %v8880_v43 }
0x17c8   :  { %v6460_v54 = vpop.f32.mrb[44].mxu0  ;;  %v6531_v1 = vpop.f32.mrb[48].mxu1 }
0x17c9   :  { %v8956_v38 = vadd.f32 %v6460_v54, %v11007_v20  ;;  %v6462_v2 = vpop.f32.mrb[45].mxu0  ;;  %v6533_v29 = vpop.f32.mrb[49].mxu1  ;;  %v8972_v31 = vadd.f32 %v6531_v1, %v11015_v40 }
0x17ca   :  { %v8957_v36 = vadd.f32 %v6462_v2, %v11010_v8  ;;  %v8973_v10 = vadd.f32 %v6533_v29, %v11018_v56 }
0x17cb   :  { %v7077_v59 = vmul.f32 -1.442695, %v8956_v38  ;;  %v7079_v19 = vmul.f32 -1.442695, %v8972_v31 }
0x17cc   :  { %v7078_v15 = vmul.f32 -1.442695, %v8957_v36 }
0x17cd   :  { %9408 = vpow2.f32 %v7077_v59 }
0x17ce   :  { %9410 = vpow2.f32 %v7078_v15 }
0x17cf   :  { %9412 = vtanh.f32 %v8973_v10 }
0x17d0   :  { %9414 = vpow2.f32 %v7079_v19 }
0x17d7   :  { %v9409_v4 = vpop.eup %9408 }
0x17d8   :  { %v6549_v23 = vadd.f32 1.0, %v9409_v4  ;;  %v9411_v16 = vpop.eup %9410 }
0x17d9   :  { %v6550_v6 = vadd.f32 1.0, %v9411_v16  ;;  %v9413_v27 = vpop.eup %9412 }
0x17da   :  { %9416 = vrcp.f32 %v6549_v23  ;;  %v9415_v55 = vpop.eup %9414 }
0x17db   :  { %9418 = vrcp.f32 %v6550_v6  ;;  %v6551_v28 = vadd.f32 1.0, %v9415_v55 }
0x17dd   :  { %9420 = vrcp.f32 %v6551_v28 }
0x17e4   :  { %v9417_v42 = vpop.eup %9416 }
0x17e5   :  { %v6560_v60 = vmul.f32 %v9417_v42, %v9413_v27  ;;  %v9419_v39 = vpop.eup %9418 }
0x17e6   :  { %v6559_v63 = vmul.f32 %v9419_v39, %v11316_v11 }
0x17e7   :  { %v9421_v24 = vpop.eup %9420 }
0x17e8   :  { %v11366_v30 = vadd.f32 %v6560_v60, %v6559_v63 }
0x17ea   :  { %9422 = vtanh.f32 %v11366_v30 }
0x17f4   :  { %v9423_v33 = vpop.eup %9422 }
0x17f5   :  { %v6563_v17 = vmul.f32 %v9423_v33, %v9421_v24 }
0x17f7   :  { %6699 = vmatmul.mubr.f32.vlgmr.msra.gmra.mrb[46].mxu0 %v6563_v17  ;;  %6770 = vmatmul.mubr.f32.vlgmr.msra.gmra.mrb[50].mxu1 %v6563_v17 }
0x17f8   :  { %8883 = vmatpush3.bf16.msra.mxu0 %v8880_v43  ;;  %7140 = vmatprep.mubr.f32.mxu0 %v11025_v25  ;;  %v6823_v25 = vld [vmem:[%s11448_s10 + $0x48] sm:$0xff] }
0x17f9   :  { %8885 = vmatprep.subr.bf16.mxu0 %v8884_v46  ;;  %v8896_v35 = vpack.c.bf16 %v6823_v25, %v6822_v18 }
0x17fc   :  { %8887 = vmatpush3.bf16.msra.mxu0 %v8884_v46 }
0x17fd   :  { %8889 = vmatprep.subr.bf16.mxu0 %v8888_v14 }
0x1800   :  { %8891 = vmatpush3.bf16.msra.mxu0 %v8888_v14 }
0x1801   :  { %8893 = vmatprep.subr.bf16.mxu0 %v8892_v26 }
0x1804   :  { %8895 = vmatpush3.bf16.msra.mxu0 %v8892_v26 }
0x1805   :  { %8897 = vmatprep.subr.bf16.mxu0 %v8896_v35 }
0x1808   :  { %8899 = vmatpush3.bf16.msra.mxu0 %v8896_v35 }
0x1809   :  { %8901 = vmatprep.subr.bf16.mxu0 %v8900_v62 }
0x180c   :  { %8903 = vmatpush3.bf16.msra.mxu0 %v8900_v62 }
0x180d   :  { %8905 = vmatprep.subr.bf16.mxu0 %v8904_v41 }
0x1810   :  { %8907 = vmatpush3.bf16.msra.mxu0 %v8904_v41 }
0x1811   :  { %8909 = vmatprep.subr.bf16.mxu0 %v8908_v45 }
0x1814   :  { %8911 = vmatpush3.bf16.msra.mxu0 %v8908_v45 }
0x1817   :  { %7141 = vmatmul.mubr.f32.vlgmr.msra.gmra.mrb[48].mxu0 %v11071_v50 }
0x1818   :  { %7143 = vmatprep.mubr.f32.mxu0 %v11115_v9 }
0x181b   :  { %7144 = vmatmul.mubr.f32.gmra.mrb[50].mxu0 %v11227_v49 }
0x181c   :  { %7146 = vmatprep.mubr.f32.mxu0 %v11273_v22 }
0x181f   :  { %7147 = vmatmul.mubr.f32.gmra.mrb[52].mxu0 %v11319_v12 }
0x1820   :  { %7149 = vmatprep.mubr.f32.mxu0 %v6563_v17 }
0x18ca   :  { %v6700_v47 = vpop.f32.mrb[46].mxu0  ;;  %v6771_v7 = vpop.f32.mrb[50].mxu1 }
0x18cb   :  { %v8958_v11 = vadd.f32 %v6700_v47, %v11007_v20  ;;  %v6702_v5 = vpop.f32.mrb[47].mxu0  ;;  %v6773_v13 = vpop.f32.mrb[51].mxu1  ;;  %v8974_v50 = vadd.f32 %v6771_v7, %v11015_v40  ;;  %v7083_v40 = vld [vmem:[%s11449_s11] ss:$0 sm:$0xff]  ;;  %s9615_s11 = smov 64  }
0x18cc   :  { %v8959_v0 = vadd.f32 %v6702_v5, %v11010_v8  ;;  %v8975_v9 = vadd.f32 %v6773_v13, %v11018_v56 }
0x18cd   :  { %v7080_v44 = vmul.f32 -1.442695, %v8958_v11  ;;  %v7082_v49 = vmul.f32 -1.442695, %v8974_v50 }
0x18ce   :  { %v7081_v43 = vmul.f32 -1.442695, %v8959_v0 }
0x18cf   :  { %9424 = vpow2.f32 %v7080_v44 }
0x18d0   :  { %9426 = vpow2.f32 %v7081_v43 }
0x18d1   :  { %9428 = vtanh.f32 %v8975_v9 }
0x18d2   :  { %9430 = vpow2.f32 %v7082_v49 }
0x18d9   :  { %v9425_v22 = vpop.eup %9424 }
0x18da   :  { %v6789_v12 = vadd.f32 1.0, %v9425_v22  ;;  %v9427_v54 = vpop.eup %9426 }
0x18db   :  { %v6790_v20 = vadd.f32 1.0, %v9427_v54  ;;  %v9429_v1 = vpop.eup %9428 }
0x18dc   :  { %9432 = vrcp.f32 %v6789_v12  ;;  %v9431_v38 = vpop.eup %9430 }
0x18dd   :  { %9434 = vrcp.f32 %v6790_v20  ;;  %v6791_v36 = vadd.f32 1.0, %v9431_v38 }
0x18df   :  { %9436 = vrcp.f32 %v6791_v36 }
0x18e6   :  { %v9433_v8 = vpop.eup %9432 }
0x18e7   :  { %v6800_v2 = vmul.f32 %v9433_v8, %v9429_v1  ;;  %v9435_v29 = vpop.eup %9434 }
0x18e8   :  { %v6799_v56 = vmul.f32 %v9435_v29, %v11366_v30 }
0x18e9   :  { %v9437_v39 = vpop.eup %9436 }
0x18ea   :  { %v7142_v59 = vpop.f32.mrb[48].mxu0  ;;  %v6801_v15 = vadd.f32 %v6800_v2, %v6799_v56 }
0x18eb   :  { %v6909_v31 = vadd.f32 %v7142_v59, %v7083_v40  ;;  %v6903_v10 = vpop.f32.mrb[49].mxu0 }
0x18ec   :  { %v6904_v19 = vadd.f32 %v7083_v40, %v6903_v10  ;;  %9438 = vtanh.f32 %v6801_v15 }
0x18ed   :  { %6945 = vrot.lane.b32.xlu0 %v6909_v31, %s9613_s4 }
0x18ee   :  { %6943 = vst.msk [vmem:[#allocation17] sm:$0xff] %vm6942_vm0, %v6904_v19  ;;  %v7145_v4 = vpop.f32.mrb[50].mxu0 }
0x18ef   :  { %v6919_v23 = vadd.f32 %v7145_v4, %v7083_v40  ;;  %v6913_v16 = vpop.f32.mrb[51].mxu0 }
0x18f0   :  { %v6914_v6 = vadd.f32 %v7083_v40, %v6913_v16 }
0x18f1   :  { %6957 = vrot.lane.b32.xlu1 %v6919_v23, %s9614_s14 }
0x18f2   :  { %v7148_v27 = vpop.f32.mrb[52].mxu0  ;;  %6951 = vrot.lane.b32.xlu0 %v6914_v6, %s9607_s16  ;;  %s9617_s16 = smov 112  }
0x18f3   :  { %v6929_v55 = vadd.f32 %v7148_v27, %v7083_v40  ;;  %v6923_v42 = vpop.f32.mrb[53].mxu0 }
0x18f4   :  { %v6924_v60 = vadd.f32 %v7083_v40, %v6923_v42 }
0x18f6   :  { %6963 = vrot.lane.b32.xlu1 %v6924_v60, %s9615_s11  ;;  %6969 = vrot.lane.b32.xlu0 %v6929_v55, %s9616_s22  ;;  %v9439_v28 = vpop.eup %9438 }
0x18f7   :  { %v6803_v63 = vmul.f32 %v9439_v28, %v9437_v39 }
0x18f9   :  { %7150 = vmatmul.mubr.f32.gmra.mrb[54].mxu0 %v6803_v63 }
0x195f   :  { %v6946_v30 = vpop.permute.xlu0 %6945 }
0x1960   :  { %6949 = vst.msk [vmem:[#allocation17] sm:$0xff] %vm6948_vm1, %v6946_v30 }
0x1963   :  { %v6958_v3 = vpop.permute.xlu1 %6957 }
0x1964   :  { %v6952_v53 = vpop.permute.xlu0 %6951 }
0x1965   :  { %6955 = vst.msk [vmem:[#allocation17] sm:$0xff] %vm6954_vm2, %v6952_v53 }
0x1966   :  { %6961 = vst.msk [vmem:[#allocation17] sm:$0xff] %vm6960_vm3, %v6958_v3 }
0x1968   :  { %v6964_v24 = vpop.permute.xlu1 %6963  ;;  %v6970_v33 = vpop.permute.xlu0 %6969 }
0x1969   :  { %6967 = vst.msk [vmem:[#allocation17] sm:$0xff] %vm6966_vm4, %v6964_v24 }
0x196a   :  { %6973 = vst.msk [vmem:[#allocation17] sm:$0xff] %vm6972_vm5, %v6970_v33 }
0x19cc   :  { %v7151_v17 = vpop.f32.mrb[54].mxu0 }
0x19cd   :  { %v6939_v46 = vadd.f32 %v7151_v17, %v7083_v40  ;;  %v6933_v52 = vpop.f32.mrb[55].mxu0 }
0x19ce   :  { %v6934_v57 = vadd.f32 %v7083_v40, %v6933_v52 }
0x19cf   :  { %6981 = vrot.lane.b32.xlu0 %v6939_v46, %s9617_s16 }
0x19d0   :  { %6975 = vrot.lane.b32.xlu1 %v6934_v57, %s9618_s29 }
0x1a41   :  { %v6982_v37 = vpop.permute.xlu0 %6981 }
0x1a42   :  { %v6976_v14 = vpop.permute.xlu1 %6975 }
0x1a43   :  { %6979 = vst.msk [vmem:[#allocation17] sm:$0xff] %vm6978_vm6, %v6976_v14 }
0x1a44   :  { %6985 = vst.msk [vmem:[#allocation17] sm:$0xff] %vm6984_vm7, %v6982_v37 }
0x1a45   :  { %9583 = shalt.err (!%p9580_p10)
}
0x1a46   :  { %s9584_s19 = scalar_lea.hbm %s11450_s12, 128 }
0x1a47   :  { %p9585_p11 = scmp.ne.s32.totalorder %s11450_s12, %s9584_s19  ;;  %p9588_p12 = scmp.lt.u32.totalorder %s9584_s19, %s11450_s12 }
0x1a49   :  { %p9590_p13 = pnand %p9588_p12, %p9585_p11 }
0x1a4b   :  { %9593 = shalt.err (!%p9590_p13)
}
0x1a4c   :  { %6995 = dma.vmem_to_hbm [thread:$0]  %s6993_s17, 128, %s11450_s12, [#allocation8]  }
0x1a4d   :  { %9602 = dma.done.wait [#allocation8], 128  }
0x1a4e   :  { %9603 = vsyncadd [#allocation8], 4294967168 }
0x1a4f   :  { %6999 = vsyncpa [#allocation7], 1 }
0x1a50   :  { %7000 = vsyncpa [#allocation10], 1 }
0x1a51   :  { %7001 = vsyncpa [#allocation13], 1 }
0x1a52   :  { %7002 = vsyncpa [#allocation16], 1 }
0x1a53   :  { %7003 = vsyncpa [#allocation8], 1 }

</bundles_post_ra>
